<compile_context>
chip_gen: v5e
topology: v5e:2x2
jax: 0.10.0
libtpu: 0.0.40
codegen_flags: <defaults>
</compile_context>

<pallas_src>
import jax
import jax.numpy as jnp
from jax.experimental import pallas as pl
from jax.experimental.pallas import tpu as pltpu


def encoder_kernel(x_ref, w1_ref, b1_ref, w2_ref, b2_ref, out_ref):
    # First linear: (TM, 896)bf16 @ (896, 512)bf16 -> f32 acc   (MXU)
    h = jnp.dot(x_ref[...], w1_ref[...], preferred_element_type=jnp.float32)
    # Bias add (VPU) + sigmoid (EUP) in f32 — free filler while MXU is binding.
    h = jax.nn.sigmoid(h + b1_ref[...])
    # Second linear: (TM, 512)bf16 @ (512, 128)bf16 -> f32 acc  (MXU)
    o = jnp.dot(h.astype(w2_ref.dtype), w2_ref[...],
                preferred_element_type=jnp.float32)
    out_ref[...] = (o + b2_ref[...]).astype(out_ref.dtype)


def _round_up(n, m):
    return ((n + m - 1) // m) * m


def encoder_forward(x, w1_t, b1, w2_t, b2, *, tm=None):
    """x: (B, 1, 28, 28) float32. w1_t: (784, 512), w2_t: (512, L) (already
    transposed vs. PyTorch). Returns (B, L) float32."""
    B = x.shape[0]
    x_flat = x.reshape(B, -1).astype(jnp.float32)      # Flatten(start_dim=1)
    D_in = x_flat.shape[1]                              # 784
    H = w1_t.shape[1]                                   # 512
    L = w2_t.shape[1]                                   # latent_dims

    # --- MXU/VMEM-friendly padding -------------------------------------
    K_pad = _round_up(D_in, 128)                        # 784 -> 896 (7x128)
    L_pad = max(128, _round_up(L, 128))                 # lane-dense output
    if tm is None:
        tm = 512 if B >= 512 else 128                   # >=128 rows per MXU tile
    B_pad = _round_up(max(B, tm), tm)

    # Matmul operands in bf16 (zeros in padding contribute nothing).
    x_p = jnp.zeros((B_pad, K_pad), jnp.bfloat16)
    x_p = x_p.at[:B, :D_in].set(x_flat.astype(jnp.bfloat16))
    w1_p = jnp.zeros((K_pad, H), jnp.bfloat16)
    w1_p = w1_p.at[:D_in, :].set(w1_t.astype(jnp.bfloat16))
    w2_p = jnp.zeros((H, L_pad), jnp.bfloat16)
    w2_p = w2_p.at[:, :L].set(w2_t.astype(jnp.bfloat16))
    # Biases stay f32 (added to the f32 accumulator).
    b1_2d = b1.reshape(1, H).astype(jnp.float32)
    b2_p = jnp.zeros((1, L_pad), jnp.float32)
    b2_p = b2_p.at[0, :L].set(b2.astype(jnp.float32))

    grid = (B_pad // tm,)

    out_p = pl.pallas_call(
        encoder_kernel,
        out_shape=jax.ShapeDtypeStruct((B_pad, L_pad), jnp.float32),
        grid=grid,
        in_specs=[
            # Activation tiles stream through (double-buffered by Pallas).
            pl.BlockSpec((tm, K_pad), lambda i: (i, 0)),
            # Weights / biases: constant block index -> fetched once, resident.
            pl.BlockSpec((K_pad, H), lambda i: (0, 0)),
            pl.BlockSpec((1, H), lambda i: (0, 0)),
            pl.BlockSpec((H, L_pad), lambda i: (0, 0)),
            pl.BlockSpec((1, L_pad), lambda i: (0, 0)),
        ],
        out_specs=pl.BlockSpec((tm, L_pad), lambda i: (i, 0)),
        compiler_params=pltpu.CompilerParams(
            # "parallel": batch tiles are independent -> shard across the two
            # TensorCores on v7x; no-op on v5e/v6e.
            dimension_semantics=("parallel",)),
    )(x_p, w1_p, b1_2d, w2_p, b2_p)

    return out_p[:B, :L]


def init_encoder_params(key, latent_dims):
    """Deterministic init matching nn.Linear shapes (U(-1/sqrt(fan_in), 1/sqrt(fan_in)))."""
    k1, k2, k3, k4 = jax.random.split(key, 4)
    d_in, hidden = 784, 512
    s1 = 1.0 / jnp.sqrt(d_in)
    s2 = 1.0 / jnp.sqrt(hidden)
    # Stored transposed (in, out) relative to PyTorch's (out, in) weight.
    w1_t = jax.random.uniform(k1, (d_in, hidden), jnp.float32, -s1, s1)
    b1 = jax.random.uniform(k2, (hidden,), jnp.float32, -s1, s1)
    w2_t = jax.random.uniform(k3, (hidden, latent_dims), jnp.float32, -s2, s2)
    b2 = jax.random.uniform(k4, (latent_dims,), jnp.float32, -s2, s2)
    return w1_t, b1, w2_t, b2


if __name__ == "__main__":
    latent_dims = 32
    key = jax.random.PRNGKey(0)
    k_x, k_p = jax.random.split(key)

    # MNIST-like input: NCHW (B, 1, 28, 28) so that Flatten gives 784 features.
    B = 2
    x = jax.random.normal(k_x, (B, 1, 28, 28), jnp.float32)
    w1_t, b1, w2_t, b2 = init_encoder_params(k_p, latent_dims)

    out = encoder_forward(x, w1_t, b1, w2_t, b2)
    out = jax.block_until_ready(out)

    # Pure-JAX f32 reference for sanity (kernel matmuls run in bf16, so use a
    # relaxed tolerance as advised in the review).
    x_flat = x.reshape(B, -1)
    ref = jax.nn.sigmoid(x_flat @ w1_t + b1) @ w2_t + b2
    assert out.shape == (B, latent_dims)
    assert jnp.allclose(out, ref, atol=3e-2, rtol=3e-2), "mismatch vs reference"

    print("KERNEL_OK")
</pallas_src>

<mosaic_0001>
module attributes {stable_mosaic.version = 11 : i64} {
  func.func @encoder_kernel(%arg0: i32, %arg1: memref<128x896xbf16, #tpu.memory_space<vmem>>, %arg2: memref<896x512xbf16, #tpu.memory_space<vmem>>, %arg3: memref<1x512xf32, #tpu.memory_space<vmem>>, %arg4: memref<512x128xbf16, #tpu.memory_space<vmem>>, %arg5: memref<1x128xf32, #tpu.memory_space<vmem>>, %arg6: memref<128x128xf32, #tpu.memory_space<vmem>>) attributes {dimension_semantics = [#tpu.dimension_semantics<parallel>], iteration_bounds = array<i64: 1>, scalar_prefetch = 0 : i64, scratch_operands = 0 : i64, tpu.core_type = #tpu.core_type<tc>, window_params = [{transform_indices = @transform_0, window_bounds = array<i64: 128, 896>}, {pipeline_mode = #tpu.pipeline_mode<synchronous>, transform_indices = @transform_1, window_bounds = array<i64: 896, 512>}, {pipeline_mode = #tpu.pipeline_mode<synchronous>, transform_indices = @transform_2, window_bounds = array<i64: 1, 512>}, {pipeline_mode = #tpu.pipeline_mode<synchronous>, transform_indices = @transform_3, window_bounds = array<i64: 512, 128>}, {pipeline_mode = #tpu.pipeline_mode<synchronous>, transform_indices = @transform_4, window_bounds = array<i64: 1, 128>}, {transform_indices = @transform_5, window_bounds = array<i64: 128, 128>}]} {
    %c0 = arith.constant 0 : index
    %c0_0 = arith.constant 0 : index
    %0 = vector.load %arg1[%c0, %c0_0] : memref<128x896xbf16, #tpu.memory_space<vmem>>, vector<128x896xbf16>
    %c0_1 = arith.constant 0 : index
    %c0_2 = arith.constant 0 : index
    %1 = vector.load %arg2[%c0_1, %c0_2] : memref<896x512xbf16, #tpu.memory_space<vmem>>, vector<896x512xbf16>
    %cst = arith.constant dense<0.000000e+00> : vector<128x512xf32>
    %2 = tpu.matmul %0, %1, %cst {dimension_numbers = #tpu.dot_dimension_numbers<[1], [0], [0], [1], [0, 0, 1, 1], [], []>} : vector<128x896xbf16>, vector<896x512xbf16>, vector<128x512xf32> -> vector<128x512xf32>
    %c0_3 = arith.constant 0 : index
    %c0_4 = arith.constant 0 : index
    %3 = vector.load %arg3[%c0_3, %c0_4] : memref<1x512xf32, #tpu.memory_space<vmem>>, vector<1x512xf32>
    %4 = vector.broadcast %3 : vector<1x512xf32> to vector<128x512xf32>
    %5 = arith.addf %2, %4 : vector<128x512xf32>
    %6 = arith.negf %5 : vector<128x512xf32>
    %7 = math.exp %6 : vector<128x512xf32>
    %cst_5 = arith.constant 1.000000e+00 : f32
    %8 = vector.broadcast %cst_5 : f32 to vector<128x512xf32>
    %9 = arith.addf %8, %7 : vector<128x512xf32>
    %10 = arith.divf %8, %9 : vector<128x512xf32>
    %11 = arith.truncf %10 : vector<128x512xf32> to vector<128x512xbf16>
    %c0_6 = arith.constant 0 : index
    %c0_7 = arith.constant 0 : index
    %12 = vector.load %arg4[%c0_6, %c0_7] : memref<512x128xbf16, #tpu.memory_space<vmem>>, vector<512x128xbf16>
    %cst_8 = arith.constant dense<0.000000e+00> : vector<128x128xf32>
    %13 = tpu.matmul %11, %12, %cst_8 {dimension_numbers = #tpu.dot_dimension_numbers<[1], [0], [0], [1], [0, 0, 1, 1], [], []>} : vector<128x512xbf16>, vector<512x128xbf16>, vector<128x128xf32> -> vector<128x128xf32>
    %c0_9 = arith.constant 0 : index
    %c0_10 = arith.constant 0 : index
    %14 = vector.load %arg5[%c0_9, %c0_10] : memref<1x128xf32, #tpu.memory_space<vmem>>, vector<1x128xf32>
    %15 = vector.broadcast %14 : vector<1x128xf32> to vector<128x128xf32>
    %16 = arith.addf %13, %15 : vector<128x128xf32>
    %c0_11 = arith.constant 0 : index
    %c0_12 = arith.constant 0 : index
    %17 = vector.load %arg6[%c0_11, %c0_12] : memref<128x128xf32, #tpu.memory_space<vmem>>, vector<128x128xf32>
    tpu.vector_store %arg6[%c0_11, %c0_12], %16 {strides = array<i32>} : memref<128x128xf32, #tpu.memory_space<vmem>>, vector<128x128xf32>,
    return
  }
  func.func @transform_0(%arg0: i32) -> (i32, i32) {
    %c0_i32 = arith.constant 0 : i32
    %c0_i32_0 = arith.constant 0 : i32
    return %arg0, %c0_i32 : i32, i32
  }
  func.func @transform_1(%arg0: i32) -> (i32, i32) {
    %c0_i32 = arith.constant 0 : i32
    %c0_i32_0 = arith.constant 0 : i32
    %c0_i32_1 = arith.constant 0 : i32
    return %c0_i32, %c0_i32_0 : i32, i32
  }
  func.func @transform_2(%arg0: i32) -> (i32, i32) {
    %c0_i32 = arith.constant 0 : i32
    %c0_i32_0 = arith.constant 0 : i32
    %c0_i32_1 = arith.constant 0 : i32
    return %c0_i32, %c0_i32_0 : i32, i32
  }
  func.func @transform_3(%arg0: i32) -> (i32, i32) {
    %c0_i32 = arith.constant 0 : i32
    %c0_i32_0 = arith.constant 0 : i32
    %c0_i32_1 = arith.constant 0 : i32
    return %c0_i32, %c0_i32_0 : i32, i32
  }
  func.func @transform_4(%arg0: i32) -> (i32, i32) {
    %c0_i32 = arith.constant 0 : i32
    %c0_i32_0 = arith.constant 0 : i32
    %c0_i32_1 = arith.constant 0 : i32
    return %c0_i32, %c0_i32_0 : i32, i32
  }
  func.func @transform_5(%arg0: i32) -> (i32, i32) {
    %c0_i32 = arith.constant 0 : i32
    %c0_i32_0 = arith.constant 0 : i32
    return %arg0, %c0_i32 : i32, i32
  }
}

</mosaic_0001>

<bundles_post_ra>
// kernel: tpu_custom_call.1
= control target key start
LH: loop header
LB: loop body
LE: loop exit
PB: predicated region body
PF: predicated region fallthrough
CT: control target
= control target key end

     0   :  { %10 = vsyncpa [#allocation3], 0  ;;  %s9003_s0 = inlined_call_operand.hbm [shape: bf16[128,896], index: 0, kind: input, shape index: {}]   ;;  %s9004_s1 = inlined_call_operand.hbm [shape: bf16[896,512], index: 1, kind: input, shape index: {}]   ;;  %s9005_s2 = inlined_call_operand.hbm [shape: f32[1,512], index: 2, kind: input, shape index: {}]   ;;  %s9006_s3 = inlined_call_operand.hbm [shape: bf16[512,128], index: 3, kind: input, shape index: {}]   ;;  %s9007_s4 = inlined_call_operand.vmem [shape: f32[1,128], index: 4, kind: input, shape index: {}]   ;;  %s9008_s5 = inlined_call_operand.hbm [shape: f32[128,128], index: 5, kind: output, shape index: {}]  }
   0x1   :  { %11 = vsyncpa [#allocation6], 0 }
   0x2   :  { %12 = vsyncpa [#allocation9], 0  ;;  %s31_s20 = sshll.u32 %s9004_s1, 4  ;;  %s32_s20 = int_to_ptr.hbm [resolvable:$true] %s31_s20 }
   0x3   :  { %13 = vsyncpa [#allocation4], 0  ;;  %s6925_s21 = smov [#allocation5]   ;;  %s18_s25 = sshll.u32 %s9003_s0, 4  ;;  %s19_s25 = int_to_ptr.hbm [resolvable:$true] %s18_s25 }
   0x4   :  { %s33_s22 = sshll.u32 %s6925_s21, 4  ;;  %s6926_s26 = smov 256   ;;  %s34_s22 = int_to_ptr.vmem [resolvable:$true] %s33_s22 }
   0x5   :  { %s6927_s27 = smov 16   ;;  %s6928_s28 = smov [#allocation2]  }
   0x6   :  { %39 = dma.hbm_to_vmem [thread:$0]  %s32_s20, 28672, %s34_s22, [#allocation6], %s6926_s26, %s6926_s26, %s6927_s27  }
   0x7   :  { %s20_s29 = sshll.u32 %s6928_s28, 4  ;;  %s6929_s30 = smov 448   ;;  %s21_s29 = int_to_ptr.vmem [resolvable:$true] %s20_s29 }
   0x8   :  { %s6930_s6 = smov 28   ;;  %s45_s8 = sshll.u32 %s9005_s2, 4  ;;  %s46_s8 = int_to_ptr.hbm [resolvable:$true] %s45_s8 }
   0x9   :  { %26 = dma.hbm_to_vmem [thread:$0]  %s19_s25, 7168, %s21_s29, [#allocation3], %s6929_s30, %s6929_s30, %s6930_s6  }
   0xa   :  { %s6931_s9 = smov [#allocation7]   ;;  %s55_s12 = sshll.u32 %s9006_s3, 4  ;;  %s56_s12 = int_to_ptr.hbm [resolvable:$true] %s55_s12 }
   0xb   :  { %s47_s10 = sshll.u32 %s6931_s9, 4  ;;  %s6932_s13 = smov [#allocation8]   ;;  %s48_s10 = int_to_ptr.vmem [resolvable:$true] %s47_s10 }
   0xc   :  { %50 = dma.hbm_to_vmem [thread:$0]  %s46_s8, 64, %s48_s10, [#allocation6]  }
   0xd   :  { %s57_s14 = sshll.u32 %s6932_s13, 4  ;;  %s6933_s15 = smov 64   ;;  %s58_s14 = int_to_ptr.vmem [resolvable:$true] %s57_s14 }
   0xe   :  { %s6934_s16 = smov 4  }
   0xf   :  { %63 = dma.hbm_to_vmem [thread:$0]  %s56_s12, 4096, %s58_s14, [#allocation9], %s6933_s15, %s6933_s15, %s6934_s16  }
  0x10   :  { %6917 = dma.done.wait [#allocation3], 7168  }
  0x11   :  { %6918 = vsyncadd [#allocation3], 4294960128 }
  0x12   :  { %6919 = dma.done.wait [#allocation6], 28736  }
  0x13   :  { %6920 = vsyncadd [#allocation6], 4294938560 }
  0x14   :  { %6921 = dma.done.wait [#allocation9], 4096  }
  0x15   :  { %6922 = vsyncadd [#allocation9], 4294963200  ;;  %v5239_v0 = vld [vmem:[#allocation5 + $0xe0] sm:$0xf]  ;;  %v6299_v1 = vld [vmem:[#allocation5 + $0xec] sm:$0xf0] }
  0x16   :  { %v5367_v2 = vld [vmem:[#allocation5 + $0x1e0] sm:$0xf]  ;;  %v5240_v3 = vor.u32 %v6299_v1, %v5239_v0  ;;  %v6331_v4 = vld [vmem:[#allocation5 + $0x1ec] sm:$0xf0]  ;;  %s4886_s20 = sshll.u32 %s9008_s5, 4  ;;  %s6936_s21 = smov 128   ;;  %s4887_s20 = int_to_ptr.hbm [resolvable:$true] %s4886_s20 }
  0x17   :  { %v5495_v5 = vld [vmem:[#allocation5 + $0x2e0] sm:$0xf]  ;;  %v6363_v6 = vld [vmem:[#allocation5 + $0x2ec] sm:$0xf0]  ;;  %v5368_v7 = vor.u32 %v6331_v4, %v5367_v2  ;;  %s6937_s22 = smov 8  }
  0x18   :  { %v5496_v8 = vor.u32 %v6363_v6, %v5495_v5  ;;  %v5623_v9 = vld [vmem:[#allocation5 + $0x3e0] sm:$0xf]  ;;  %v6395_v10 = vld [vmem:[#allocation5 + $0x3ec] sm:$0xf0]  ;;  %1788 = vmatpush.bf16.msra.mxu0 %v5240_v3 }
  0x19   :  { %v5223_v11 = vld [vmem:[#allocation5 + $0xc0] sm:$0xf]  ;;  %v5624_v12 = vor.u32 %v6395_v10, %v5623_v9  ;;  %v6295_v13 = vld [vmem:[#allocation5 + $0xcc] sm:$0xf0]  ;;  %1837 = vmatpush.bf16.msra.mxu1 %v5368_v7 }
  0x1a   :  { %v5351_v14 = vld [vmem:[#allocation5 + $0x1c0] sm:$0xf]  ;;  %v6327_v15 = vld [vmem:[#allocation5 + $0x1cc] sm:$0xf0]  ;;  %1886 = vmatpush.bf16.msra.mxu2 %v5496_v8  ;;  %v5224_v16 = vor.u32 %v6295_v13, %v5223_v11 }
  0x1b   :  { %v5352_v17 = vor.u32 %v6327_v15, %v5351_v14  ;;  %v5479_v18 = vld [vmem:[#allocation5 + $0x2c0] sm:$0xf]  ;;  %v6359_v19 = vld [vmem:[#allocation5 + $0x2cc] sm:$0xf0]  ;;  %1935 = vmatpush.bf16.msra.mxu3 %v5624_v12 }
  0x1c   :  { %v5607_v20 = vld [vmem:[#allocation5 + $0x3c0] sm:$0xf]  ;;  %v5480_v21 = vor.u32 %v6359_v19, %v5479_v18  ;;  %v6391_v22 = vld [vmem:[#allocation5 + $0x3cc] sm:$0xf0]  ;;  %1789 = vmatpush.bf16.msra.mxu0 %v5224_v16 }
  0x1d   :  { %v5207_v23 = vld [vmem:[#allocation5 + $0xa0] sm:$0xf]  ;;  %v6291_v24 = vld [vmem:[#allocation5 + $0xac] sm:$0xf0]  ;;  %v5608_v25 = vor.u32 %v6391_v22, %v5607_v20  ;;  %1838 = vmatpush.bf16.msra.mxu1 %v5352_v17 }
  0x1e   :  { %v5335_v26 = vld [vmem:[#allocation5 + $0x1a0] sm:$0xf]  ;;  %v6323_v27 = vld [vmem:[#allocation5 + $0x1ac] sm:$0xf0]  ;;  %v5208_v29 = vor.u32 %v6291_v24, %v5207_v23  ;;  %1887 = vmatpush.bf16.msra.mxu2 %v5480_v21 }
  0x1f   :  { %v5463_v28 = vld [vmem:[#allocation5 + $0x2a0] sm:$0xf]  ;;  %v6355_v30 = vld [vmem:[#allocation5 + $0x2ac] sm:$0xf0]  ;;  %v5336_v33 = vor.u32 %v6323_v27, %v5335_v26  ;;  %1936 = vmatpush.bf16.msra.mxu3 %v5608_v25 }
  0x20   :  { %v5591_v31 = vld [vmem:[#allocation5 + $0x3a0] sm:$0xf]  ;;  %v6387_v32 = vld [vmem:[#allocation5 + $0x3ac] sm:$0xf0]  ;;  %v5464_v34 = vor.u32 %v6355_v30, %v5463_v28  ;;  %1790 = vmatpush.bf16.msra.mxu0 %v5208_v29  ;;  %v6216_v29 = vld [vmem:[#allocation2 + $0x18] sm:$0xf0] }
  0x21   :  { %v5191_v35 = vld [vmem:[#allocation5 + $0x80] sm:$0xf]  ;;  %v6287_v36 = vld [vmem:[#allocation5 + $0x8c] sm:$0xf0]  ;;  %v5592_v38 = vor.u32 %v6387_v32, %v5591_v31  ;;  %1839 = vmatpush.bf16.msra.mxu1 %v5336_v33  ;;  %v6213_v30 = vld [vmem:[#allocation2 + $0x4] sm:$0xf] }
  0x22   :  { %v5319_v37 = vld [vmem:[#allocation5 + $0x180] sm:$0xf]  ;;  %v6319_v39 = vld [vmem:[#allocation5 + $0x18c] sm:$0xf0]  ;;  %v5192_v44 = vor.u32 %v6287_v36, %v5191_v35  ;;  %1888 = vmatpush.bf16.msra.mxu2 %v5464_v34  ;;  %v4911_v35 = vld [vmem:[#allocation2 + $0x8] sm:$0xf] }
  0x23   :  { %v5447_v40 = vld [vmem:[#allocation5 + $0x280] sm:$0xf]  ;;  %v6351_v41 = vld [vmem:[#allocation5 + $0x28c] sm:$0xf0]  ;;  %v5320_v45 = vor.u32 %v6319_v39, %v5319_v37  ;;  %1937 = vmatpush.bf16.msra.mxu3 %v5592_v38  ;;  %v6297_v36 = vld [vmem:[#allocation5 + $0xe4] sm:$0xf] }
  0x24   :  { %v5575_v42 = vld [vmem:[#allocation5 + $0x380] sm:$0xf]  ;;  %v6383_v43 = vld [vmem:[#allocation5 + $0x38c] sm:$0xf0]  ;;  %v5448_v46 = vor.u32 %v6351_v41, %v5447_v40  ;;  %1791 = vmatpush.bf16.msra.mxu0 %v5192_v44  ;;  %v5241_v37 = vld [vmem:[#allocation5 + $0xf0] sm:$0xf0] }
  0x25   :  { %v5175_v47 = vld [vmem:[#allocation5 + $0x60] sm:$0xf]  ;;  %v6283_v48 = vld [vmem:[#allocation5 + $0x6c] sm:$0xf0]  ;;  %v5576_v50 = vor.u32 %v6383_v43, %v5575_v42  ;;  %1840 = vmatpush.bf16.msra.mxu1 %v5320_v45  ;;  %v6217_v40 = vld [vmem:[#allocation2 + $0x20] sm:$0xf0] }
  0x26   :  { %v5303_v49 = vld [vmem:[#allocation5 + $0x160] sm:$0xf]  ;;  %v6315_v51 = vld [vmem:[#allocation5 + $0x16c] sm:$0xf0]  ;;  %v5176_v56 = vor.u32 %v6283_v48, %v5175_v47  ;;  %1889 = vmatpush.bf16.msra.mxu2 %v5448_v46  ;;  %v6214_v41 = vld [vmem:[#allocation2 + $0xc] sm:$0xf] }
  0x27   :  { %v5431_v52 = vld [vmem:[#allocation5 + $0x260] sm:$0xf]  ;;  %v6347_v53 = vld [vmem:[#allocation5 + $0x26c] sm:$0xf0]  ;;  %v5304_v57 = vor.u32 %v6315_v51, %v5303_v49  ;;  %1938 = vmatpush.bf16.msra.mxu3 %v5576_v50  ;;  %v4913_v42 = vld [vmem:[#allocation2 + $0x24] sm:$0xf0]  ;;  %v5244_v49 = vor.u32 %v6297_v36, %v5241_v37 }
  0x28   :  { %v5559_v54 = vld [vmem:[#allocation5 + $0x360] sm:$0xf]  ;;  %v6379_v55 = vld [vmem:[#allocation5 + $0x36c] sm:$0xf0]  ;;  %v5432_v58 = vor.u32 %v6347_v53, %v5431_v52  ;;  %1792 = vmatpush.bf16.msra.mxu0 %v5176_v56  ;;  %v5225_v56 = vld [vmem:[#allocation5 + $0xd0] sm:$0xf0] }
  0x29   :  { %v5159_v59 = vld [vmem:[#allocation5 + $0x40] sm:$0xf]  ;;  %v6279_v60 = vld [vmem:[#allocation5 + $0x4c] sm:$0xf0]  ;;  %v5560_v62 = vor.u32 %v6379_v55, %v5559_v54  ;;  %1841 = vmatpush.bf16.msra.mxu1 %v5304_v57  ;;  %v6984_v54 = vor.u32 %v6217_v40, %v4911_v35  ;;  %v6293_v55 = vld [vmem:[#allocation5 + $0xc4] sm:$0xf]  ;;  %v6986_v57 = vor.u32 %v6214_v41, %v4913_v42 }
  0x2a   :  { %v5287_v61 = vld [vmem:[#allocation5 + $0x140] sm:$0xf]  ;;  %v6311_v63 = vld [vmem:[#allocation5 + $0x14c] sm:$0xf0]  ;;  %v5160_v4 = vor.u32 %v6279_v60, %v5159_v59  ;;  %1890 = vmatpush.bf16.msra.mxu2 %v5432_v58  ;;  %v6230_v41 = vld [vmem:[#allocation2 + $0x88] sm:$0xf0] }
  0x2b   :  { %v5415_v0 = vld [vmem:[#allocation5 + $0x240] sm:$0xf]  ;;  %v6343_v1 = vld [vmem:[#allocation5 + $0x24c] sm:$0xf0]  ;;  %v5288_v5 = vor.u32 %v6311_v63, %v5287_v61  ;;  %1939 = vmatpush.bf16.msra.mxu3 %v5560_v62  ;;  %9127 = vst [vmem:[#allocation17_spill] sm:$0xff] %v6984_v54  ;;  %v5228_v63 = vor.u32 %v6293_v55, %v5225_v56 }
  0x2c   :  { %v5543_v2 = vld [vmem:[#allocation5 + $0x340] sm:$0xf]  ;;  %v6375_v3 = vld [vmem:[#allocation5 + $0x34c] sm:$0xf0]  ;;  %v5416_v6 = vor.u32 %v6343_v1, %v5415_v0  ;;  %1793 = vmatpush.bf16.msra.mxu0 %v5160_v4  ;;  %9128 = vst [vmem:[#allocation18_spill] sm:$0xff] %v6986_v57 }
  0x2d   :  { %v5143_v7 = vld [vmem:[#allocation5 + $0x20] sm:$0xf]  ;;  %v6275_v8 = vld [vmem:[#allocation5 + $0x2c] sm:$0xf0]  ;;  %v5544_v10 = vor.u32 %v6375_v3, %v5543_v2  ;;  %1842 = vmatpush.bf16.msra.mxu1 %v5288_v5  ;;  %v6227_v42 = vld [vmem:[#allocation2 + $0x74] sm:$0xf] }
  0x2e   :  { %v5271_v9 = vld [vmem:[#allocation5 + $0x120] sm:$0xf]  ;;  %v6307_v11 = vld [vmem:[#allocation5 + $0x12c] sm:$0xf0]  ;;  %v5144_v17 = vor.u32 %v6275_v8, %v5143_v7  ;;  %1891 = vmatpush.bf16.msra.mxu2 %v5416_v6 }
  0x2f   :  { %v5399_v12 = vld [vmem:[#allocation5 + $0x220] sm:$0xf]  ;;  %v6339_v13 = vld [vmem:[#allocation5 + $0x22c] sm:$0xf0]  ;;  %v5272_v21 = vor.u32 %v6307_v11, %v5271_v9  ;;  %1940 = vmatpush.bf16.msra.mxu3 %v5544_v10  ;;  %v6289_v9 = vld [vmem:[#allocation5 + $0xa4] sm:$0xf] }
  0x30   :  { %v5527_v14 = vld [vmem:[#allocation5 + $0x320] sm:$0xf]  ;;  %v6371_v15 = vld [vmem:[#allocation5 + $0x32c] sm:$0xf0]  ;;  %v5400_v22 = vor.u32 %v6339_v13, %v5399_v12  ;;  %1794 = vmatpush.bf16.msra.mxu0 %v5144_v17  ;;  %v5209_v10 = vld [vmem:[#allocation5 + $0xb0] sm:$0xf0] }
  0x31   :  { %v5127_v16 = vld [vmem:[#allocation5] sm:$0xf]  ;;  %v6271_v18 = vld [vmem:[#allocation5 + $0xc] sm:$0xf0]  ;;  %v5528_v26 = vor.u32 %v6371_v15, %v5527_v14  ;;  %1843 = vmatpush.bf16.msra.mxu1 %v5272_v21  ;;  %v5212_v11 = vor.u32 %v6289_v9, %v5209_v10  ;;  %v6223_v17 = vld [vmem:[#allocation2 + $0x50] sm:$0xf0] }
  0x32   :  { %v5255_v19 = vld [vmem:[#allocation5 + $0x100] sm:$0xf]  ;;  %v6303_v20 = vld [vmem:[#allocation5 + $0x10c] sm:$0xf0]  ;;  %v5128_v34 = vor.u32 %v6271_v18, %v5127_v16  ;;  %1892 = vmatpush.bf16.msra.mxu2 %v5400_v22  ;;  %v4931_v16 = vld [vmem:[#allocation2 + $0x38] sm:$0xf] }
  0x33   :  { %v5383_v23 = vld [vmem:[#allocation5 + $0x200] sm:$0xf]  ;;  %v6335_v24 = vld [vmem:[#allocation5 + $0x20c] sm:$0xf0]  ;;  %v5256_v38 = vor.u32 %v6303_v20, %v5255_v19  ;;  %1941 = vmatpush.bf16.msra.mxu3 %v5528_v26  ;;  %v6220_v18 = vld [vmem:[#allocation2 + $0x3c] sm:$0xf] }
  0x34   :  { %v5511_v25 = vld [vmem:[#allocation5 + $0x300] sm:$0xf]  ;;  %v6367_v27 = vld [vmem:[#allocation5 + $0x30c] sm:$0xf0]  ;;  %v5384_v39 = vor.u32 %v6335_v24, %v5383_v23  ;;  %1795 = vmatpush.bf16.msra.mxu0 %v5128_v34  ;;  %v4933_v19 = vld [vmem:[#allocation2 + $0x54] sm:$0xf0]  ;;  %v6992_v24 = vor.u32 %v6223_v17, %v4931_v16 }
  0x35   :  { %v4903_v28 = vld [vmem:[#allocation2] sm:$0xf]  ;;  %v6491_v33 = vld [vmem:[#allocation5 + $0x6ec] sm:$0xf0]  ;;  %v5512_v43 = vor.u32 %v6367_v27, %v5511_v25  ;;  %1844 = vmatpush.bf16.msra.mxu1 %v5256_v38  ;;  %v6224_v21 = vld [vmem:[#allocation2 + $0x58] sm:$0xf0]  ;;  %v6994_v25 = vor.u32 %v6220_v18, %v4933_v19 }
  0x36   :  { %v4905_v31 = vld [vmem:[#allocation2 + $0x1c] sm:$0xf0]  ;;  %v6427_v46 = vld [vmem:[#allocation5 + $0x4ec] sm:$0xf0]  ;;  %v6980_v48 = vor.u32 %v6216_v29, %v4903_v28  ;;  %1893 = vmatpush.bf16.msra.mxu2 %v5384_v39  ;;  %v6221_v22 = vld [vmem:[#allocation2 + $0x44] sm:$0xf] }
  0x37   :  { %v6007_v32 = vld [vmem:[#allocation5 + $0x6e0] sm:$0xf]  ;;  %v6459_v50 = vld [vmem:[#allocation5 + $0x5ec] sm:$0xf0]  ;;  %v6982_v53 = vor.u32 %v6213_v30, %v4905_v31  ;;  %1942 = vmatpush.bf16.msra.mxu3 %v5512_v43  ;;  %9129 = vst [vmem:[#allocation19_spill] sm:$0xff] %v6992_v24 }
  0x38   :  { %v6008_v44 = vor.u32 %v6491_v33, %v6007_v32  ;;  %v5751_v45 = vld [vmem:[#allocation5 + $0x4e0] sm:$0xf]  ;;  %9125 = vst [vmem:[#allocation15_spill] sm:$0xff] %v6980_v48  ;;  %v6487_v52 = vld [vmem:[#allocation5 + $0x6cc] sm:$0xf0]  ;;  %1796 = vmatmul.bf16.vlgmr.msra.gmra.mxu0 %v6980_v48 }
  0x39   :  { %v5879_v47 = vld [vmem:[#allocation5 + $0x5e0] sm:$0xf]  ;;  %9126 = vst [vmem:[#allocation16_spill] sm:$0xff] %v6982_v53  ;;  %v5752_v58 = vor.u32 %v6427_v46, %v5751_v45  ;;  %v6423_v62 = vld [vmem:[#allocation5 + $0x4cc] sm:$0xf0]  ;;  %1845 = vmatmul.bf16.vlgmr.msra.gmra.mxu1 %v6982_v53  ;;  %1894 = vmatmul.bf16.vlgmr.msra.gmra.mxu2 %v6984_v54 }
  0x3a   :  { %v5991_v51 = vld [vmem:[#allocation5 + $0x6c0] sm:$0xf]  ;;  %2082 = vmatpush.bf16.msrb.mxu2 %v6008_v44  ;;  %v5880_v59 = vor.u32 %v6459_v50, %v5879_v47  ;;  %v6455_v1 = vld [vmem:[#allocation5 + $0x5cc] sm:$0xf0]  ;;  %1943 = vmatmul.bf16.vlgmr.msra.gmra.mxu3 %v6986_v57  ;;  %9130 = vst [vmem:[#allocation20_spill] sm:$0xff] %v6994_v25 }
  0x3b   :  { %v5992_v60 = vor.u32 %v6487_v52, %v5991_v51  ;;  %v5735_v61 = vld [vmem:[#allocation5 + $0x4c0] sm:$0xf]  ;;  %2131 = vmatpush.bf16.msrb.mxu3 %v5244_v49  ;;  %1984 = vmatpush.bf16.msrb.mxu0 %v5752_v58  ;;  %v6483_v4 = vld [vmem:[#allocation5 + $0x6ac] sm:$0xf0]  ;;  %v6285_v33 = vld [vmem:[#allocation5 + $0x84] sm:$0xf] }
  0x3c   :  { %v5863_v0 = vld [vmem:[#allocation5 + $0x5c0] sm:$0xf]  ;;  %v5736_v2 = vor.u32 %v6423_v62, %v5735_v61  ;;  %2033 = vmatpush.bf16.msrb.mxu1 %v5880_v59  ;;  %v6419_v8 = vld [vmem:[#allocation5 + $0x4ac] sm:$0xf0]  ;;  %v5193_v34 = vld [vmem:[#allocation5 + $0x90] sm:$0xf0] }
  0x3d   :  { %v5975_v3 = vld [vmem:[#allocation5 + $0x6a0] sm:$0xf]  ;;  %v5864_v6 = vor.u32 %v6455_v1, %v5863_v0  ;;  %v6451_v13 = vld [vmem:[#allocation5 + $0x5ac] sm:$0xf0]  ;;  %v5196_v36 = vor.u32 %v6285_v33, %v5193_v34  ;;  %v4967_v44 = vld [vmem:[#allocation2 + $0x78] sm:$0xf] }
  0x3e   :  { %v5719_v5 = vld [vmem:[#allocation5 + $0x4a0] sm:$0xf]  ;;  %2083 = vmatpush.bf16.msrb.mxu2 %v5992_v60  ;;  %v5976_v7 = vor.u32 %v6483_v4, %v5975_v3  ;;  %v6479_v29 = vld [vmem:[#allocation5 + $0x68c] sm:$0xf0]  ;;  %v6231_v45 = vld [vmem:[#allocation2 + $0x90] sm:$0xf0] }
  0x3f   :  { %2132 = vmatpush.bf16.msrb.mxu3 %v5228_v63  ;;  %v5847_v12 = vld [vmem:[#allocation5 + $0x5a0] sm:$0xf]  ;;  %1985 = vmatpush.bf16.msrb.mxu0 %v5736_v2  ;;  %v5720_v14 = vor.u32 %v6419_v8, %v5719_v5  ;;  %v6415_v32 = vld [vmem:[#allocation5 + $0x48c] sm:$0xf0]  ;;  %v6228_v46 = vld [vmem:[#allocation2 + $0x7c] sm:$0xf]  ;;  %v7008_v51 = vor.u32 %v6231_v45, %v4967_v44 }
  0x40   :  { %2034 = vmatpush.bf16.msrb.mxu1 %v5864_v6  ;;  %v5848_v15 = vor.u32 %v6451_v13, %v5847_v12  ;;  %v4939_v20 = vld [vmem:[#allocation2 + $0x40] sm:$0xf]  ;;  %v6447_v38 = vld [vmem:[#allocation5 + $0x58c] sm:$0xf0]  ;;  %v4969_v47 = vld [vmem:[#allocation2 + $0x94] sm:$0xf0] }
  0x41   :  { %v4941_v23 = vld [vmem:[#allocation2 + $0x5c] sm:$0xf0]  ;;  %v6996_v26 = vor.u32 %v6224_v21, %v4939_v20  ;;  %v4959_v40 = vld [vmem:[#allocation2 + $0x70] sm:$0xf]  ;;  %9134 = vst [vmem:[#allocation24_spill] sm:$0xff] %v7008_v51  ;;  %v7010_v52 = vor.u32 %v6228_v46, %v4969_v47 }
  0x42   :  { %2084 = vmatpush.bf16.msrb.mxu2 %v5976_v7  ;;  %v6998_v27 = vor.u32 %v6221_v22, %v4941_v23  ;;  %v5959_v28 = vld [vmem:[#allocation5 + $0x680] sm:$0xf]  ;;  %v4961_v43 = vld [vmem:[#allocation2 + $0x8c] sm:$0xf0]  ;;  %v7004_v49 = vor.u32 %v6230_v41, %v4959_v40  ;;  %v6281_v61 = vld [vmem:[#allocation5 + $0x64] sm:$0xf] }
  0x43   :  { %2133 = vmatpush.bf16.msrb.mxu3 %v5212_v11  ;;  %1986 = vmatpush.bf16.msrb.mxu0 %v5720_v14  ;;  %v5703_v30 = vld [vmem:[#allocation5 + $0x480] sm:$0xf]  ;;  %v5960_v31 = vor.u32 %v6479_v29, %v5959_v28  ;;  %v7006_v50 = vor.u32 %v6227_v42, %v4961_v43  ;;  %9135 = vst [vmem:[#allocation25_spill] sm:$0xff] %v7010_v52  ;;  %v6475_v56 = vld [vmem:[#allocation5 + $0x66c] sm:$0xf0] }
  0x44   :  { %2035 = vmatpush.bf16.msrb.mxu1 %v5848_v15  ;;  %9131 = vst [vmem:[#allocation21_spill] sm:$0xff] %v6998_v27  ;;  %v5704_v35 = vor.u32 %v6415_v32, %v5703_v30  ;;  %v5831_v37 = vld [vmem:[#allocation5 + $0x580] sm:$0xf]  ;;  %v6411_v60 = vld [vmem:[#allocation5 + $0x46c] sm:$0xf0] }
  0x45   :  { %v5832_v39 = vor.u32 %v6447_v38, %v5831_v37  ;;  %9132 = vst [vmem:[#allocation22_spill] sm:$0xff] %v7004_v49  ;;  %v5943_v55 = vld [vmem:[#allocation5 + $0x660] sm:$0xf]  ;;  %v5177_v62 = vld [vmem:[#allocation5 + $0x70] sm:$0xf0] }
  0x46   :  { %2085 = vmatpush.bf16.msrb.mxu2 %v5960_v31  ;;  %9133 = vst [vmem:[#allocation23_spill] sm:$0xff] %v7006_v50  ;;  %v5687_v58 = vld [vmem:[#allocation5 + $0x460] sm:$0xf]  ;;  %v5944_v59 = vor.u32 %v6475_v56, %v5943_v55  ;;  %v5180_v0 = vor.u32 %v6281_v61, %v5177_v62  ;;  %v6443_v2 = vld [vmem:[#allocation5 + $0x56c] sm:$0xf0] }
  0x47   :  { %1987 = vmatpush.bf16.msrb.mxu0 %v5704_v35  ;;  %2134 = vmatpush.bf16.msrb.mxu3 %v5196_v36  ;;  %v5688_v63 = vor.u32 %v6411_v60, %v5687_v58  ;;  %v5815_v1 = vld [vmem:[#allocation5 + $0x560] sm:$0xf]  ;;  %v4987_v4 = vld [vmem:[#allocation2 + $0xa8] sm:$0xf]  ;;  %v6237_v5 = vld [vmem:[#allocation2 + $0xc0] sm:$0xf0] }
  0x48   :  { %1801 = vmatmul.bf16.gmra.mxu0 %v6992_v24  ;;  %2036 = vmatpush.bf16.msrb.mxu1 %v5832_v39  ;;  %v5816_v3 = vor.u32 %v6443_v2, %v5815_v1  ;;  %v6234_v6 = vld [vmem:[#allocation2 + $0xac] sm:$0xf]  ;;  %v4989_v7 = vld [vmem:[#allocation2 + $0xc4] sm:$0xf0]  ;;  %v4995_v8 = vld [vmem:[#allocation2 + $0xb0] sm:$0xf]  ;;  %v7016_v12 = vor.u32 %v6237_v5, %v4987_v4 }
  0x49   :  { %1850 = vmatmul.bf16.gmra.mxu1 %v6994_v25  ;;  %1899 = vmatmul.bf16.gmra.mxu2 %v6996_v26  ;;  %v6238_v9 = vld [vmem:[#allocation2 + $0xc8] sm:$0xf0]  ;;  %v6235_v10 = vld [vmem:[#allocation2 + $0xb4] sm:$0xf]  ;;  %v4997_v11 = vld [vmem:[#allocation2 + $0xcc] sm:$0xf0]  ;;  %v7018_v13 = vor.u32 %v6234_v6, %v4989_v7 }
  0x4a   :  { %1948 = vmatmul.bf16.gmra.mxu3 %v6998_v27  ;;  %2086 = vmatpush.bf16.msrb.mxu2 %v5944_v59  ;;  %9136 = vst [vmem:[#allocation26_spill] sm:$0xff] %v7016_v12  ;;  %v7020_v14 = vor.u32 %v6238_v9, %v4995_v8  ;;  %v7022_v15 = vor.u32 %v6235_v10, %v4997_v11  ;;  %v5927_v16 = vld [vmem:[#allocation5 + $0x640] sm:$0xf]  ;;  %v6471_v17 = vld [vmem:[#allocation5 + $0x64c] sm:$0xf0] }
  0x4b   :  { %1988 = vmatpush.bf16.msrb.mxu0 %v5688_v63  ;;  %2135 = vmatpush.bf16.msrb.mxu3 %v5180_v0  ;;  %9137 = vst [vmem:[#allocation27_spill] sm:$0xff] %v7018_v13  ;;  %v5671_v18 = vld [vmem:[#allocation5 + $0x440] sm:$0xf]  ;;  %v5928_v19 = vor.u32 %v6471_v17, %v5927_v16  ;;  %v6407_v20 = vld [vmem:[#allocation5 + $0x44c] sm:$0xf0] }
  0x4c   :  { %2037 = vmatpush.bf16.msrb.mxu1 %v5816_v3  ;;  %v6277_v21 = vld [vmem:[#allocation5 + $0x44] sm:$0xf]  ;;  %v5161_v22 = vld [vmem:[#allocation5 + $0x50] sm:$0xf0]  ;;  %v5672_v23 = vor.u32 %v6407_v20, %v5671_v18  ;;  %v5799_v29 = vld [vmem:[#allocation5 + $0x540] sm:$0xf] }
  0x4d   :  { %v5164_v28 = vor.u32 %v6277_v21, %v5161_v22  ;;  %v6439_v30 = vld [vmem:[#allocation5 + $0x54c] sm:$0xf0]  ;;  %v5015_v32 = vld [vmem:[#allocation2 + $0xe0] sm:$0xf]  ;;  %v6244_v33 = vld [vmem:[#allocation2 + $0xf8] sm:$0xf0] }
  0x4e   :  { %2087 = vmatpush.bf16.msrb.mxu2 %v5928_v19  ;;  %v5800_v31 = vor.u32 %v6439_v30, %v5799_v29  ;;  %v6241_v34 = vld [vmem:[#allocation2 + $0xe4] sm:$0xf]  ;;  %v5017_v35 = vld [vmem:[#allocation2 + $0xfc] sm:$0xf0]  ;;  %v5023_v36 = vld [vmem:[#allocation2 + $0xe8] sm:$0xf]  ;;  %v7028_v40 = vor.u32 %v6244_v33, %v5015_v32 }
  0x4f   :  { %1989 = vmatpush.bf16.msrb.mxu0 %v5672_v23  ;;  %2136 = vmatpush.bf16.msrb.mxu3 %v5164_v28  ;;  %v6245_v37 = vld [vmem:[#allocation2 + $0x100] sm:$0xf0]  ;;  %v6242_v38 = vld [vmem:[#allocation2 + $0xec] sm:$0xf]  ;;  %v5025_v39 = vld [vmem:[#allocation2 + $0x104] sm:$0xf0]  ;;  %v7030_v41 = vor.u32 %v6241_v34, %v5017_v35 }
  0x50   :  { %2038 = vmatpush.bf16.msrb.mxu1 %v5800_v31  ;;  %9138 = vst [vmem:[#allocation28_spill] sm:$0xff] %v7028_v40  ;;  %v7032_v42 = vor.u32 %v6245_v37, %v5023_v36  ;;  %v7034_v43 = vor.u32 %v6242_v38, %v5025_v39  ;;  %v5911_v44 = vld [vmem:[#allocation5 + $0x620] sm:$0xf]  ;;  %v6467_v45 = vld [vmem:[#allocation5 + $0x62c] sm:$0xf0] }
  0x51   :  { %9139 = vst [vmem:[#allocation29_spill] sm:$0xff] %v7030_v41  ;;  %v5655_v46 = vld [vmem:[#allocation5 + $0x420] sm:$0xf]  ;;  %v5912_v47 = vor.u32 %v6467_v45, %v5911_v44  ;;  %v6403_v55 = vld [vmem:[#allocation5 + $0x42c] sm:$0xf0] }
  0x52   :  { %v6273_v56 = vld [vmem:[#allocation5 + $0x24] sm:$0xf]  ;;  %v5145_v58 = vld [vmem:[#allocation5 + $0x30] sm:$0xf0]  ;;  %v5656_v59 = vor.u32 %v6403_v55, %v5655_v46  ;;  %v5783_v61 = vld [vmem:[#allocation5 + $0x520] sm:$0xf] }
  0x53   :  { %v5148_v60 = vor.u32 %v6273_v56, %v5145_v58  ;;  %v6435_v62 = vld [vmem:[#allocation5 + $0x52c] sm:$0xf0]  ;;  %2088 = vmatpush.bf16.msrb.mxu2 %v5912_v47  ;;  %v5043_v0 = vld [vmem:[#allocation2 + $0x118] sm:$0xf]  ;;  %v6251_v1 = vld [vmem:[#allocation2 + $0x130] sm:$0xf0] }
  0x54   :  { %v5784_v63 = vor.u32 %v6435_v62, %v5783_v61  ;;  %1990 = vmatpush.bf16.msrb.mxu0 %v5656_v59  ;;  %v6248_v2 = vld [vmem:[#allocation2 + $0x11c] sm:$0xf]  ;;  %v5045_v3 = vld [vmem:[#allocation2 + $0x134] sm:$0xf0]  ;;  %v5051_v4 = vld [vmem:[#allocation2 + $0x120] sm:$0xf]  ;;  %v7040_v8 = vor.u32 %v6251_v1, %v5043_v0 }
  0x55   :  { %2137 = vmatpush.bf16.msrb.mxu3 %v5148_v60  ;;  %v6252_v5 = vld [vmem:[#allocation2 + $0x138] sm:$0xf0]  ;;  %v6249_v6 = vld [vmem:[#allocation2 + $0x124] sm:$0xf]  ;;  %v5053_v7 = vld [vmem:[#allocation2 + $0x13c] sm:$0xf0]  ;;  %v7042_v9 = vor.u32 %v6248_v2, %v5045_v3 }
  0x56   :  { %2039 = vmatpush.bf16.msrb.mxu1 %v5784_v63  ;;  %9140 = vst [vmem:[#allocation30_spill] sm:$0xff] %v7040_v8  ;;  %v7044_v10 = vor.u32 %v6252_v5, %v5051_v4  ;;  %v7046_v11 = vor.u32 %v6249_v6, %v5053_v7  ;;  %v5895_v16 = vld [vmem:[#allocation5 + $0x600] sm:$0xf]  ;;  %v6463_v17 = vld [vmem:[#allocation5 + $0x60c] sm:$0xf0] }
  0x57   :  { %9141 = vst [vmem:[#allocation31_spill] sm:$0xff] %v7042_v9  ;;  %v5639_v18 = vld [vmem:[#allocation5 + $0x400] sm:$0xf]  ;;  %v5896_v19 = vor.u32 %v6463_v17, %v5895_v16  ;;  %v6399_v20 = vld [vmem:[#allocation5 + $0x40c] sm:$0xf0] }
  0x58   :  { %1806 = vmatmul.bf16.gmra.mxu0 %v7004_v49  ;;  %v6269_v21 = vld [vmem:[#allocation5 + $0x4] sm:$0xf]  ;;  %v5129_v22 = vld [vmem:[#allocation5 + $0x10] sm:$0xf0]  ;;  %v5640_v23 = vor.u32 %v6399_v20, %v5639_v18  ;;  %v5767_v29 = vld [vmem:[#allocation5 + $0x500] sm:$0xf] }
  0x59   :  { %1855 = vmatmul.bf16.gmra.mxu1 %v7006_v50  ;;  %1904 = vmatmul.bf16.gmra.mxu2 %v7008_v51  ;;  %v5132_v28 = vor.u32 %v6269_v21, %v5129_v22  ;;  %v6431_v30 = vld [vmem:[#allocation5 + $0x50c] sm:$0xf0]  ;;  %v6258_v33 = vld [vmem:[#allocation2 + $0x168] sm:$0xf0]  ;;  %v6255_v34 = vld [vmem:[#allocation2 + $0x154] sm:$0xf] }
  0x5a   :  { %1953 = vmatmul.bf16.gmra.mxu3 %v7010_v52  ;;  %2089 = vmatpush.bf16.msrb.mxu2 %v5896_v19  ;;  %v5768_v31 = vor.u32 %v6431_v30, %v5767_v29  ;;  %v5071_v32 = vld [vmem:[#allocation2 + $0x150] sm:$0xf]  ;;  %v5079_v36 = vld [vmem:[#allocation2 + $0x158] sm:$0xf]  ;;  %v6259_v37 = vld [vmem:[#allocation2 + $0x170] sm:$0xf0] }
  0x5b   :  { %1991 = vmatpush.bf16.msrb.mxu0 %v5640_v23  ;;  %2138 = vmatpush.bf16.msrb.mxu3 %v5132_v28  ;;  %v5073_v35 = vld [vmem:[#allocation2 + $0x16c] sm:$0xf0]  ;;  %v6256_v38 = vld [vmem:[#allocation2 + $0x15c] sm:$0xf]  ;;  %v5081_v39 = vld [vmem:[#allocation2 + $0x174] sm:$0xf0]  ;;  %v7052_v44 = vor.u32 %v6258_v33, %v5071_v32  ;;  %v7056_v46 = vor.u32 %v6259_v37, %v5079_v36 }
  0x5c   :  { %2040 = vmatpush.bf16.msrb.mxu1 %v5768_v31  ;;  %v7054_v45 = vor.u32 %v6255_v34, %v5073_v35  ;;  %v7058_v47 = vor.u32 %v6256_v38, %v5081_v39  ;;  %v6393_v55 = vld [vmem:[#allocation5 + $0x3e4] sm:$0xf]  ;;  %v5625_v56 = vld [vmem:[#allocation5 + $0x3f0] sm:$0xf0]  ;;  %v5099_v4 = vld [vmem:[#allocation2 + $0x188] sm:$0xf] }
  0x5d   :  { %9142 = vst [vmem:[#allocation32_spill] sm:$0xff] %v7052_v44  ;;  %v6329_v58 = vld [vmem:[#allocation5 + $0x1e4] sm:$0xf]  ;;  %v5628_v59 = vor.u32 %v6393_v55, %v5625_v56  ;;  %v5369_v60 = vld [vmem:[#allocation5 + $0x1f0] sm:$0xf0] }
  0x5e   :  { %9143 = vst [vmem:[#allocation33_spill] sm:$0xff] %v7054_v45  ;;  %v6425_v61 = vld [vmem:[#allocation5 + $0x4e4] sm:$0xf]  ;;  %v5753_v62 = vld [vmem:[#allocation5 + $0x4f0] sm:$0xf0]  ;;  %v5372_v63 = vor.u32 %v6329_v58, %v5369_v60 }
  0x5f   :  { %v5756_v0 = vor.u32 %v6425_v61, %v5753_v62  ;;  %2278 = vmatpush.bf16.msra.mxu2 %v5628_v59  ;;  %v6361_v1 = vld [vmem:[#allocation5 + $0x2e4] sm:$0xf]  ;;  %v5497_v2 = vld [vmem:[#allocation5 + $0x2f0] sm:$0xf0]  ;;  %v6262_v6 = vld [vmem:[#allocation2 + $0x18c] sm:$0xf] }
  0x60   :  { %2180 = vmatpush.bf16.msra.mxu0 %v5372_v63  ;;  %v5500_v3 = vor.u32 %v6361_v1, %v5497_v2  ;;  %v6265_v5 = vld [vmem:[#allocation2 + $0x1a0] sm:$0xf0]  ;;  %v5101_v7 = vld [vmem:[#allocation2 + $0x1a4] sm:$0xf0]  ;;  %v5107_v16 = vld [vmem:[#allocation2 + $0x190] sm:$0xf] }
  0x61   :  { %2327 = vmatpush.bf16.msra.mxu3 %v5756_v0  ;;  %v6266_v17 = vld [vmem:[#allocation2 + $0x1a8] sm:$0xf0]  ;;  %v6263_v18 = vld [vmem:[#allocation2 + $0x194] sm:$0xf]  ;;  %v5109_v19 = vld [vmem:[#allocation2 + $0x1ac] sm:$0xf0]  ;;  %v7064_v20 = vor.u32 %v6265_v5, %v5099_v4  ;;  %v7066_v21 = vor.u32 %v6262_v6, %v5101_v7 }
  0x62   :  { %2229 = vmatpush.bf16.msra.mxu1 %v5500_v3  ;;  %v7068_v22 = vor.u32 %v6266_v17, %v5107_v16  ;;  %v7070_v23 = vor.u32 %v6263_v18, %v5109_v19  ;;  %v6389_v28 = vld [vmem:[#allocation5 + $0x3c4] sm:$0xf]  ;;  %v5609_v29 = vld [vmem:[#allocation5 + $0x3d0] sm:$0xf0]  ;;  %v370_v37 = vld [vmem:[#allocation7] sm:$0xf] }
  0x63   :  { %9144 = vst [vmem:[#allocation34_spill] sm:$0xff] %v7064_v20  ;;  %v6325_v30 = vld [vmem:[#allocation5 + $0x1c4] sm:$0xf]  ;;  %v5612_v31 = vor.u32 %v6389_v28, %v5609_v29  ;;  %v5353_v32 = vld [vmem:[#allocation5 + $0x1d0] sm:$0xf0]  ;;  %v7076_v55 = vperm.slane %v370_v37, 0 }
  0x64   :  { %9145 = vst [vmem:[#allocation35_spill] sm:$0xff] %v7066_v21  ;;  %v6421_v33 = vld [vmem:[#allocation5 + $0x4c4] sm:$0xf]  ;;  %v5737_v34 = vld [vmem:[#allocation5 + $0x4d0] sm:$0xf0]  ;;  %v5356_v35 = vor.u32 %v6325_v30, %v5353_v32 }
  0x65   :  { %9146 = vst [vmem:[#allocation36_spill] sm:$0xff] %v7068_v22  ;;  %v5740_v36 = vor.u32 %v6421_v33, %v5737_v34  ;;  %2279 = vmatpush.bf16.msra.mxu2 %v5612_v31  ;;  %v6357_v38 = vld [vmem:[#allocation5 + $0x2c4] sm:$0xf]  ;;  %v5481_v39 = vld [vmem:[#allocation5 + $0x2d0] sm:$0xf0] }
  0x66   :  { %9147 = vst [vmem:[#allocation37_spill] sm:$0xff] %v7070_v23  ;;  %2181 = vmatpush.bf16.msra.mxu0 %v5356_v35  ;;  %v5484_v56 = vor.u32 %v6357_v38, %v5481_v39  ;;  %v4919_v58 = vld [vmem:[#allocation2 + $0x10] sm:$0xf]  ;;  %v6218_v59 = vld [vmem:[#allocation2 + $0x28] sm:$0xf0] }
  0x67   :  { %2328 = vmatpush.bf16.msra.mxu3 %v5740_v36  ;;  %v6215_v60 = vld [vmem:[#allocation2 + $0x14] sm:$0xf]  ;;  %v4921_v61 = vld [vmem:[#allocation2 + $0x2c] sm:$0xf0]  ;;  %v4927_v62 = vld [vmem:[#allocation2 + $0x18] sm:$0xf]  ;;  %v7078_v0 = vor.u32 %v6218_v59, %v4919_v58 }
  0x68   :  { %1811 = vmatmul.bf16.gmra.mxu0 %v7016_v12  ;;  %v6219_v63 = vld [vmem:[#allocation2 + $0x30] sm:$0xf0]  ;;  %2230 = vmatpush.bf16.msra.mxu1 %v5484_v56  ;;  %v7080_v2 = vor.u32 %v6215_v60, %v4921_v61  ;;  %v6385_v7 = vld [vmem:[#allocation5 + $0x3a4] sm:$0xf]  ;;  %v4947_v60 = vld [vmem:[#allocation2 + $0x48] sm:$0xf] }
  0x69   :  { %1860 = vmatmul.bf16.gmra.mxu1 %v7018_v13  ;;  %1909 = vmatmul.bf16.gmra.mxu2 %v7020_v14  ;;  %9148 = vst [vmem:[#allocation38_spill] sm:$0xff] %v7078_v0  ;;  %v7082_v3 = vor.u32 %v6219_v63, %v4927_v62  ;;  %v5593_v16 = vld [vmem:[#allocation5 + $0x3b0] sm:$0xf0]  ;;  %v6321_v17 = vld [vmem:[#allocation5 + $0x1a4] sm:$0xf] }
  0x6a   :  { %1958 = vmatmul.bf16.gmra.mxu3 %v7022_v15  ;;  %9149 = vst [vmem:[#allocation39_spill] sm:$0xff] %v7080_v2  ;;  %v5596_v18 = vor.u32 %v6385_v7, %v5593_v16  ;;  %v5337_v19 = vld [vmem:[#allocation5 + $0x1b0] sm:$0xf0]  ;;  %v6417_v28 = vld [vmem:[#allocation5 + $0x4a4] sm:$0xf] }
  0x6b   :  { %9150 = vst [vmem:[#allocation40_spill] sm:$0xff] %v7082_v3  ;;  %v5721_v29 = vld [vmem:[#allocation5 + $0x4b0] sm:$0xf0]  ;;  %v5340_v31 = vor.u32 %v6321_v17, %v5337_v19  ;;  %v6353_v39 = vld [vmem:[#allocation5 + $0x2a4] sm:$0xf] }
  0x6c   :  { %v5724_v32 = vor.u32 %v6417_v28, %v5721_v29  ;;  %2280 = vmatpush.bf16.msra.mxu2 %v5596_v18  ;;  %v5465_v56 = vld [vmem:[#allocation5 + $0x2b0] sm:$0xf0]  ;;  %v6225_v61 = vld [vmem:[#allocation2 + $0x60] sm:$0xf0]  ;;  %v6222_v62 = vld [vmem:[#allocation2 + $0x4c] sm:$0xf] }
  0x6d   :  { %2182 = vmatpush.bf16.msra.mxu0 %v5340_v31  ;;  %v5468_v59 = vor.u32 %v6353_v39, %v5465_v56  ;;  %v4949_v63 = vld [vmem:[#allocation2 + $0x64] sm:$0xf0]  ;;  %v5705_v39 = vld [vmem:[#allocation5 + $0x490] sm:$0xf0] }
  0x6e   :  { %2329 = vmatpush.bf16.msra.mxu3 %v5724_v32  ;;  %v7094_v18 = vor.u32 %v6222_v62, %v4949_v63  ;;  %v6381_v32 = vld [vmem:[#allocation5 + $0x384] sm:$0xf] }
  0x6f   :  { %2231 = vmatpush.bf16.msra.mxu1 %v5468_v59 }
  0x70   :  { %9152 = vst [vmem:[#allocation42_spill] sm:$0xff] %v7094_v18 }
  0x78   :  { %1816 = vmatmul.bf16.gmra.mxu0 %v7028_v40 }
  0x79   :  { %1865 = vmatmul.bf16.gmra.mxu1 %v7030_v41  ;;  %1914 = vmatmul.bf16.gmra.mxu2 %v7032_v42 }
  0x7a   :  { %1963 = vmatmul.bf16.gmra.mxu3 %v7034_v43 }
  0x88   :  { %1821 = vmatmul.bf16.gmra.mxu0 %v7040_v8 }
  0x89   :  { %1870 = vmatmul.bf16.gmra.mxu1 %v7042_v9  ;;  %1919 = vmatmul.bf16.gmra.mxu2 %v7044_v10 }
  0x8a   :  { %1968 = vmatmul.bf16.gmra.mxu3 %v7046_v11 }
  0x98   :  { %1826 = vmatmul.bf16.gmra.mxu0 %v7052_v44 }
  0x99   :  { %1875 = vmatmul.bf16.gmra.mxu1 %v7054_v45  ;;  %1924 = vmatmul.bf16.gmra.mxu2 %v7056_v46 }
  0x9a   :  { %1973 = vmatmul.bf16.gmra.mxu3 %v7058_v47 }
  0xa8   :  { %1831 = vmatmul.bf16.gmra.mxu0 %v7064_v20 }
  0xa9   :  { %1880 = vmatmul.bf16.gmra.mxu1 %v7066_v21  ;;  %1929 = vmatmul.bf16.gmra.mxu2 %v7068_v22  ;;  %v5123_v22 = vld [vmem:[#allocation2 + $0x1a0] sm:$0xf]  ;;  %v6268_v21 = vld [vmem:[#allocation2 + $0x1b8] sm:$0xf0] }
  0xaa   :  { %1978 = vmatmul.bf16.gmra.mxu3 %v7070_v23  ;;  %v6257_v23 = vld [vmem:[#allocation2 + $0x164] sm:$0xf] }
  0xb5   :  { %v1797_v1 = vpop.f32.mrf.mxu0 }
  0xb6   :  { %v1798_v4 = vadd.f32 %v1797_v1, %v7076_v55  ;;  %v1846_v5 = vpop.f32.mrf.mxu1  ;;  %v4955_v1 = vld [vmem:[#allocation2 + $0x50] sm:$0xf] }
  0xb8   :  { %v1847_v6 = vadd.f32 %v1846_v5, %v1798_v4  ;;  %1992 = vmatmul.bf16.vlgmr.msrb.gmra.mxu0 %v7078_v0  ;;  %v6226_v4 = vld [vmem:[#allocation2 + $0x68] sm:$0xf0] }
  0xb9   :  { %2041 = vmatmul.bf16.vlgmr.msrb.gmra.mxu1 %v7080_v2  ;;  %2090 = vmatmul.bf16.vlgmr.msrb.gmra.mxu2 %v7082_v3  ;;  %v7096_v19 = vor.u32 %v6226_v4, %v4955_v1  ;;  %v6250_v3 = vld [vmem:[#allocation2 + $0x12c] sm:$0xf]  ;;  %v6260_v2 = vld [vmem:[#allocation2 + $0x178] sm:$0xf0] }
  0xba   :  { %2139 = vmatmul.bf16.vlgmr.msrb.gmra.mxu3 %v6980_v48  ;;  %v6253_v48 = vld [vmem:[#allocation2 + $0x140] sm:$0xf0] }
  0xbb   :  { %9153 = vst [vmem:[#allocation43_spill] sm:$0xff] %v7096_v19 }
  0xbc   :  { %v1895_v30 = vpop.f32.mrf.mxu2 }
  0xbd   :  { %v1896_v33 = vadd.f32 %v1895_v30, %v1847_v6  ;;  %v1944_v34 = vpop.f32.mrf.mxu3  ;;  %v1799_v35 = vpop.f32.mrf.mxu0  ;;  %v7092_v6 = vor.u32 %v6225_v61, %v4947_v60 }
  0xbe   :  { %v1800_v36 = vadd.f32 %v1799_v35, %v7076_v55  ;;  %v1848_v37 = vpop.f32.mrf.mxu1 }
  0xbf   :  { %v7090_v38 = vadd.f32 %v1944_v34, %v1896_v33  ;;  %9151 = vst [vmem:[#allocation41_spill] sm:$0xff] %v7092_v6  ;;  %v5577_v33 = vld [vmem:[#allocation5 + $0x390] sm:$0xf0]  ;;  %v6317_v34 = vld [vmem:[#allocation5 + $0x184] sm:$0xf] }
  0xc0   :  { %v1849_v58 = vadd.f32 %v1848_v37, %v1800_v36  ;;  %v5580_v35 = vor.u32 %v6381_v32, %v5577_v33  ;;  %v5321_v36 = vld [vmem:[#allocation5 + $0x190] sm:$0xf0]  ;;  %v6413_v37 = vld [vmem:[#allocation5 + $0x484] sm:$0xf]  ;;  %v4977_v33 = vld [vmem:[#allocation2 + $0x9c] sm:$0xf0] }
  0xc1   :  { %v5708_v59 = vor.u32 %v6413_v37, %v5705_v39  ;;  %v6229_v32 = vld [vmem:[#allocation2 + $0x84] sm:$0xf] }
  0xc2   :  { %2281 = vmatpush.bf16.msra.mxu2 %v5580_v35 }
  0xc3   :  { %2330 = vmatpush.bf16.msra.mxu3 %v5708_v59 }
  0xc4   :  { %v1897_v5 = vpop.f32.mrf.mxu2 }
  0xc5   :  { %v1898_v7 = vadd.f32 %v1897_v5, %v1849_v58  ;;  %v1946_v16 = vpop.f32.mrf.mxu3  ;;  %v1802_v17 = vpop.f32.mrf.mxu0  ;;  %v5324_v58 = vor.u32 %v6317_v34, %v5321_v36  ;;  %v6349_v5 = vld [vmem:[#allocation5 + $0x284] sm:$0xf]  ;;  %v4983_v34 = vld [vmem:[#allocation2 + $0x88] sm:$0xf] }
  0xc6   :  { %v1803_v28 = vadd.f32 %v1802_v17, %v7076_v55  ;;  %v1851_v29 = vpop.f32.mrf.mxu1 }
  0xc7   :  { %v7099_v30 = vadd.f32 %v1946_v16, %v1898_v7  ;;  %2183 = vmatpush.bf16.msra.mxu0 %v5324_v58  ;;  %v5449_v7 = vld [vmem:[#allocation5 + $0x290] sm:$0xf0]  ;;  %v7110_v58 = vor.u32 %v6229_v32, %v4977_v33 }
  0xc8   :  { %v1852_v31 = vadd.f32 %v1851_v29, %v1803_v28  ;;  %1997 = vmatmul.bf16.gmra.mxu0 %v7092_v6  ;;  %v5452_v17 = vor.u32 %v6349_v5, %v5449_v7  ;;  %v4975_v28 = vld [vmem:[#allocation2 + $0x80] sm:$0xf]  ;;  %v6232_v29 = vld [vmem:[#allocation2 + $0x98] sm:$0xf0]  ;;  %v5561_v5 = vld [vmem:[#allocation5 + $0x370] sm:$0xf0] }
  0xc9   :  { %2046 = vmatmul.bf16.gmra.mxu1 %v7094_v18  ;;  %2095 = vmatmul.bf16.gmra.mxu2 %v7096_v19  ;;  %v7108_v35 = vor.u32 %v6232_v29, %v4975_v28  ;;  %9155 = vst [vmem:[#allocation45_spill] sm:$0xff] %v7110_v58  ;;  %v6313_v7 = vld [vmem:[#allocation5 + $0x164] sm:$0xf]  ;;  %v5689_v29 = vld [vmem:[#allocation5 + $0x470] sm:$0xf0] }
  0xca   :  { %2144 = vmatmul.bf16.gmra.mxu3 %v6992_v24  ;;  %2232 = vmatpush.bf16.msra.mxu1 %v5452_v17  ;;  %v5305_v17 = vld [vmem:[#allocation5 + $0x170] sm:$0xf0]  ;;  %v6409_v28 = vld [vmem:[#allocation5 + $0x464] sm:$0xf]  ;;  %v6236_v24 = vld [vmem:[#allocation2 + $0xbc] sm:$0xf] }
  0xcb   :  { %9154 = vst [vmem:[#allocation44_spill] sm:$0xff] %v7108_v35  ;;  %v5308_v33 = vor.u32 %v6313_v7, %v5305_v17  ;;  %v5005_v7 = vld [vmem:[#allocation2 + $0xd4] sm:$0xf0]  ;;  %v5011_v17 = vld [vmem:[#allocation2 + $0xc0] sm:$0xf] }
  0xcc   :  { %v1900_v56 = vpop.f32.mrf.mxu2  ;;  %v6246_v19 = vld [vmem:[#allocation2 + $0x108] sm:$0xf0]  ;;  %v6243_v18 = vld [vmem:[#allocation2 + $0xf4] sm:$0xf] }
  0xcd   :  { %v1901_v60 = vadd.f32 %v1900_v56, %v1852_v31  ;;  %v1949_v61 = vpop.f32.mrf.mxu3  ;;  %v1804_v62 = vpop.f32.mrf.mxu0  ;;  %v6233_v31 = vld [vmem:[#allocation2 + $0xa0] sm:$0xf0]  ;;  %2184 = vmatpush.bf16.msra.mxu0 %v5308_v33 }
  0xce   :  { %v1805_v63 = vadd.f32 %v1804_v62, %v7076_v55  ;;  %v1853_v1 = vpop.f32.mrf.mxu1  ;;  %v7112_v59 = vor.u32 %v6233_v31, %v4983_v34  ;;  %v5692_v34 = vor.u32 %v6409_v28, %v5689_v29 }
  0xcf   :  { %v7106_v4 = vadd.f32 %v1949_v61, %v1901_v60 }
  0xd0   :  { %v1854_v16 = vadd.f32 %v1853_v1, %v1805_v63  ;;  %9156 = vst [vmem:[#allocation46_spill] sm:$0xff] %v7112_v59  ;;  %v6377_v1 = vld [vmem:[#allocation5 + $0x364] sm:$0xf]  ;;  %2331 = vmatpush.bf16.msra.mxu3 %v5692_v34  ;;  %v7126_v34 = vor.u32 %v6236_v24, %v5005_v7 }
  0xd1   :  { %v6309_v24 = vld [vmem:[#allocation5 + $0x144] sm:$0xf] }
  0xd2   :  { %9157 = vst [vmem:[#allocation47_spill] sm:$0xff] %v7126_v34 }
  0xd4   :  { %v1902_v36 = vpop.f32.mrf.mxu2 }
  0xd5   :  { %v1903_v37 = vadd.f32 %v1902_v36, %v1854_v16  ;;  %v1951_v39 = vpop.f32.mrf.mxu3  ;;  %v1807_v56 = vpop.f32.mrf.mxu0  ;;  %v5564_v16 = vor.u32 %v6377_v1, %v5561_v5 }
  0xd6   :  { %v1808_v60 = vadd.f32 %v1807_v56, %v7076_v55  ;;  %v1856_v61 = vpop.f32.mrf.mxu1 }
  0xd7   :  { %v7115_v62 = vadd.f32 %v1951_v39, %v1903_v37  ;;  %2282 = vmatpush.bf16.msra.mxu2 %v5564_v16 }
  0xd8   :  { %v1857_v63 = vadd.f32 %v1856_v61, %v1808_v60  ;;  %2002 = vmatmul.bf16.gmra.mxu0 %v7108_v35  ;;  %v6345_v61 = vld [vmem:[#allocation5 + $0x264] sm:$0xf] }
  0xd9   :  { %2051 = vmatmul.bf16.gmra.mxu1 %v7110_v58  ;;  %2100 = vmatmul.bf16.gmra.mxu2 %v7112_v59  ;;  %v5003_v59 = vld [vmem:[#allocation2 + $0xb8] sm:$0xf]  ;;  %v6239_v58 = vld [vmem:[#allocation2 + $0xd0] sm:$0xf0] }
  0xda   :  { %2149 = vmatmul.bf16.gmra.mxu3 %v7004_v49  ;;  %v5433_v49 = vld [vmem:[#allocation5 + $0x270] sm:$0xf0]  ;;  %v7124_v16 = vor.u32 %v6239_v58, %v5003_v59  ;;  %v6373_v58 = vld [vmem:[#allocation5 + $0x344] sm:$0xf] }
  0xdb   :  { %v5436_v5 = vor.u32 %v6345_v61, %v5433_v49  ;;  %v5545_v59 = vld [vmem:[#allocation5 + $0x350] sm:$0xf0] }
  0xdc   :  { %v1905_v32 = vpop.f32.mrf.mxu2  ;;  %v5289_v61 = vld [vmem:[#allocation5 + $0x150] sm:$0xf0] }
  0xdd   :  { %v1906_v31 = vadd.f32 %v1905_v32, %v1857_v63  ;;  %v1954_v36 = vpop.f32.mrf.mxu3  ;;  %v1809_v37 = vpop.f32.mrf.mxu0  ;;  %v6240_v63 = vld [vmem:[#allocation2 + $0xd8] sm:$0xf0]  ;;  %2233 = vmatpush.bf16.msra.mxu1 %v5436_v5  ;;  %v5673_v5 = vld [vmem:[#allocation5 + $0x450] sm:$0xf0] }
  0xde   :  { %v1810_v39 = vadd.f32 %v1809_v37, %v7076_v55  ;;  %v1858_v56 = vpop.f32.mrf.mxu1 }
  0xdf   :  { %v7122_v60 = vadd.f32 %v1954_v36, %v1906_v31  ;;  %v7128_v31 = vor.u32 %v6240_v63, %v5011_v17  ;;  %v5292_v17 = vor.u32 %v6309_v24, %v5289_v61  ;;  %v5033_v24 = vld [vmem:[#allocation2 + $0x10c] sm:$0xf0]  ;;  %v5039_v61 = vld [vmem:[#allocation2 + $0xf8] sm:$0xf] }
  0xe0   :  { %v1859_v1 = vadd.f32 %v1858_v56, %v1810_v39  ;;  %v5548_v56 = vor.u32 %v6373_v58, %v5545_v59 }
  0xe1   :  { %9158 = vst [vmem:[#allocation48_spill] sm:$0xff] %v7128_v31  ;;  %2185 = vmatpush.bf16.msra.mxu0 %v5292_v17 }
  0xe2   :  { %2283 = vmatpush.bf16.msra.mxu2 %v5548_v56 }
  0xe4   :  { %v1907_v28 = vpop.f32.mrf.mxu2 }
  0xe5   :  { %v1908_v29 = vadd.f32 %v1907_v28, %v1859_v1  ;;  %v1956_v32 = vpop.f32.mrf.mxu3  ;;  %v1812_v33 = vpop.f32.mrf.mxu0  ;;  %v6405_v1 = vld [vmem:[#allocation5 + $0x444] sm:$0xf] }
  0xe6   :  { %v1813_v36 = vadd.f32 %v1812_v33, %v7076_v55  ;;  %v1861_v49 = vpop.f32.mrf.mxu1  ;;  %v5676_v63 = vor.u32 %v6405_v1, %v5673_v5 }
  0xe7   :  { %v7131_v37 = vadd.f32 %v1956_v32, %v1908_v29 }
  0xe8   :  { %v1862_v39 = vadd.f32 %v1861_v49, %v1813_v36  ;;  %2007 = vmatmul.bf16.gmra.mxu0 %v7124_v16  ;;  %2332 = vmatpush.bf16.msra.mxu3 %v5676_v63  ;;  %v7142_v63 = vor.u32 %v6243_v18, %v5033_v24  ;;  %v6305_v18 = vld [vmem:[#allocation5 + $0x124] sm:$0xf] }
  0xe9   :  { %2056 = vmatmul.bf16.gmra.mxu1 %v7126_v34  ;;  %2105 = vmatmul.bf16.gmra.mxu2 %v7128_v31  ;;  %v5417_v31 = vld [vmem:[#allocation5 + $0x250] sm:$0xf0]  ;;  %v5031_v34 = vld [vmem:[#allocation2 + $0xf0] sm:$0xf] }
  0xea   :  { %2154 = vmatmul.bf16.gmra.mxu3 %v7016_v12  ;;  %v6341_v12 = vld [vmem:[#allocation5 + $0x244] sm:$0xf]  ;;  %v7140_v56 = vor.u32 %v6246_v19, %v5031_v34  ;;  %9159 = vst [vmem:[#allocation49_spill] sm:$0xff] %v7142_v63  ;;  %v5529_v34 = vld [vmem:[#allocation5 + $0x330] sm:$0xf0] }
  0xeb   :  { %v5420_v59 = vor.u32 %v6341_v12, %v5417_v31  ;;  %v6369_v19 = vld [vmem:[#allocation5 + $0x324] sm:$0xf] }
  0xec   :  { %v1910_v7 = vpop.f32.mrf.mxu2 }
  0xed   :  { %v1911_v28 = vadd.f32 %v1910_v7, %v1862_v39  ;;  %v1959_v29 = vpop.f32.mrf.mxu3  ;;  %v1814_v32 = vpop.f32.mrf.mxu0  ;;  %v6247_v39 = vld [vmem:[#allocation2 + $0x110] sm:$0xf0]  ;;  %2234 = vmatpush.bf16.msra.mxu1 %v5420_v59 }
  0xee   :  { %v1815_v33 = vadd.f32 %v1814_v32, %v7076_v55  ;;  %v1863_v36 = vpop.f32.mrf.mxu1  ;;  %v5657_v59 = vld [vmem:[#allocation5 + $0x430] sm:$0xf0] }
  0xef   :  { %v7138_v49 = vadd.f32 %v1959_v29, %v1911_v28  ;;  %v7144_v28 = vor.u32 %v6247_v39, %v5039_v61 }
  0xf0   :  { %v1864_v58 = vadd.f32 %v1863_v36, %v1815_v33  ;;  %v5532_v33 = vor.u32 %v6369_v19, %v5529_v34  ;;  %v5273_v36 = vld [vmem:[#allocation5 + $0x130] sm:$0xf0] }
  0xf1   :  { %9160 = vst [vmem:[#allocation50_spill] sm:$0xff] %v7144_v28  ;;  %v5276_v61 = vor.u32 %v6305_v18, %v5273_v36  ;;  %v5061_v18 = vld [vmem:[#allocation2 + $0x144] sm:$0xf0]  ;;  %v5067_v36 = vld [vmem:[#allocation2 + $0x130] sm:$0xf] }
  0xf2   :  { %2284 = vmatpush.bf16.msra.mxu2 %v5532_v33 }
  0xf3   :  { %2186 = vmatpush.bf16.msra.mxu0 %v5276_v61 }
  0xf4   :  { %v1912_v1 = vpop.f32.mrf.mxu2 }
  0xf5   :  { %v1913_v5 = vadd.f32 %v1912_v1, %v1864_v58  ;;  %v1961_v7 = vpop.f32.mrf.mxu3  ;;  %v1817_v17 = vpop.f32.mrf.mxu0  ;;  %v6401_v58 = vld [vmem:[#allocation5 + $0x424] sm:$0xf] }
  0xf6   :  { %v1818_v29 = vadd.f32 %v1817_v17, %v7076_v55  ;;  %v1866_v12 = vpop.f32.mrf.mxu1  ;;  %v5660_v39 = vor.u32 %v6401_v58, %v5657_v59 }
  0xf7   :  { %v7147_v31 = vadd.f32 %v1961_v7, %v1913_v5 }
  0xf8   :  { %v1867_v32 = vadd.f32 %v1866_v12, %v1818_v29  ;;  %2012 = vmatmul.bf16.gmra.mxu0 %v7140_v56  ;;  %2333 = vmatpush.bf16.msra.mxu3 %v5660_v39  ;;  %v7158_v39 = vor.u32 %v6250_v3, %v5061_v18  ;;  %v6301_v3 = vld [vmem:[#allocation5 + $0x104] sm:$0xf] }
  0xf9   :  { %2061 = vmatmul.bf16.gmra.mxu1 %v7142_v63  ;;  %2110 = vmatmul.bf16.gmra.mxu2 %v7144_v28  ;;  %v5401_v28 = vld [vmem:[#allocation5 + $0x230] sm:$0xf0]  ;;  %v5059_v63 = vld [vmem:[#allocation2 + $0x128] sm:$0xf] }
  0xfa   :  { %2159 = vmatmul.bf16.gmra.mxu3 %v7028_v40  ;;  %v6337_v40 = vld [vmem:[#allocation5 + $0x224] sm:$0xf]  ;;  %v7156_v33 = vor.u32 %v6253_v48, %v5059_v63  ;;  %9161 = vst [vmem:[#allocation51_spill] sm:$0xff] %v7158_v39  ;;  %v5513_v63 = vld [vmem:[#allocation5 + $0x310] sm:$0xf0] }
  0xfb   :  { %v5404_v34 = vor.u32 %v6337_v40, %v5401_v28  ;;  %v6365_v48 = vld [vmem:[#allocation5 + $0x304] sm:$0xf] }
  0xfc   :  { %v1915_v24 = vpop.f32.mrf.mxu2 }
  0xfd   :  { %v1916_v1 = vadd.f32 %v1915_v24, %v1867_v32  ;;  %v1964_v5 = vpop.f32.mrf.mxu3  ;;  %v1819_v7 = vpop.f32.mrf.mxu0  ;;  %v6254_v32 = vld [vmem:[#allocation2 + $0x148] sm:$0xf0]  ;;  %2235 = vmatpush.bf16.msra.mxu1 %v5404_v34  ;;  %v5641_v34 = vld [vmem:[#allocation5 + $0x410] sm:$0xf0] }
  0xfe   :  { %v1820_v17 = vadd.f32 %v1819_v7, %v7076_v55  ;;  %v1868_v29 = vpop.f32.mrf.mxu1 }
  0xff   :  { %v7154_v12 = vadd.f32 %v1964_v5, %v1916_v1  ;;  %v7160_v1 = vor.u32 %v6254_v32, %v5067_v36 }
 0x100   :  { %v1869_v19 = vadd.f32 %v1868_v29, %v1820_v17  ;;  %v5516_v17 = vor.u32 %v6365_v48, %v5513_v63  ;;  %v5257_v29 = vld [vmem:[#allocation5 + $0x110] sm:$0xf0] }
 0x101   :  { %9162 = vst [vmem:[#allocation52_spill] sm:$0xff] %v7160_v1  ;;  %v5260_v36 = vor.u32 %v6301_v3, %v5257_v29  ;;  %v5089_v3 = vld [vmem:[#allocation2 + $0x17c] sm:$0xf0]  ;;  %v5095_v29 = vld [vmem:[#allocation2 + $0x168] sm:$0xf] }
 0x102   :  { %2285 = vmatpush.bf16.msra.mxu2 %v5516_v17 }
 0x103   :  { %2187 = vmatpush.bf16.msra.mxu0 %v5260_v36 }
 0x104   :  { %v1917_v58 = vpop.f32.mrf.mxu2 }
 0x105   :  { %v1918_v59 = vadd.f32 %v1917_v58, %v1869_v19  ;;  %v1966_v24 = vpop.f32.mrf.mxu3  ;;  %v1822_v61 = vpop.f32.mrf.mxu0  ;;  %v6397_v19 = vld [vmem:[#allocation5 + $0x404] sm:$0xf] }
 0x106   :  { %v1823_v5 = vadd.f32 %v1822_v61, %v7076_v55  ;;  %v1871_v40 = vpop.f32.mrf.mxu1  ;;  %v5644_v32 = vor.u32 %v6397_v19, %v5641_v34 }
 0x107   :  { %v7163_v28 = vadd.f32 %v1966_v24, %v1918_v59 }
 0x108   :  { %v1872_v7 = vadd.f32 %v1871_v40, %v1823_v5  ;;  %2017 = vmatmul.bf16.gmra.mxu0 %v7156_v33  ;;  %2334 = vmatpush.bf16.msra.mxu3 %v5644_v32  ;;  %v7174_v32 = vor.u32 %v6257_v23, %v5089_v3  ;;  %v6457_v23 = vld [vmem:[#allocation5 + $0x5e4] sm:$0xf] }
 0x109   :  { %2066 = vmatmul.bf16.gmra.mxu1 %v7158_v39  ;;  %2115 = vmatmul.bf16.gmra.mxu2 %v7160_v1  ;;  %v5385_v1 = vld [vmem:[#allocation5 + $0x210] sm:$0xf0]  ;;  %v5087_v39 = vld [vmem:[#allocation2 + $0x160] sm:$0xf] }
 0x10a   :  { %2164 = vmatmul.bf16.gmra.mxu3 %v7040_v8  ;;  %v6333_v8 = vld [vmem:[#allocation5 + $0x204] sm:$0xf]  ;;  %v7172_v17 = vor.u32 %v6260_v2, %v5087_v39  ;;  %9164 = vst [vmem:[#allocation54_spill] sm:$0xff] %v7174_v32  ;;  %v5247_v2 = vld [vmem:[#allocation5 + $0xe8] sm:$0xf] }
 0x10b   :  { %v5388_v63 = vor.u32 %v6333_v8, %v5385_v1  ;;  %v6300_v39 = vld [vmem:[#allocation5 + $0xf4] sm:$0xf0] }
 0x10c   :  { %v1920_v18 = vpop.f32.mrf.mxu2  ;;  %9163 = vst [vmem:[#allocation53_spill] sm:$0xff] %v7172_v17 }
 0x10d   :  { %v1921_v58 = vadd.f32 %v1920_v18, %v1872_v7  ;;  %v1969_v59 = vpop.f32.mrf.mxu3  ;;  %v1824_v24 = vpop.f32.mrf.mxu0  ;;  %v6261_v7 = vld [vmem:[#allocation2 + $0x180] sm:$0xf0]  ;;  %2236 = vmatpush.bf16.msra.mxu1 %v5388_v63  ;;  %v6332_v63 = vld [vmem:[#allocation5 + $0x1f4] sm:$0xf0] }
 0x10e   :  { %v1825_v61 = vadd.f32 %v1824_v24, %v7076_v55  ;;  %v1873_v5 = vpop.f32.mrf.mxu1 }
 0x10f   :  { %v7170_v40 = vadd.f32 %v1969_v59, %v1921_v58  ;;  %v7176_v58 = vor.u32 %v6261_v7, %v5095_v29 }
 0x110   :  { %v1874_v48 = vadd.f32 %v1873_v5, %v1825_v61  ;;  %v5248_v61 = vor.u32 %v6300_v39, %v5247_v2  ;;  %v5881_v5 = vld [vmem:[#allocation5 + $0x5f0] sm:$0xf0]  ;;  %v6264_v39 = vld [vmem:[#allocation2 + $0x19c] sm:$0xf] }
 0x111   :  { %9165 = vst [vmem:[#allocation55_spill] sm:$0xff] %v7176_v58  ;;  %v5884_v29 = vor.u32 %v6457_v23, %v5881_v5  ;;  %v6267_v2 = vld [vmem:[#allocation2 + $0x1b0] sm:$0xf0] }
 0x112   :  { %2474 = vmatpush.bf16.msrb.mxu2 %v5248_v61 }
 0x113   :  { %2376 = vmatpush.bf16.msrb.mxu0 %v5884_v29 }
 0x114   :  { %v1922_v19 = vpop.f32.mrf.mxu2 }
 0x115   :  { %v1923_v34 = vadd.f32 %v1922_v19, %v1874_v48  ;;  %v1971_v18 = vpop.f32.mrf.mxu3  ;;  %v1827_v36 = vpop.f32.mrf.mxu0  ;;  %v5375_v48 = vld [vmem:[#allocation5 + $0x1e8] sm:$0xf] }
 0x116   :  { %v1828_v59 = vadd.f32 %v1827_v36, %v7076_v55  ;;  %v1876_v8 = vpop.f32.mrf.mxu1  ;;  %v5376_v7 = vor.u32 %v6332_v63, %v5375_v48 }
 0x117   :  { %v7179_v1 = vadd.f32 %v1971_v18, %v1923_v34 }
 0x118   :  { %v1877_v24 = vadd.f32 %v1876_v8, %v1828_v59  ;;  %2022 = vmatmul.bf16.gmra.mxu0 %v7172_v17  ;;  %2523 = vmatpush.bf16.msrb.mxu3 %v5376_v7 }
 0x119   :  { %2071 = vmatmul.bf16.gmra.mxu1 %v7174_v32  ;;  %2120 = vmatmul.bf16.gmra.mxu2 %v7176_v58  ;;  %v5115_v58 = vld [vmem:[#allocation2 + $0x198] sm:$0xf] }
 0x11a   :  { %2169 = vmatmul.bf16.gmra.mxu3 %v7052_v44  ;;  %v5117_v32 = vld [vmem:[#allocation2 + $0x1b4] sm:$0xf0]  ;;  %v7188_v5 = vor.u32 %v6267_v2, %v5115_v58 }
 0x11b   :  { %v7190_v63 = vor.u32 %v6264_v39, %v5117_v32 }
 0x11c   :  { %v1925_v3 = vpop.f32.mrf.mxu2  ;;  %9166 = vst [vmem:[#allocation56_spill] sm:$0xff] %v7188_v5 }
 0x11d   :  { %v1926_v19 = vadd.f32 %v1925_v3, %v1877_v24  ;;  %v1974_v34 = vpop.f32.mrf.mxu3  ;;  %v1829_v18 = vpop.f32.mrf.mxu0  ;;  %9167 = vst [vmem:[#allocation57_spill] sm:$0xff] %v7190_v63  ;;  %v7192_v3 = vor.u32 %v6268_v21, %v5123_v22 }
 0x11e   :  { %v1830_v36 = vadd.f32 %v1829_v18, %v7076_v55  ;;  %v1878_v59 = vpop.f32.mrf.mxu1 }
 0x11f   :  { %v7186_v8 = vadd.f32 %v1974_v34, %v1926_v19  ;;  %9168 = vst [vmem:[#allocation58_spill] sm:$0xff] %v7192_v3 }
 0x120   :  { %v1879_v44 = vadd.f32 %v1878_v59, %v1830_v36 }
 0x124   :  { %v1927_v23 = vpop.f32.mrf.mxu2 }
 0x125   :  { %v1928_v24 = vadd.f32 %v1927_v23, %v1879_v44  ;;  %v1976_v48 = vpop.f32.mrf.mxu3  ;;  %v1832_v61 = vpop.f32.mrf.mxu0 }
 0x126   :  { %v1833_v29 = vadd.f32 %v1832_v61, %v7076_v55  ;;  %v1881_v7 = vpop.f32.mrf.mxu1  ;;  %v6009_v61 = vld [vmem:[#allocation5 + $0x6f0] sm:$0xf0] }
 0x127   :  { %v7195_v19 = vadd.f32 %v1976_v48, %v1928_v24  ;;  %v6489_v48 = vld [vmem:[#allocation5 + $0x6e4] sm:$0xf] }
 0x128   :  { %v1882_v34 = vadd.f32 %v1881_v7, %v1833_v29  ;;  %2027 = vmatmul.bf16.gmra.mxu0 %v7188_v5 }
 0x129   :  { %2076 = vmatmul.bf16.gmra.mxu1 %v7190_v63  ;;  %2125 = vmatmul.bf16.gmra.mxu2 %v7192_v3 }
 0x12a   :  { %2174 = vmatmul.bf16.gmra.mxu3 %v7064_v20  ;;  %v6012_v20 = vor.u32 %v6489_v48, %v6009_v61 }
 0x12c   :  { %v1930_v44 = vpop.f32.mrf.mxu2  ;;  %2425 = vmatpush.bf16.msrb.mxu1 %v6012_v20  ;;  %v5359_v20 = vld [vmem:[#allocation5 + $0x1c8] sm:$0xf] }
 0x12d   :  { %v1931_v58 = vadd.f32 %v1930_v44, %v1882_v34  ;;  %v1979_v32 = vpop.f32.mrf.mxu3  ;;  %v1834_v18 = vpop.f32.mrf.mxu0 }
 0x12e   :  { %v1835_v21 = vadd.f32 %v1834_v18, %v7076_v55  ;;  %v1883_v22 = vpop.f32.mrf.mxu1  ;;  %v6296_v18 = vld [vmem:[#allocation5 + $0xd4] sm:$0xf0] }
 0x12f   :  { %v7202_v36 = vadd.f32 %v1979_v32, %v1931_v58 }
 0x130   :  { %v1884_v59 = vadd.f32 %v1883_v22, %v1835_v21  ;;  %v6453_v21 = vld [vmem:[#allocation5 + $0x5c4] sm:$0xf] }
 0x134   :  { %v1932_v2 = vpop.f32.mrf.mxu2 }
 0x135   :  { %v1933_v39 = vadd.f32 %v1932_v2, %v1884_v59  ;;  %v1981_v23 = vpop.f32.mrf.mxu3  ;;  %v1993_v24 = vpop.f32.mrf.mxu0 }
 0x136   :  { %v1994_v29 = vadd.f32 %v1993_v24, %v7090_v38  ;;  %v2042_v7 = vpop.f32.mrf.mxu1  ;;  %v5231_v38 = vld [vmem:[#allocation5 + $0xc8] sm:$0xf] }
 0x137   :  { %v7205_v3 = vadd.f32 %v1981_v23, %v1933_v39  ;;  %v5232_v2 = vor.u32 %v6296_v18, %v5231_v38  ;;  %v5865_v39 = vld [vmem:[#allocation5 + $0x5d0] sm:$0xf0]  ;;  %v6328_v23 = vld [vmem:[#allocation5 + $0x1d4] sm:$0xf0]  ;;  %v5343_v38 = vld [vmem:[#allocation5 + $0x1a8] sm:$0xf] }
 0x138   :  { %v2043_v34 = vadd.f32 %v2042_v7, %v1994_v29  ;;  %2188 = vmatmul.bf16.vlgmr.msra.gmra.mxu0 %v6982_v53  ;;  %v5868_v48 = vor.u32 %v6453_v21, %v5865_v39  ;;  %v5360_v61 = vor.u32 %v6328_v23, %v5359_v20  ;;  %v6485_v7 = vld [vmem:[#allocation5 + $0x6c4] sm:$0xf]  ;;  %v6324_v18 = vld [vmem:[#allocation5 + $0x1b4] sm:$0xf0] }
 0x139   :  { %2237 = vmatmul.bf16.vlgmr.msra.gmra.mxu1 %v6984_v54  ;;  %2286 = vmatmul.bf16.vlgmr.msra.gmra.mxu2 %v6986_v57  ;;  %v6292_v57 = vld [vmem:[#allocation5 + $0xb4] sm:$0xf0]  ;;  %v6449_v54 = vld [vmem:[#allocation5 + $0x5a4] sm:$0xf]  ;;  %v5344_v21 = vor.u32 %v6324_v18, %v5343_v38 }
 0x13a   :  { %2335 = vmatmul.bf16.vlgmr.msra.gmra.mxu3 %v7078_v0  ;;  %2475 = vmatpush.bf16.msrb.mxu2 %v5232_v2  ;;  %v5215_v0 = vld [vmem:[#allocation5 + $0xa8] sm:$0xf]  ;;  %v6481_v18 = vld [vmem:[#allocation5 + $0x6a4] sm:$0xf] }
 0x13b   :  { %2377 = vmatpush.bf16.msrb.mxu0 %v5868_v48  ;;  %2524 = vmatpush.bf16.msrb.mxu3 %v5360_v61 }
 0x13c   :  { %v2091_v55 = vpop.f32.mrf.mxu2 }
 0x13d   :  { %v2092_v44 = vadd.f32 %v2091_v55, %v2043_v34  ;;  %v7211_v58 = vpop.f32.mrf.mxu3  ;;  %v1995_v32 = vpop.f32.mrf.mxu0  ;;  %v5993_v34 = vld [vmem:[#allocation5 + $0x6d0] sm:$0xf0] }
 0x13e   :  { %v1996_v22 = vadd.f32 %v1995_v32, %v7099_v30  ;;  %v2044_v59 = vpop.f32.mrf.mxu1  ;;  %v5996_v55 = vor.u32 %v6485_v7, %v5993_v34  ;;  %v5216_v30 = vor.u32 %v6292_v57, %v5215_v0  ;;  %v5849_v32 = vld [vmem:[#allocation5 + $0x5b0] sm:$0xf0] }
 0x13f   :  { %v6021_v24 = vmul.f32 -1.442695, %v2092_v44  ;;  %v5852_v44 = vor.u32 %v6449_v54, %v5849_v32  ;;  %2525 = vmatpush.bf16.msrb.mxu3 %v5344_v21 }
 0x140   :  { %v2045_v29 = vadd.f32 %v2044_v59, %v1996_v22  ;;  %2426 = vmatpush.bf16.msrb.mxu1 %v5996_v55  ;;  %2476 = vmatpush.bf16.msrb.mxu2 %v5216_v30 }
 0x141   :  { %6539 = vpow2.f32 %v6021_v24  ;;  %2378 = vmatpush.bf16.msrb.mxu0 %v5852_v44  ;;  %v5977_v44 = vld [vmem:[#allocation5 + $0x6b0] sm:$0xf0] }
 0x142   :  { %v5980_v21 = vor.u32 %v6481_v18, %v5977_v44 }
 0x144   :  { %v2093_v63 = vpop.f32.mrf.mxu2  ;;  %2427 = vmatpush.bf16.msrb.mxu1 %v5980_v21 }
 0x145   :  { %v2094_v39 = vadd.f32 %v2093_v63, %v2045_v29  ;;  %v7214_v22 = vpop.f32.mrf.mxu3  ;;  %v1998_v59 = vpop.f32.mrf.mxu0 }
 0x146   :  { %v1999_v2 = vadd.f32 %v1998_v59, %v7106_v4  ;;  %v2047_v20 = vpop.f32.mrf.mxu1  ;;  %v6288_v59 = vld [vmem:[#allocation5 + $0x94] sm:$0xf0] }
 0x147   :  { %v6540_v23 = vpop.eup %6539  ;;  %v6025_v24 = vmul.f32 -1.442695, %v2094_v39  ;;  %v5199_v39 = vld [vmem:[#allocation5 + $0x88] sm:$0xf] }
 0x148   :  { %v7217_v57 = vadd.f32 1.0, %v6540_v23  ;;  %v2048_v0 = vadd.f32 %v2047_v20, %v1999_v2  ;;  %2193 = vmatmul.bf16.gmra.mxu0 %v6994_v25  ;;  %v5200_v2 = vor.u32 %v6288_v59, %v5199_v39  ;;  %v6445_v20 = vld [vmem:[#allocation5 + $0x584] sm:$0xf]  ;;  %v5833_v23 = vld [vmem:[#allocation5 + $0x590] sm:$0xf0] }
 0x149   :  { %6541 = vpow2.f32 %v6025_v24  ;;  %2242 = vmatmul.bf16.gmra.mxu1 %v6996_v26  ;;  %2291 = vmatmul.bf16.gmra.mxu2 %v6998_v27 }
 0x14a   :  { %6543 = vrcp.f32 %v7217_v57  ;;  %2340 = vmatmul.bf16.gmra.mxu3 %v7092_v6  ;;  %2477 = vmatpush.bf16.msrb.mxu2 %v5200_v2  ;;  %vm3421_vm1 = vweird.f32 %v7217_v57 }
 0x14c   :  { %v2096_v54 = vpop.f32.mrf.mxu2 }
 0x14d   :  { %v2097_v4 = vadd.f32 %v2096_v54, %v2048_v0  ;;  %v7224_v63 = vpop.f32.mrf.mxu3  ;;  %v2000_v48 = vpop.f32.mrf.mxu0  ;;  %v5836_v0 = vor.u32 %v6445_v20, %v5833_v23  ;;  %v5327_v54 = vld [vmem:[#allocation5 + $0x188] sm:$0xf] }
 0x14e   :  { %v2001_v61 = vadd.f32 %v2000_v48, %v7115_v62  ;;  %v2049_v29 = vpop.f32.mrf.mxu1 }
 0x14f   :  { %v6542_v7 = vpop.eup %6541  ;;  %v6029_v34 = vmul.f32 -1.442695, %v2097_v4  ;;  %v6320_v4 = vld [vmem:[#allocation5 + $0x194] sm:$0xf0]  ;;  %2379 = vmatpush.bf16.msrb.mxu0 %v5836_v0  ;;  %v3425_v0 = vand.u32 2147483647, %v7217_v57 }
 0x150   :  { %v7227_v55 = vpop.eup %6543  ;;  %v7229_v30 = vadd.f32 1.0, %v6542_v7  ;;  %v2050_v32 = vadd.f32 %v2049_v29, %v2001_v61  ;;  %v5328_v7 = vor.u32 %v6320_v4, %v5327_v54 }
 0x151   :  { %v3417_v38 = vmul.f32 %v7227_v55, %v7217_v57  ;;  %6545 = vpow2.f32 %v6029_v34  ;;  %vm3422_vm0 = vweird.f32 %v7227_v55  ;;  %vm3426_vm5 = vcmp.eq.f32.partialorder %v3425_v0, 8.507059e+37 }
 0x152   :  { %6547 = vrcp.f32 %v7229_v30  ;;  %2526 = vmatpush.bf16.msrb.mxu3 %v5328_v7  ;;  %v3487_v23 = vand.u32 2147483648, %v7229_v30  ;;  %v3485_v7 = vand.u32 2147483647, %v7229_v30  ;;  %vm7255_vm3 = vmor %vm3421_vm1, %vm3422_vm0  ;;  %vm3481_vm4 = vweird.f32 %v7229_v30 }
 0x153   :  { %v3418_v62 = vsub.f32 1.0, %v3417_v38 }
 0x154   :  { %v2098_v24 = vpop.f32.mrf.mxu2  ;;  %vm3486_vm7 = vcmp.eq.f32.partialorder %v3485_v7, 8.507059e+37 }
 0x155   :  { %v2099_v48 = vadd.f32 %v2098_v24, %v2050_v32  ;;  %v7234_v61 = vpop.f32.mrf.mxu3  ;;  %v2003_v29 = vpop.f32.mrf.mxu0  ;;  %v3419_v38 = vmul.f32 %v7227_v55, %v3418_v62 }
 0x156   :  { %v2004_v34 = vadd.f32 %v2003_v29, %v7122_v60  ;;  %v2052_v18 = vpop.f32.mrf.mxu1  ;;  %v3427_v60 = vand.u32 2147483648, %v7217_v57 }
 0x157   :  { %v6546_v44 = vpop.eup %6545  ;;  %v6033_v39 = vmul.f32 -1.442695, %v2099_v48  ;;  %v3420_v2 = vadd.f32 %v7227_v55, %v3419_v38 }
 0x158   :  { %v6548_v59 = vpop.eup %6547  ;;  %v7238_v21 = vadd.f32 1.0, %v6546_v44  ;;  %v2053_v20 = vadd.f32 %v2052_v18, %v2004_v34  ;;  %2198 = vmatmul.bf16.gmra.mxu0 %v7006_v50  ;;  %v3428_v18 = vor.u32 1.1754944e-38, %v3427_v60  ;;  %v3488_v60 = vor.u32 1.1754944e-38, %v3487_v23  ;;  %v6441_v34 = vld [vmem:[#allocation5 + $0x564] sm:$0xf] }
 0x159   :  { %v3477_v32 = vmul.f32 %v6548_v59, %v7229_v30  ;;  %6549 = vpow2.f32 %v6033_v39  ;;  %2247 = vmatmul.bf16.gmra.mxu1 %v7008_v51  ;;  %2296 = vmatmul.bf16.gmra.mxu2 %v7010_v52  ;;  %vm3482_vm2 = vweird.f32 %v6548_v59  ;;  %v6477_v30 = vld [vmem:[#allocation5 + $0x684] sm:$0xf]  ;;  %v5817_v23 = vld [vmem:[#allocation5 + $0x570] sm:$0xf0]  ;;  %v6316_v52 = vld [vmem:[#allocation5 + $0x174] sm:$0xf0] }
 0x15a   :  { %6551 = vrcp.f32 %v7238_v21  ;;  %2345 = vmatmul.bf16.gmra.mxu3 %v7108_v35  ;;  %vm3483_vm6 = vmor %vm3481_vm4, %vm3482_vm2  ;;  %vm3541_vm9 = vweird.f32 %v7238_v21 }
 0x15b   :  { %v3478_v62 = vsub.f32 1.0, %v3477_v32 }
 0x15c   :  { %v2101_v24 = vpop.f32.mrf.mxu2 }
 0x15d   :  { %v3479_v54 = vmul.f32 %v6548_v59, %v3478_v62  ;;  %v2102_v4 = vadd.f32 %v2101_v24, %v2053_v20  ;;  %v7252_v48 = vpop.f32.mrf.mxu3  ;;  %v2005_v29 = vpop.f32.mrf.mxu0  ;;  %v3424_v20 = vsel %vm7255_vm3, %v7227_v55, %v3420_v2  ;;  %v5183_v2 = vld [vmem:[#allocation5 + $0x68] sm:$0xf] }
 0x15e   :  { %v2006_v44 = vadd.f32 %v2005_v29, %v7131_v37  ;;  %v2054_v38 = vpop.f32.mrf.mxu1 }
 0x15f   :  { %v6550_v39 = vpop.eup %6549  ;;  %v6037_v57 = vmul.f32 -1.442695, %v2102_v4  ;;  %v3480_v32 = vadd.f32 %v6548_v59, %v3479_v54  ;;  %v5961_v4 = vld [vmem:[#allocation5 + $0x690] sm:$0xf0]  ;;  %v6284_v54 = vld [vmem:[#allocation5 + $0x74] sm:$0xf0] }
 0x160   :  { %v7264_v62 = vpop.eup %6551  ;;  %v7266_v24 = vadd.f32 1.0, %v6550_v39  ;;  %v2055_v35 = vadd.f32 %v2054_v38, %v2006_v44  ;;  %v5964_v55 = vor.u32 %v6477_v30, %v5961_v4  ;;  %v7272_v39 = vsel %vm3426_vm5, %v3428_v18, %v3424_v20  ;;  %v5311_v38 = vld [vmem:[#allocation5 + $0x168] sm:$0xf] }
 0x161   :  { %v3537_v37 = vmul.f32 %v7264_v62, %v7238_v21  ;;  %6553 = vpow2.f32 %v6037_v57  ;;  %v3484_v29 = vsel %vm3483_vm6, %v6548_v59, %v3480_v32  ;;  %9171 = vst [vmem:[#allocation59_spill] sm:$0xff] %v7272_v39  ;;  %v5184_v44 = vor.u32 %v6284_v54, %v5183_v2 }
 0x162   :  { %6555 = vrcp.f32 %v7266_v24  ;;  %v7274_v0 = vsel %vm3486_vm7, %v3488_v60, %v3484_v29  ;;  %2428 = vmatpush.bf16.msrb.mxu1 %v5964_v55  ;;  %v5820_v59 = vor.u32 %v6441_v34, %v5817_v23  ;;  %v5312_v7 = vor.u32 %v6316_v52, %v5311_v38 }
 0x163   :  { %9172 = vst [vmem:[#allocation60_spill] sm:$0xff] %v7274_v0  ;;  %v3538_v32 = vsub.f32 1.0, %v3537_v37  ;;  %2478 = vmatpush.bf16.msrb.mxu2 %v5184_v44  ;;  %v3545_v52 = vand.u32 2147483647, %v7238_v21  ;;  %vm3542_vm8 = vweird.f32 %v7264_v62  ;;  %v3547_v37 = vand.u32 2147483648, %v7238_v21 }
 0x164   :  { %v2103_v51 = vpop.f32.mrf.mxu2  ;;  %2380 = vmatpush.bf16.msrb.mxu0 %v5820_v59  ;;  %2527 = vmatpush.bf16.msrb.mxu3 %v5312_v7  ;;  %v3607_v34 = vand.u32 2147483648, %v7266_v24  ;;  %v3605_v7 = vand.u32 2147483647, %v7266_v24  ;;  %vm7300_vm11 = vmor %vm3541_vm9, %vm3542_vm8  ;;  %vm3601_vm13 = vweird.f32 %v7266_v24 }
 0x165   :  { %v2104_v30 = vadd.f32 %v2103_v51, %v2055_v35  ;;  %v7278_v4 = vpop.f32.mrf.mxu3  ;;  %v2008_v6 = vpop.f32.mrf.mxu0  ;;  %v3539_v2 = vmul.f32 %v7264_v62, %v3538_v32  ;;  %vm7304_vm12 = vcmp.eq.f32.partialorder %v3545_v52, 8.507059e+37 }
 0x166   :  { %v2009_v18 = vadd.f32 %v2008_v6, %v7138_v49  ;;  %v2057_v20 = vpop.f32.mrf.mxu1  ;;  %v3608_v52 = vor.u32 1.1754944e-38, %v3607_v34  ;;  %vm3606_vm15 = vcmp.eq.f32.partialorder %v3605_v7, 8.507059e+37 }
 0x167   :  { %v6554_v60 = vpop.eup %6553  ;;  %v6041_v29 = vmul.f32 -1.442695, %v2104_v30  ;;  %v3540_v6 = vadd.f32 %v7264_v62, %v3539_v2 }
 0x168   :  { %v6556_v54 = vpop.eup %6555  ;;  %v7282_v57 = vadd.f32 1.0, %v6554_v60  ;;  %v2058_v55 = vadd.f32 %v2057_v20, %v2009_v18  ;;  %2203 = vmatmul.bf16.gmra.mxu0 %v7018_v13 }
 0x169   :  { %6557 = vpow2.f32 %v6041_v29  ;;  %2252 = vmatmul.bf16.gmra.mxu1 %v7020_v14  ;;  %2301 = vmatmul.bf16.gmra.mxu2 %v7022_v15  ;;  %v3597_v51 = vmul.f32 %v6556_v54, %v7266_v24  ;;  %vm3602_vm10 = vweird.f32 %v6556_v54  ;;  %v3544_v29 = vsel %vm7300_vm11, %v7264_v62, %v3540_v6  ;;  %v5167_v24 = vld [vmem:[#allocation5 + $0x48] sm:$0xf]  ;;  %v6280_v6 = vld [vmem:[#allocation5 + $0x54] sm:$0xf0] }
 0x16a   :  { %6559 = vrcp.f32 %v7282_v57  ;;  %2350 = vmatmul.bf16.gmra.mxu3 %v7124_v16  ;;  %vm3603_vm14 = vmor %vm3601_vm13, %vm3602_vm10  ;;  %v5168_v34 = vor.u32 %v6280_v6, %v5167_v24  ;;  %vm3661_vm1 = vweird.f32 %v7282_v57 }
 0x16b   :  { %v3598_v35 = vsub.f32 1.0, %v3597_v51 }
 0x16c   :  { %v2106_v49 = vpop.f32.mrf.mxu2  ;;  %2479 = vmatpush.bf16.msrb.mxu2 %v5168_v34  ;;  %v3667_v34 = vand.u32 2147483648, %v7282_v57 }
 0x16d   :  { %v2107_v44 = vadd.f32 %v2106_v49, %v2058_v55  ;;  %v7296_v23 = vpop.f32.mrf.mxu3  ;;  %v2010_v38 = vpop.f32.mrf.mxu0  ;;  %v3599_v59 = vmul.f32 %v6556_v54, %v3598_v35  ;;  %v3548_v35 = vor.u32 1.1754944e-38, %v3547_v37 }
 0x16e   :  { %v2011_v32 = vadd.f32 %v2010_v38, %v7147_v31  ;;  %v2059_v30 = vpop.f32.mrf.mxu1  ;;  %v5945_v38 = vld [vmem:[#allocation5 + $0x670] sm:$0xf0] }
 0x16f   :  { %v6558_v21 = vpop.eup %6557  ;;  %v6045_v60 = vmul.f32 -1.442695, %v2107_v44  ;;  %v3600_v2 = vadd.f32 %v6556_v54, %v3599_v59  ;;  %v6473_v44 = vld [vmem:[#allocation5 + $0x664] sm:$0xf]  ;;  %v7322_v37 = vsel %vm7304_vm12, %v3548_v35, %v3544_v29 }
 0x170   :  { %v7312_v55 = vpop.eup %6559  ;;  %v7314_v31 = vadd.f32 1.0, %v6558_v21  ;;  %v2060_v51 = vadd.f32 %v2059_v30, %v2011_v32  ;;  %v5948_v62 = vor.u32 %v6473_v44, %v5945_v38  ;;  %v6437_v59 = vld [vmem:[#allocation5 + $0x544] sm:$0xf]  ;;  %9177 = vst [vmem:[#allocation61_spill] sm:$0xff] %v7322_v37  ;;  %v5801_v30 = vld [vmem:[#allocation5 + $0x550] sm:$0xf0] }
 0x171   :  { %v3657_v49 = vmul.f32 %v7312_v55, %v7282_v57  ;;  %6561 = vpow2.f32 %v6045_v60  ;;  %v3604_v18 = vsel %vm3603_vm14, %v6556_v54, %v3600_v2  ;;  %v5295_v21 = vld [vmem:[#allocation5 + $0x148] sm:$0xf]  ;;  %v6312_v60 = vld [vmem:[#allocation5 + $0x154] sm:$0xf0]  ;;  %v5804_v2 = vor.u32 %v6437_v59, %v5801_v30 }
 0x172   :  { %6563 = vrcp.f32 %v7314_v31  ;;  %v7324_v32 = vsel %vm3606_vm15, %v3608_v52, %v3604_v18  ;;  %2429 = vmatpush.bf16.msrb.mxu1 %v5948_v62  ;;  %v5296_v44 = vor.u32 %v6312_v60, %v5295_v21  ;;  %vm3662_vm0 = vweird.f32 %v7312_v55 }
 0x173   :  { %9178 = vst [vmem:[#allocation62_spill] sm:$0xff] %v7324_v32  ;;  %v3658_v38 = vsub.f32 1.0, %v3657_v49  ;;  %2381 = vmatpush.bf16.msrb.mxu0 %v5804_v2  ;;  %v3727_v30 = vand.u32 2147483648, %v7314_v31  ;;  %vm7350_vm3 = vmor %vm3661_vm1, %vm3662_vm0  ;;  %vm3721_vm5 = vweird.f32 %v7314_v31 }
 0x174   :  { %v2108_v7 = vpop.f32.mrf.mxu2  ;;  %2528 = vmatpush.bf16.msrb.mxu3 %v5296_v44  ;;  %v3725_v44 = vand.u32 2147483647, %v7314_v31 }
 0x175   :  { %v2109_v39 = vadd.f32 %v2108_v7, %v2060_v51  ;;  %v7328_v0 = vpop.f32.mrf.mxu3  ;;  %v2013_v20 = vpop.f32.mrf.mxu0  ;;  %v3659_v24 = vmul.f32 %v7312_v55, %v3658_v38 }
 0x176   :  { %v2014_v29 = vadd.f32 %v2013_v20, %v7154_v12  ;;  %v2062_v35 = vpop.f32.mrf.mxu1  ;;  %vm3726_vm7 = vcmp.eq.f32.partialorder %v3725_v44, 8.507059e+37 }
 0x177   :  { %v6562_v52 = vpop.eup %6561  ;;  %v6049_v18 = vmul.f32 -1.442695, %v2109_v39  ;;  %v3665_v39 = vand.u32 2147483647, %v7282_v57  ;;  %v3660_v51 = vadd.f32 %v7312_v55, %v3659_v24 }
 0x178   :  { %v6564_v6 = vpop.eup %6563  ;;  %v7332_v54 = vadd.f32 1.0, %v6562_v52  ;;  %v2063_v62 = vadd.f32 %v2062_v35, %v2014_v29  ;;  %2208 = vmatmul.bf16.gmra.mxu0 %v7030_v41 }
 0x179   :  { %6565 = vpow2.f32 %v6049_v18  ;;  %2257 = vmatmul.bf16.gmra.mxu1 %v7032_v42  ;;  %2306 = vmatmul.bf16.gmra.mxu2 %v7034_v43  ;;  %v3717_v12 = vmul.f32 %v6564_v6, %v7314_v31  ;;  %vm3722_vm2 = vweird.f32 %v6564_v6  ;;  %vm7354_vm4 = vcmp.eq.f32.partialorder %v3665_v39, 8.507059e+37  ;;  %v5151_v31 = vld [vmem:[#allocation5 + $0x28] sm:$0xf] }
 0x17a   :  { %6567 = vrcp.f32 %v7332_v54  ;;  %2355 = vmatmul.bf16.gmra.mxu3 %v7140_v56  ;;  %v3664_v18 = vsel %vm7350_vm3, %v7312_v55, %v3660_v51  ;;  %vm3723_vm6 = vmor %vm3721_vm5, %vm3722_vm2  ;;  %v3728_v39 = vor.u32 1.1754944e-38, %v3727_v30  ;;  %v6276_v51 = vld [vmem:[#allocation5 + $0x34] sm:$0xf0]  ;;  %vm3781_vm9 = vweird.f32 %v7332_v54 }
 0x17b   :  { %v3718_v49 = vsub.f32 1.0, %v3717_v12  ;;  %v5152_v30 = vor.u32 %v6276_v51, %v5151_v31 }
 0x17c   :  { %v2111_v59 = vpop.f32.mrf.mxu2 }
 0x17d   :  { %v2112_v21 = vadd.f32 %v2111_v59, %v2063_v62  ;;  %v7346_v60 = vpop.f32.mrf.mxu3  ;;  %v2015_v7 = vpop.f32.mrf.mxu0  ;;  %v3719_v2 = vmul.f32 %v6564_v6, %v3718_v49  ;;  %v3668_v49 = vor.u32 1.1754944e-38, %v3667_v34  ;;  %2480 = vmatpush.bf16.msrb.mxu2 %v5152_v30 }
 0x17e   :  { %v2016_v38 = vadd.f32 %v2015_v7, %v7163_v28  ;;  %v2064_v20 = vpop.f32.mrf.mxu1  ;;  %v5929_v7 = vld [vmem:[#allocation5 + $0x650] sm:$0xf0] }
 0x17f   :  { %v6566_v57 = vpop.eup %6565  ;;  %v6053_v52 = vmul.f32 -1.442695, %v2112_v21  ;;  %v3720_v24 = vadd.f32 %v6564_v6, %v3719_v2  ;;  %v6469_v21 = vld [vmem:[#allocation5 + $0x644] sm:$0xf]  ;;  %v7372_v34 = vsel %vm7354_vm4, %v3668_v49, %v3664_v18 }
 0x180   :  { %v7362_v62 = vpop.eup %6567  ;;  %v7364_v28 = vadd.f32 1.0, %v6566_v57  ;;  %v2065_v12 = vadd.f32 %v2064_v20, %v2016_v38  ;;  %v5932_v55 = vor.u32 %v6469_v21, %v5929_v7  ;;  %v6433_v2 = vld [vmem:[#allocation5 + $0x524] sm:$0xf]  ;;  %9183 = vst [vmem:[#allocation63_spill] sm:$0xff] %v7372_v34  ;;  %v5785_v20 = vld [vmem:[#allocation5 + $0x530] sm:$0xf0] }
 0x181   :  { %v3777_v59 = vmul.f32 %v7362_v62, %v7332_v54  ;;  %6569 = vpow2.f32 %v6053_v52  ;;  %v3724_v29 = vsel %vm3723_vm6, %v6564_v6, %v3720_v24  ;;  %v5279_v57 = vld [vmem:[#allocation5 + $0x128] sm:$0xf]  ;;  %v6308_v52 = vld [vmem:[#allocation5 + $0x134] sm:$0xf0]  ;;  %v5788_v24 = vor.u32 %v6433_v2, %v5785_v20  ;;  %v6461_v34 = vld [vmem:[#allocation5 + $0x604] sm:$0xf] }
 0x182   :  { %6571 = vrcp.f32 %v7364_v28  ;;  %v7374_v38 = vsel %vm3726_vm7, %v3728_v39, %v3724_v29  ;;  %2430 = vmatpush.bf16.msrb.mxu1 %v5932_v55  ;;  %v5280_v21 = vor.u32 %v6308_v52, %v5279_v57  ;;  %vm3782_vm8 = vweird.f32 %v7362_v62 }
 0x183   :  { %9184 = vst [vmem:[#allocation64_spill] sm:$0xff] %v7374_v38  ;;  %v3778_v7 = vsub.f32 1.0, %v3777_v59  ;;  %2382 = vmatpush.bf16.msrb.mxu0 %v5788_v24  ;;  %v3845_v30 = vand.u32 2147483647, %v7364_v28  ;;  %v3847_v57 = vand.u32 2147483648, %v7364_v28  ;;  %vm7400_vm11 = vmor %vm3781_vm9, %vm3782_vm8  ;;  %vm3841_vm13 = vweird.f32 %v7364_v28 }
 0x184   :  { %v2113_v44 = vpop.f32.mrf.mxu2  ;;  %2529 = vmatpush.bf16.msrb.mxu3 %v5280_v21  ;;  %v5897_v38 = vld [vmem:[#allocation5 + $0x610] sm:$0xf0] }
 0x185   :  { %v2114_v37 = vadd.f32 %v2113_v44, %v2065_v12  ;;  %v7378_v32 = vpop.f32.mrf.mxu3  ;;  %v2018_v35 = vpop.f32.mrf.mxu0  ;;  %v3779_v31 = vmul.f32 %v7362_v62, %v3778_v7  ;;  %v3787_v12 = vand.u32 2147483648, %v7332_v54  ;;  %vm7412_vm14 = vcmp.eq.f32.partialorder %v3845_v30, 8.507059e+37  ;;  %v5135_v30 = vld [vmem:[#allocation5 + $0x8] sm:$0xf] }
 0x186   :  { %v2019_v18 = vadd.f32 %v2018_v35, %v7170_v40  ;;  %v2067_v49 = vpop.f32.mrf.mxu1 }
 0x187   :  { %v6570_v39 = vpop.eup %6569  ;;  %v6057_v29 = vmul.f32 -1.442695, %v2114_v37  ;;  %v3785_v37 = vand.u32 2147483647, %v7332_v54  ;;  %v3780_v59 = vadd.f32 %v7362_v62, %v3779_v31 }
 0x188   :  { %v6572_v51 = vpop.eup %6571  ;;  %v7382_v6 = vadd.f32 1.0, %v6570_v39  ;;  %v2068_v55 = vadd.f32 %v2067_v49, %v2019_v18  ;;  %2213 = vmatmul.bf16.gmra.mxu0 %v7042_v9  ;;  %v3788_v39 = vor.u32 1.1754944e-38, %v3787_v12  ;;  %v5913_v12 = vld [vmem:[#allocation5 + $0x630] sm:$0xf0] }
 0x189   :  { %6573 = vpow2.f32 %v6057_v29  ;;  %2262 = vmatmul.bf16.gmra.mxu1 %v7044_v10  ;;  %2311 = vmatmul.bf16.gmra.mxu2 %v7046_v11  ;;  %v3837_v40 = vmul.f32 %v6572_v51, %v7364_v28  ;;  %vm3842_vm10 = vweird.f32 %v6572_v51  ;;  %vm7404_vm12 = vcmp.eq.f32.partialorder %v3785_v37, 8.507059e+37 }
 0x18a   :  { %6575 = vrcp.f32 %v7382_v6  ;;  %2360 = vmatmul.bf16.gmra.mxu3 %v7156_v33  ;;  %v3784_v54 = vsel %vm7400_vm11, %v7362_v62, %v3780_v59  ;;  %vm3843_vm15 = vmor %vm3841_vm13, %vm3842_vm10  ;;  %v3848_v28 = vor.u32 1.1754944e-38, %v3847_v57  ;;  %vm3901_vm1 = vweird.f32 %v7382_v6 }
 0x18b   :  { %v3838_v2 = vsub.f32 1.0, %v3837_v40  ;;  %v7426_v18 = vsel %vm7404_vm12, %v3788_v39, %v3784_v54 }
 0x18c   :  { %v2116_v20 = vpop.f32.mrf.mxu2  ;;  %9191 = vst [vmem:[#allocation65_spill] sm:$0xff] %v7426_v18 }
 0x18d   :  { %v2117_v52 = vadd.f32 %v2116_v20, %v2068_v55  ;;  %v7396_v44 = vpop.f32.mrf.mxu3  ;;  %v2020_v24 = vpop.f32.mrf.mxu0  ;;  %v3839_v21 = vmul.f32 %v6572_v51, %v3838_v2  ;;  %v6465_v20 = vld [vmem:[#allocation5 + $0x624] sm:$0xf] }
 0x18e   :  { %v2021_v7 = vadd.f32 %v2020_v24, %v7179_v1  ;;  %v2069_v35 = vpop.f32.mrf.mxu1  ;;  %v5916_v62 = vor.u32 %v6465_v20, %v5913_v12  ;;  %v6272_v24 = vld [vmem:[#allocation5 + $0x14] sm:$0xf0] }
 0x18f   :  { %v6574_v29 = vpop.eup %6573  ;;  %v6061_v31 = vmul.f32 -1.442695, %v2117_v52  ;;  %v3840_v55 = vadd.f32 %v6572_v51, %v3839_v21  ;;  %v6429_v21 = vld [vmem:[#allocation5 + $0x504] sm:$0xf]  ;;  %v5136_v57 = vor.u32 %v6272_v24, %v5135_v30 }
 0x190   :  { %v7416_v40 = vpop.eup %6575  ;;  %v7418_v37 = vadd.f32 1.0, %v6574_v29  ;;  %v2070_v2 = vadd.f32 %v2069_v35, %v2021_v7  ;;  %2431 = vmatpush.bf16.msrb.mxu1 %v5916_v62  ;;  %v5769_v35 = vld [vmem:[#allocation5 + $0x510] sm:$0xf0]  ;;  %v5263_v29 = vld [vmem:[#allocation5 + $0x108] sm:$0xf] }
 0x191   :  { %v3897_v52 = vmul.f32 %v7416_v40, %v7382_v6  ;;  %6577 = vpow2.f32 %v6061_v31  ;;  %v3844_v59 = vsel %vm3843_vm15, %v6572_v51, %v3840_v55  ;;  %v6304_v31 = vld [vmem:[#allocation5 + $0x114] sm:$0xf0]  ;;  %v5772_v20 = vor.u32 %v6429_v21, %v5769_v35  ;;  %2481 = vmatpush.bf16.msrb.mxu2 %v5136_v57 }
 0x192   :  { %6579 = vrcp.f32 %v7418_v37  ;;  %v7430_v7 = vsel %vm7412_vm14, %v3848_v28, %v3844_v59  ;;  %v5264_v12 = vor.u32 %v6304_v31, %v5263_v29  ;;  %v5900_v28 = vor.u32 %v6461_v34, %v5897_v38  ;;  %v6396_v51 = vld [vmem:[#allocation5 + $0x3f4] sm:$0xf0] }
 0x193   :  { %9192 = vst [vmem:[#allocation66_spill] sm:$0xff] %v7430_v7  ;;  %v3898_v49 = vsub.f32 1.0, %v3897_v52  ;;  %2383 = vmatpush.bf16.msrb.mxu0 %v5772_v20  ;;  %v3905_v34 = vand.u32 2147483647, %v7382_v6  ;;  %vm3902_vm0 = vweird.f32 %v7416_v40  ;;  %v3907_v31 = vand.u32 2147483648, %v7382_v6 }
 0x194   :  { %v2118_v55 = vpop.f32.mrf.mxu2  ;;  %2530 = vmatpush.bf16.msrb.mxu3 %v5264_v12  ;;  %2432 = vmatpush.bf16.msrb.mxu1 %v5900_v28  ;;  %vm7456_vm3 = vmor %vm3901_vm1, %vm3902_vm0  ;;  %vm3961_vm5 = vweird.f32 %v7418_v37 }
 0x195   :  { %v2119_v39 = vadd.f32 %v2118_v55, %v2070_v2  ;;  %v7434_v54 = vpop.f32.mrf.mxu3  ;;  %v2023_v1 = vpop.f32.mrf.mxu0  ;;  %v3899_v21 = vmul.f32 %v7416_v40, %v3898_v49  ;;  %v3967_v55 = vand.u32 2147483648, %v7418_v37  ;;  %vm7460_vm4 = vcmp.eq.f32.partialorder %v3905_v34, 8.507059e+37 }
 0x196   :  { %v2024_v62 = vadd.f32 %v2023_v1, %v7186_v8  ;;  %v2072_v59 = vpop.f32.mrf.mxu1  ;;  %v3965_v1 = vand.u32 2147483647, %v7418_v37 }
 0x197   :  { %v6578_v30 = vpop.eup %6577  ;;  %v6065_v24 = vmul.f32 -1.442695, %v2119_v39  ;;  %v3900_v38 = vadd.f32 %v7416_v40, %v3899_v21  ;;  %v3968_v34 = vor.u32 1.1754944e-38, %v3967_v55  ;;  %v5887_v55 = vld [vmem:[#allocation5 + $0x5e8] sm:$0xf] }
 0x198   :  { %v6580_v35 = vpop.eup %6579  ;;  %v7438_v29 = vadd.f32 1.0, %v6578_v30  ;;  %v2073_v52 = vadd.f32 %v2072_v59, %v2024_v62  ;;  %2218 = vmatmul.bf16.gmra.mxu0 %v7054_v45  ;;  %vm3966_vm7 = vcmp.eq.f32.partialorder %v3965_v1, 8.507059e+37  ;;  %v6460_v59 = vld [vmem:[#allocation5 + $0x5f4] sm:$0xf0] }
 0x199   :  { %6581 = vpow2.f32 %v6065_v24  ;;  %2267 = vmatmul.bf16.gmra.mxu1 %v7056_v46  ;;  %2316 = vmatmul.bf16.gmra.mxu2 %v7058_v47  ;;  %v3957_v8 = vmul.f32 %v6580_v35, %v7418_v37  ;;  %vm3962_vm2 = vweird.f32 %v6580_v35  ;;  %v3904_v21 = vsel %vm7456_vm3, %v7416_v40, %v3900_v38  ;;  %v5759_v40 = vld [vmem:[#allocation5 + $0x4e8] sm:$0xf]  ;;  %v6428_v38 = vld [vmem:[#allocation5 + $0x4f4] sm:$0xf0] }
 0x19a   :  { %6583 = vrcp.f32 %v7438_v29  ;;  %2365 = vmatmul.bf16.gmra.mxu3 %v7172_v17  ;;  %vm3963_vm6 = vmor %vm3961_vm5, %vm3962_vm2  ;;  %v5503_v37 = vld [vmem:[#allocation5 + $0x2e8] sm:$0xf]  ;;  %vm4021_vm9 = vweird.f32 %v7438_v29 }
 0x19b   :  { %v3958_v2 = vsub.f32 1.0, %v3957_v8 }
 0x19c   :  { %v2121_v57 = vpop.f32.mrf.mxu2 }
 0x19d   :  { %v2122_v20 = vadd.f32 %v2121_v57, %v2073_v52  ;;  %v7452_v12 = vpop.f32.mrf.mxu3  ;;  %v2025_v49 = vpop.f32.mrf.mxu0  ;;  %v3959_v39 = vmul.f32 %v6580_v35, %v3958_v2  ;;  %v3908_v57 = vor.u32 1.1754944e-38, %v3907_v31  ;;  %v5760_v31 = vor.u32 %v6428_v38, %v5759_v40 }
 0x19e   :  { %v2026_v28 = vadd.f32 %v2025_v49, %v7195_v19  ;;  %v2074_v62 = vpop.f32.mrf.mxu1 }
 0x19f   :  { %v6582_v6 = vpop.eup %6581  ;;  %v6069_v24 = vmul.f32 -1.442695, %v2122_v20  ;;  %v3960_v52 = vadd.f32 %v6580_v35, %v3959_v39  ;;  %v7478_v39 = vsel %vm7460_vm4, %v3908_v57, %v3904_v21  ;;  %2670 = vmatpush.bf16.msra.mxu2 %v5760_v31  ;;  %v9201_v31 = vld [vmem:[#allocation37_spill] sm:$0xff] }
 0x1a0   :  { %v7468_v8 = vpop.eup %6583  ;;  %v7470_v19 = vadd.f32 1.0, %v6582_v6  ;;  %v2075_v2 = vadd.f32 %v2074_v62, %v2026_v28  ;;  %9197 = vst [vmem:[#allocation67_spill] sm:$0xff] %v7478_v39  ;;  %v6364_v62 = vld [vmem:[#allocation5 + $0x2f4] sm:$0xf0] }
 0x1a1   :  { %v4017_v49 = vmul.f32 %v7468_v8, %v7438_v29  ;;  %6585 = vpow2.f32 %v6069_v24  ;;  %v3964_v20 = vsel %vm3963_vm6, %v6580_v35, %v3960_v52  ;;  %v5504_v1 = vor.u32 %v6364_v62, %v5503_v37  ;;  %v5631_v52 = vld [vmem:[#allocation5 + $0x3e8] sm:$0xf] }
 0x1a2   :  { %6587 = vrcp.f32 %v7470_v19  ;;  %v7480_v28 = vsel %vm3966_vm7, %v3968_v34, %v3964_v20  ;;  %v5888_v24 = vor.u32 %v6460_v59, %v5887_v55  ;;  %v5632_v21 = vor.u32 %v6396_v51, %v5631_v52  ;;  %v7493_v55 = vld [vmem:[#allocation7] sm:$0xf]  ;;  %v6424_v59 = vld [vmem:[#allocation5 + $0x4d4] sm:$0xf0]  ;;  %v5871_v52 = vld [vmem:[#allocation5 + $0x5c8] sm:$0xf] }
 0x1a3   :  { %9198 = vst [vmem:[#allocation68_spill] sm:$0xff] %v7480_v28  ;;  %v4018_v18 = vsub.f32 1.0, %v4017_v49  ;;  %2572 = vmatpush.bf16.msra.mxu0 %v5504_v1  ;;  %v9199_v49 = vld [vmem:[#allocation35_spill] sm:$0xff]  ;;  %v7496_v51 = vperm.slane %v7493_v55, 1  ;;  %vm4022_vm8 = vweird.f32 %v7468_v8  ;;  %vm4081_vm12 = vweird.f32 %v7470_v19 }
 0x1a4   :  { %v2123_v35 = vpop.f32.mrf.mxu2  ;;  %2719 = vmatpush.bf16.msra.mxu3 %v5888_v24  ;;  %2621 = vmatpush.bf16.msra.mxu1 %v5632_v21  ;;  %v6360_v24 = vld [vmem:[#allocation5 + $0x2d4] sm:$0xf0]  ;;  %vm7515_vm10 = vmor %vm4021_vm9, %vm4022_vm8 }
 0x1a5   :  { %v2124_v7 = vadd.f32 %v2123_v35, %v2075_v2  ;;  %v7484_v17 = vpop.f32.mrf.mxu3  ;;  %v2028_v30 = vpop.f32.mrf.mxu0  ;;  %v4019_v38 = vmul.f32 %v7468_v8, %v4018_v18  ;;  %v5487_v35 = vld [vmem:[#allocation5 + $0x2c8] sm:$0xf] }
 0x1a6   :  { %v2029_v57 = vadd.f32 %v2028_v30, %v7202_v36  ;;  %v2077_v34 = vpop.f32.mrf.mxu1  ;;  %v9200_v36 = vld [vmem:[#allocation36_spill] sm:$0xff]  ;;  %v6456_v30 = vld [vmem:[#allocation5 + $0x5d4] sm:$0xf0] }
 0x1a7   :  { %v6586_v20 = vpop.eup %6585  ;;  %v6073_v40 = vmul.f32 -1.442695, %v2124_v7  ;;  %v5743_v7 = vld [vmem:[#allocation5 + $0x4c8] sm:$0xf]  ;;  %v4020_v21 = vadd.f32 %v7468_v8, %v4019_v38 }
 0x1a8   :  { %v7488_v37 = vpop.eup %6587  ;;  %v7490_v62 = vadd.f32 1.0, %v6586_v20  ;;  %v2078_v2 = vadd.f32 %v2077_v34, %v2029_v57  ;;  %2223 = vmatmul.bf16.gmra.mxu0 %v9199_v49  ;;  %v5744_v1 = vor.u32 %v6424_v59, %v5743_v7  ;;  %v5488_v34 = vor.u32 %v6360_v24, %v5487_v35  ;;  %v5615_v24 = vld [vmem:[#allocation5 + $0x3c8] sm:$0xf] }
 0x1a9   :  { %6589 = vpow2.f32 %v6073_v40  ;;  %2272 = vmatmul.bf16.gmra.mxu1 %v9200_v36  ;;  %2321 = vmatmul.bf16.gmra.mxu2 %v9201_v31  ;;  %v4077_v18 = vmul.f32 %v7488_v37, %v7470_v19  ;;  %v5872_v20 = vor.u32 %v6456_v30, %v5871_v52  ;;  %v4025_v7 = vand.u32 2147483647, %v7438_v29  ;;  %v6392_v52 = vld [vmem:[#allocation5 + $0x3d4] sm:$0xf0] }
 0x1aa   :  { %6591 = vrcp.f32 %v7490_v62  ;;  %2370 = vmatmul.bf16.gmra.mxu3 %v7188_v5  ;;  %2671 = vmatpush.bf16.msra.mxu2 %v5744_v1  ;;  %v4027_v59 = vand.u32 2147483648, %v7438_v29  ;;  %v4087_v5 = vand.u32 2147483648, %v7470_v19  ;;  %vm4082_vm11 = vweird.f32 %v7488_v37 }
 0x1ab   :  { %v4078_v40 = vsub.f32 1.0, %v4077_v18  ;;  %2573 = vmatpush.bf16.msra.mxu0 %v5488_v34  ;;  %2720 = vmatpush.bf16.msra.mxu3 %v5872_v20  ;;  %v4085_v35 = vand.u32 2147483647, %v7470_v19  ;;  %v5616_v34 = vor.u32 %v6392_v52, %v5615_v24  ;;  %vm4083_vm13 = vmor %vm4081_vm12, %vm4082_vm11  ;;  %vm4026_vm14 = vcmp.eq.f32.partialorder %v4025_v7, 8.507059e+37 }
 0x1ac   :  { %v2126_v57 = vpop.f32.mrf.mxu2  ;;  %v4088_v18 = vor.u32 1.1754944e-38, %v4087_v5  ;;  %vm4141_vm1 = vweird.f32 %v7490_v62 }
 0x1ad   :  { %v2127_v6 = vadd.f32 %v2126_v57, %v2078_v2  ;;  %v7507_v39 = vpop.f32.mrf.mxu3  ;;  %v2030_v28 = vpop.f32.mrf.mxu0  ;;  %v4079_v2 = vmul.f32 %v7488_v37, %v4078_v40  ;;  %2622 = vmatpush.bf16.msra.mxu1 %v5616_v34  ;;  %vm4086_vm15 = vcmp.eq.f32.partialorder %v4085_v35, 8.507059e+37 }
 0x1ae   :  { %v2031_v38 = vadd.f32 %v2030_v28, %v7205_v3  ;;  %v2079_v31 = vpop.f32.mrf.mxu1  ;;  %v4024_v3 = vsel %vm7515_vm10, %v7468_v8, %v4020_v21 }
 0x1af   :  { %v6590_v29 = vpop.eup %6589  ;;  %v6077_v1 = vmul.f32 -1.442695, %v2127_v6  ;;  %v4080_v20 = vadd.f32 %v7488_v37, %v4079_v2  ;;  %v4028_v6 = vor.u32 1.1754944e-38, %v4027_v59 }
 0x1b0   :  { %v7526_v28 = vpop.eup %6591  ;;  %v7528_v30 = vadd.f32 1.0, %v6590_v29  ;;  %v2080_v57 = vadd.f32 %v2079_v31, %v2031_v38  ;;  %v2141_v38 = vadd.f32 %v7211_v58, %v7496_v51  ;;  %v9206_v58 = vld [vmem:[#allocation39_spill] sm:$0xff] }
 0x1b1   :  { %v4137_v40 = vmul.f32 %v7526_v28, %v7490_v62  ;;  %6593 = vpow2.f32 %v6077_v1  ;;  %v4084_v8 = vsel %vm4083_vm13, %v7488_v37, %v4080_v20  ;;  %v7537_v19 = vsel %vm4026_vm14, %v4028_v6, %v4024_v3 }
 0x1b2   :  { %6595 = vrcp.f32 %v7528_v30  ;;  %9204 = vst [vmem:[#allocation69_spill] sm:$0xff] %v7537_v19  ;;  %v7539_v31 = vsel %vm4086_vm15, %v4088_v18, %v4084_v8  ;;  %v5727_v18 = vld [vmem:[#allocation5 + $0x4a8] sm:$0xf]  ;;  %v6420_v8 = vld [vmem:[#allocation5 + $0x4b4] sm:$0xf0]  ;;  %vm4142_vm0 = vweird.f32 %v7526_v28  ;;  %vm4201_vm4 = vweird.f32 %v7528_v30 }
 0x1b3   :  { %9205 = vst [vmem:[#allocation70_spill] sm:$0xff] %v7539_v31  ;;  %v4138_v21 = vsub.f32 1.0, %v4137_v40  ;;  %v9207_v40 = vld [vmem:[#allocation40_spill] sm:$0xff]  ;;  %vm7569_vm2 = vmor %vm4141_vm1, %vm4142_vm0 }
 0x1b4   :  { %v2128_v59 = vpop.f32.mrf.mxu2 }
 0x1b5   :  { %v2129_v5 = vadd.f32 %v2128_v59, %v2080_v57  ;;  %v7545_v29 = vpop.f32.mrf.mxu3  ;;  %v2189_v1 = vpop.f32.mrf.mxu0  ;;  %v4139_v52 = vmul.f32 %v7526_v28, %v4138_v21  ;;  %v9208_v57 = vld [vmem:[#allocation15_spill] sm:$0xff]  ;;  %v5728_v59 = vor.u32 %v6420_v8, %v5727_v18  ;;  %v4147_v18 = vand.u32 2147483648, %v7490_v62 }
 0x1b6   :  { %v2190_v7 = vadd.f32 %v2189_v1, %v2141_v38  ;;  %v2238_v24 = vpop.f32.mrf.mxu1  ;;  %v5471_v21 = vld [vmem:[#allocation5 + $0x2a8] sm:$0xf]  ;;  %v2143_v38 = vadd.f32 %v7214_v22, %v7496_v51  ;;  %v4145_v22 = vand.u32 2147483647, %v7490_v62  ;;  %v4207_v8 = vand.u32 2147483648, %v7528_v30 }
 0x1b7   :  { %v6594_v37 = vpop.eup %6593  ;;  %v6081_v35 = vmul.f32 -1.442695, %v2129_v5  ;;  %v6356_v5 = vld [vmem:[#allocation5 + $0x2b4] sm:$0xf0]  ;;  %v5855_v1 = vld [vmem:[#allocation5 + $0x5a8] sm:$0xf]  ;;  %2672 = vmatpush.bf16.msra.mxu2 %v5728_v59 }
 0x1b8   :  { %v7548_v3 = vpop.eup %6595  ;;  %v7550_v34 = vadd.f32 1.0, %v6594_v37  ;;  %v2239_v20 = vadd.f32 %v2238_v24, %v2190_v7  ;;  %2384 = vmatmul.bf16.vlgmr.msrb.gmra.mxu0 %v9206_v58  ;;  %v6452_v7 = vld [vmem:[#allocation5 + $0x5b4] sm:$0xf0]  ;;  %v4140_v24 = vadd.f32 %v7526_v28, %v4139_v52  ;;  %vm4146_vm6 = vcmp.eq.f32.partialorder %v4145_v22, 8.507059e+37 }
 0x1b9   :  { %6597 = vpow2.f32 %v6081_v35  ;;  %2433 = vmatmul.bf16.vlgmr.msrb.gmra.mxu1 %v9207_v40  ;;  %2482 = vmatmul.bf16.vlgmr.msrb.gmra.mxu2 %v9208_v57  ;;  %v4197_v6 = vmul.f32 %v7548_v3, %v7528_v30  ;;  %v5472_v35 = vor.u32 %v6356_v5, %v5471_v21  ;;  %v5856_v2 = vor.u32 %v6452_v7, %v5855_v1  ;;  %v5599_v5 = vld [vmem:[#allocation5 + $0x3a8] sm:$0xf] }
 0x1ba   :  { %6599 = vrcp.f32 %v7550_v34  ;;  %2531 = vmatmul.bf16.vlgmr.msrb.gmra.mxu3 %v6982_v53  ;;  %vm4202_vm3 = vweird.f32 %v7548_v3  ;;  %vm4261_vm8 = vweird.f32 %v7550_v34 }
 0x1bb   :  { %v4198_v19 = vsub.f32 1.0, %v4197_v6  ;;  %2574 = vmatpush.bf16.msra.mxu0 %v5472_v35  ;;  %2721 = vmatpush.bf16.msra.mxu3 %v5856_v2  ;;  %v4205_v6 = vand.u32 2147483647, %v7528_v30  ;;  %v4144_v2 = vsel %vm7569_vm2, %v7526_v28, %v4140_v24  ;;  %vm4203_vm5 = vmor %vm4201_vm4, %vm4202_vm3  ;;  %v4208_v35 = vor.u32 1.1754944e-38, %v4207_v8 }
 0x1bc   :  { %v2287_v37 = vpop.f32.mrf.mxu2  ;;  %v2146_v24 = vadd.f32 %v7224_v63, %v7496_v51  ;;  %v9215_v63 = vld [vmem:[#allocation19_spill] sm:$0xff] }
 0x1bd   :  { %v2288_v31 = vadd.f32 %v2287_v37, %v2239_v20  ;;  %v2336_v53 = vpop.f32.mrf.mxu3  ;;  %v2191_v57 = vpop.f32.mrf.mxu0  ;;  %v4199_v20 = vmul.f32 %v7548_v3, %v4198_v19  ;;  %vm4206_vm7 = vcmp.eq.f32.partialorder %v4205_v6, 8.507059e+37 }
 0x1be   :  { %v2192_v40 = vadd.f32 %v2191_v57, %v2143_v38  ;;  %v2240_v52 = vpop.f32.mrf.mxu1  ;;  %v6388_v57 = vld [vmem:[#allocation5 + $0x3b4] sm:$0xf0] }
 0x1bf   :  { %v6598_v59 = vpop.eup %6597  ;;  %v7576_v62 = vadd.f32 %v2336_v53, %v2288_v31  ;;  %v5600_v7 = vor.u32 %v6388_v57, %v5599_v5  ;;  %v4200_v37 = vadd.f32 %v7548_v3, %v4199_v20  ;;  %v4148_v31 = vor.u32 1.1754944e-38, %v4147_v18 }
 0x1c0   :  { %v7582_v38 = vpop.eup %6599  ;;  %v7584_v1 = vadd.f32 1.0, %v6598_v59  ;;  %v2241_v19 = vadd.f32 %v2240_v52, %v2192_v40 }
 0x1c1   :  { %v4257_v53 = vmul.f32 %v7582_v38, %v7550_v34  ;;  %2623 = vmatpush.bf16.msra.mxu1 %v5600_v7  ;;  %v4204_v28 = vsel %vm4203_vm5, %v7548_v3, %v4200_v37  ;;  %v7593_v30 = vsel %vm4146_vm6, %v4148_v31, %v4144_v2  ;;  %v9213_v2 = vld [vmem:[#allocation42_spill] sm:$0xff]  ;;  %v9214_v37 = vld [vmem:[#allocation43_spill] sm:$0xff]  ;;  %vm4262_vm9 = vweird.f32 %v7582_v38 }
 0x1c2   :  { %6601 = vrcp.f32 %v7584_v1  ;;  %9211 = vst [vmem:[#allocation71_spill] sm:$0xff] %v7593_v30  ;;  %v7595_v40 = vsel %vm4206_vm7, %v4208_v35, %v4204_v28  ;;  %v5455_v35 = vld [vmem:[#allocation5 + $0x288] sm:$0xf]  ;;  %v2148_v28 = vadd.f32 %v7234_v61, %v7496_v51  ;;  %v4265_v61 = vand.u32 2147483647, %v7550_v34  ;;  %vm4263_vm11 = vmor %vm4261_vm8, %vm4262_vm9 }
 0x1c3   :  { %9212 = vst [vmem:[#allocation72_spill] sm:$0xff] %v7595_v40  ;;  %v4258_v21 = vsub.f32 1.0, %v4257_v53  ;;  %v6416_v53 = vld [vmem:[#allocation5 + $0x494] sm:$0xf0]  ;;  %vm4321_vm12 = vweird.f32 %v7584_v1 }
 0x1c4   :  { %v2289_v52 = vpop.f32.mrf.mxu2  ;;  %vm4266_vm14 = vcmp.eq.f32.partialorder %v4265_v61, 8.507059e+37  ;;  %v9219_v61 = vld [vmem:[#allocation46_spill] sm:$0xff] }
 0x1c5   :  { %v2290_v8 = vadd.f32 %v2289_v52, %v2241_v19  ;;  %v2338_v20 = vpop.f32.mrf.mxu3  ;;  %v2194_v59 = vpop.f32.mrf.mxu0  ;;  %v4259_v7 = vmul.f32 %v7582_v38, %v4258_v21  ;;  %v5711_v19 = vld [vmem:[#allocation5 + $0x488] sm:$0xf]  ;;  %v6352_v52 = vld [vmem:[#allocation5 + $0x294] sm:$0xf0] }
 0x1c6   :  { %v2195_v5 = vadd.f32 %v2194_v59, %v2146_v24  ;;  %v2243_v22 = vpop.f32.mrf.mxu1  ;;  %v5712_v24 = vor.u32 %v6416_v53, %v5711_v19  ;;  %v5456_v59 = vor.u32 %v6352_v52, %v5455_v35  ;;  %v4267_v19 = vand.u32 2147483648, %v7550_v34 }
 0x1c7   :  { %v7601_v57 = vadd.f32 %v2338_v20, %v2290_v8  ;;  %v5839_v8 = vld [vmem:[#allocation5 + $0x588] sm:$0xf]  ;;  %v6448_v20 = vld [vmem:[#allocation5 + $0x594] sm:$0xf0]  ;;  %v4327_v53 = vand.u32 2147483648, %v7584_v1  ;;  %v2151_v34 = vadd.f32 %v7252_v48, %v7496_v51 }
 0x1c8   :  { %v6602_v3 = vpop.eup %6601  ;;  %v2244_v6 = vadd.f32 %v2243_v22, %v2195_v5  ;;  %2389 = vmatmul.bf16.gmra.mxu0 %v9213_v2  ;;  %v5840_v5 = vor.u32 %v6448_v20, %v5839_v8  ;;  %v4260_v22 = vadd.f32 %v7582_v38, %v4259_v7  ;;  %2673 = vmatpush.bf16.msra.mxu2 %v5712_v24  ;;  %v4325_v35 = vand.u32 2147483647, %v7584_v1  ;;  %v5695_v48 = vld [vmem:[#allocation5 + $0x468] sm:$0xf] }
 0x1c9   :  { %2438 = vmatmul.bf16.gmra.mxu1 %v9214_v37  ;;  %2487 = vmatmul.bf16.gmra.mxu2 %v9215_v63  ;;  %v4317_v31 = vmul.f32 %v6602_v3, %v7584_v1  ;;  %vm4322_vm10 = vweird.f32 %v6602_v3  ;;  %v4328_v8 = vor.u32 1.1754944e-38, %v4327_v53  ;;  %v6412_v53 = vld [vmem:[#allocation5 + $0x474] sm:$0xf0] }
 0x1ca   :  { %2536 = vmatmul.bf16.gmra.mxu3 %v6994_v25  ;;  %2575 = vmatpush.bf16.msra.mxu0 %v5456_v59  ;;  %vm4323_vm13 = vmor %vm4321_vm12, %vm4322_vm10  ;;  %vm4326_vm15 = vcmp.eq.f32.partialorder %v4325_v35, 8.507059e+37  ;;  %v5439_v35 = vld [vmem:[#allocation5 + $0x268] sm:$0xf] }
 0x1cb   :  { %v4318_v18 = vsub.f32 1.0, %v4317_v31  ;;  %2722 = vmatpush.bf16.msra.mxu3 %v5840_v5  ;;  %v6384_v31 = vld [vmem:[#allocation5 + $0x394] sm:$0xf0] }
 0x1cc   :  { %v2292_v21 = vpop.f32.mrf.mxu2 }
 0x1cd   :  { %v2293_v30 = vadd.f32 %v2292_v21, %v2244_v6  ;;  %v2341_v40 = vpop.f32.mrf.mxu3  ;;  %v2196_v25 = vpop.f32.mrf.mxu0  ;;  %v4319_v36 = vmul.f32 %v6602_v3, %v4318_v18  ;;  %v5583_v6 = vld [vmem:[#allocation5 + $0x388] sm:$0xf]  ;;  %v4268_v18 = vor.u32 1.1754944e-38, %v4267_v19  ;;  %v9220_v19 = vld [vmem:[#allocation22_spill] sm:$0xff] }
 0x1ce   :  { %v2197_v63 = vadd.f32 %v2196_v25, %v2148_v28  ;;  %v2245_v37 = vpop.f32.mrf.mxu1  ;;  %v5584_v25 = vor.u32 %v6384_v31, %v5583_v6  ;;  %v4264_v28 = vsel %vm4263_vm11, %v7582_v38, %v4260_v22  ;;  %v9218_v22 = vld [vmem:[#allocation45_spill] sm:$0xff]  ;;  %v5696_v6 = vor.u32 %v6412_v53, %v5695_v48 }
 0x1cf   :  { %v7618_v7 = vadd.f32 %v2341_v40, %v2293_v30  ;;  %v4320_v52 = vadd.f32 %v6602_v3, %v4319_v36  ;;  %v7626_v40 = vsel %vm4266_vm14, %v4268_v18, %v4264_v28  ;;  %v6348_v31 = vld [vmem:[#allocation5 + $0x274] sm:$0xf0]  ;;  %v2153_v28 = vadd.f32 %v7278_v4, %v7496_v51 }
 0x1d0   :  { %v2246_v24 = vadd.f32 %v2245_v37, %v2197_v63  ;;  %2624 = vmatpush.bf16.msra.mxu1 %v5584_v25  ;;  %9216 = vst [vmem:[#allocation73_spill] sm:$0xff] %v7626_v40  ;;  %v6444_v25 = vld [vmem:[#allocation5 + $0x574] sm:$0xf0]  ;;  %v5440_v18 = vor.u32 %v6348_v31, %v5439_v35  ;;  %2674 = vmatpush.bf16.msra.mxu2 %v5696_v6 }
 0x1d1   :  { %v4324_v30 = vsel %vm4323_vm13, %v6602_v3, %v4320_v52  ;;  %v2156_v4 = vadd.f32 %v7296_v23, %v7496_v51  ;;  %v5423_v23 = vld [vmem:[#allocation5 + $0x248] sm:$0xf] }
 0x1d2   :  { %v7628_v20 = vsel %vm4326_vm15, %v4328_v8, %v4324_v30  ;;  %2576 = vmatpush.bf16.msra.mxu0 %v5440_v18  ;;  %v9221_v18 = vld [vmem:[#allocation47_spill] sm:$0xff] }
 0x1d3   :  { %9217 = vst [vmem:[#allocation74_spill] sm:$0xff] %v7628_v20 }
 0x1d4   :  { %v2294_v1 = vpop.f32.mrf.mxu2 }
 0x1d5   :  { %v2295_v38 = vadd.f32 %v2294_v1, %v2246_v24  ;;  %v2343_v36 = vpop.f32.mrf.mxu3  ;;  %v2199_v63 = vpop.f32.mrf.mxu0  ;;  %v5823_v24 = vld [vmem:[#allocation5 + $0x568] sm:$0xf] }
 0x1d6   :  { %v2200_v21 = vadd.f32 %v2199_v63, %v2151_v34  ;;  %v2248_v59 = vpop.f32.mrf.mxu1  ;;  %v5824_v8 = vor.u32 %v6444_v25, %v5823_v24 }
 0x1d7   :  { %v7634_v5 = vadd.f32 %v2343_v36, %v2295_v38 }
 0x1d8   :  { %v2249_v3 = vadd.f32 %v2248_v59, %v2200_v21  ;;  %2394 = vmatmul.bf16.gmra.mxu0 %v9218_v22  ;;  %2723 = vmatpush.bf16.msra.mxu3 %v5824_v8  ;;  %v5567_v21 = vld [vmem:[#allocation5 + $0x368] sm:$0xf]  ;;  %v6380_v59 = vld [vmem:[#allocation5 + $0x374] sm:$0xf0]  ;;  %v9222_v8 = vld [vmem:[#allocation48_spill] sm:$0xff] }
 0x1d9   :  { %2443 = vmatmul.bf16.gmra.mxu1 %v9219_v61  ;;  %2492 = vmatmul.bf16.gmra.mxu2 %v9220_v19  ;;  %v5568_v53 = vor.u32 %v6380_v59, %v5567_v21  ;;  %v5807_v21 = vld [vmem:[#allocation5 + $0x548] sm:$0xf]  ;;  %v6440_v59 = vld [vmem:[#allocation5 + $0x554] sm:$0xf0] }
 0x1da   :  { %2541 = vmatmul.bf16.gmra.mxu3 %v7006_v50 }
 0x1db   :  { %2625 = vmatpush.bf16.msra.mxu1 %v5568_v53 }
 0x1dc   :  { %v2297_v52 = vpop.f32.mrf.mxu2 }
 0x1dd   :  { %v2298_v30 = vadd.f32 %v2297_v52, %v2249_v3  ;;  %v2346_v34 = vpop.f32.mrf.mxu3  ;;  %v2201_v1 = vpop.f32.mrf.mxu0 }
 0x1de   :  { %v2202_v38 = vadd.f32 %v2201_v1, %v2153_v28  ;;  %v2250_v36 = vpop.f32.mrf.mxu1  ;;  %v6408_v1 = vld [vmem:[#allocation5 + $0x454] sm:$0xf0] }
 0x1df   :  { %v7642_v63 = vadd.f32 %v2346_v34, %v2298_v30  ;;  %v9223_v30 = vld [vmem:[#allocation26_spill] sm:$0xff]  ;;  %v5679_v34 = vld [vmem:[#allocation5 + $0x448] sm:$0xf] }
 0x1e0   :  { %v2251_v48 = vadd.f32 %v2250_v36, %v2202_v38  ;;  %v5680_v38 = vor.u32 %v6408_v1, %v5679_v34  ;;  %v6344_v36 = vld [vmem:[#allocation5 + $0x254] sm:$0xf0]  ;;  %v5551_v34 = vld [vmem:[#allocation5 + $0x348] sm:$0xf] }
 0x1e1   :  { %v6376_v1 = vld [vmem:[#allocation5 + $0x354] sm:$0xf0] }
 0x1e2   :  { %2675 = vmatpush.bf16.msra.mxu2 %v5680_v38  ;;  %v5552_v20 = vor.u32 %v6376_v1, %v5551_v34  ;;  %v2163_v34 = vadd.f32 %v7378_v32, %v7496_v51  ;;  %v2166_v32 = vadd.f32 %v7396_v44, %v7496_v51  ;;  %v5391_v44 = vld [vmem:[#allocation5 + $0x208] sm:$0xf] }
 0x1e4   :  { %v2299_v35 = vpop.f32.mrf.mxu2  ;;  %2626 = vmatpush.bf16.msra.mxu1 %v5552_v20  ;;  %v5663_v20 = vld [vmem:[#allocation5 + $0x428] sm:$0xf] }
 0x1e5   :  { %v2300_v31 = vadd.f32 %v2299_v35, %v2251_v48  ;;  %v2348_v3 = vpop.f32.mrf.mxu3  ;;  %v2204_v24 = vpop.f32.mrf.mxu0  ;;  %v2158_v48 = vadd.f32 %v7328_v0, %v7496_v51  ;;  %v5808_v35 = vor.u32 %v6440_v59, %v5807_v21  ;;  %v2161_v0 = vadd.f32 %v7346_v60, %v7496_v51  ;;  %v5407_v60 = vld [vmem:[#allocation5 + $0x228] sm:$0xf] }
 0x1e6   :  { %v2205_v25 = vadd.f32 %v2204_v24, %v2156_v4  ;;  %v2253_v6 = vpop.f32.mrf.mxu1  ;;  %v5424_v4 = vor.u32 %v6344_v36, %v5423_v23 }
 0x1e7   :  { %v7646_v28 = vadd.f32 %v2348_v3, %v2300_v31  ;;  %2724 = vmatpush.bf16.msra.mxu3 %v5808_v35  ;;  %v9225_v35 = vld [vmem:[#allocation50_spill] sm:$0xff] }
 0x1e8   :  { %v2254_v52 = vadd.f32 %v2253_v6, %v2205_v25  ;;  %2399 = vmatmul.bf16.gmra.mxu0 %v9221_v18 }
 0x1e9   :  { %2448 = vmatmul.bf16.gmra.mxu1 %v9222_v8  ;;  %2497 = vmatmul.bf16.gmra.mxu2 %v9223_v30 }
 0x1ea   :  { %2546 = vmatmul.bf16.gmra.mxu3 %v7018_v13  ;;  %2577 = vmatpush.bf16.msra.mxu0 %v5424_v4  ;;  %v9224_v4 = vld [vmem:[#allocation49_spill] sm:$0xff] }
 0x1ec   :  { %v2302_v53 = vpop.f32.mrf.mxu2 }
 0x1ed   :  { %v2303_v31 = vadd.f32 %v2302_v53, %v2254_v52  ;;  %v2351_v3 = vpop.f32.mrf.mxu3  ;;  %v2206_v24 = vpop.f32.mrf.mxu0 }
 0x1ee   :  { %v2207_v25 = vadd.f32 %v2206_v24, %v2158_v48  ;;  %v2255_v6 = vpop.f32.mrf.mxu1 }
 0x1ef   :  { %v7654_v37 = vadd.f32 %v2351_v3, %v2303_v31  ;;  %v9226_v31 = vld [vmem:[#allocation28_spill] sm:$0xff]  ;;  %v6404_v3 = vld [vmem:[#allocation5 + $0x434] sm:$0xf0] }
 0x1f0   :  { %v2256_v40 = vadd.f32 %v2255_v6, %v2207_v25  ;;  %v5664_v24 = vor.u32 %v6404_v3, %v5663_v20  ;;  %v5791_v25 = vld [vmem:[#allocation5 + $0x528] sm:$0xf]  ;;  %v6436_v6 = vld [vmem:[#allocation5 + $0x534] sm:$0xf0] }
 0x1f1   :  { %v5535_v20 = vld [vmem:[#allocation5 + $0x328] sm:$0xf]  ;;  %v6372_v3 = vld [vmem:[#allocation5 + $0x334] sm:$0xf0] }
 0x1f2   :  { %2676 = vmatpush.bf16.msra.mxu2 %v5664_v24 }
 0x1f4   :  { %v2304_v23 = vpop.f32.mrf.mxu2 }
 0x1f5   :  { %v2305_v36 = vadd.f32 %v2304_v23, %v2256_v40  ;;  %v2353_v52 = vpop.f32.mrf.mxu3  ;;  %v2209_v21 = vpop.f32.mrf.mxu0  ;;  %v6340_v40 = vld [vmem:[#allocation5 + $0x234] sm:$0xf0]  ;;  %v5792_v23 = vor.u32 %v6436_v6, %v5791_v25 }
 0x1f6   :  { %v2210_v59 = vadd.f32 %v2209_v21, %v2161_v0  ;;  %v2258_v38 = vpop.f32.mrf.mxu1  ;;  %v5408_v0 = vor.u32 %v6340_v40, %v5407_v60 }
 0x1f7   :  { %v7658_v48 = vadd.f32 %v2353_v52, %v2305_v36  ;;  %2725 = vmatpush.bf16.msra.mxu3 %v5792_v23  ;;  %v9228_v23 = vld [vmem:[#allocation52_spill] sm:$0xff] }
 0x1f8   :  { %v2259_v53 = vadd.f32 %v2258_v38, %v2210_v59  ;;  %2404 = vmatmul.bf16.gmra.mxu0 %v9224_v4 }
 0x1f9   :  { %2453 = vmatmul.bf16.gmra.mxu1 %v9225_v35  ;;  %2502 = vmatmul.bf16.gmra.mxu2 %v9226_v31  ;;  %v5536_v35 = vor.u32 %v6372_v3, %v5535_v20  ;;  %v2168_v20 = vadd.f32 %v7434_v54, %v7496_v51  ;;  %v2171_v54 = vadd.f32 %v7452_v12, %v7496_v51 }
 0x1fa   :  { %2551 = vmatmul.bf16.gmra.mxu3 %v7030_v41  ;;  %2578 = vmatpush.bf16.msra.mxu0 %v5408_v0  ;;  %v9227_v0 = vld [vmem:[#allocation51_spill] sm:$0xff]  ;;  %v2173_v12 = vadd.f32 %v7484_v17, %v7496_v51 }
 0x1fb   :  { %2627 = vmatpush.bf16.msra.mxu1 %v5536_v35  ;;  %v5647_v35 = vld [vmem:[#allocation5 + $0x408] sm:$0xf] }
 0x1fc   :  { %v2307_v1 = vpop.f32.mrf.mxu2 }
 0x1fd   :  { %v2308_v36 = vadd.f32 %v2307_v1, %v2259_v53  ;;  %v2356_v52 = vpop.f32.mrf.mxu3  ;;  %v2211_v21 = vpop.f32.mrf.mxu0 }
 0x1fe   :  { %v2212_v59 = vadd.f32 %v2211_v21, %v2163_v34  ;;  %v2260_v38 = vpop.f32.mrf.mxu1 }
 0x1ff   :  { %v7666_v41 = vadd.f32 %v2356_v52, %v2308_v36  ;;  %v9229_v36 = vld [vmem:[#allocation30_spill] sm:$0xff]  ;;  %v6400_v52 = vld [vmem:[#allocation5 + $0x414] sm:$0xf0] }
 0x200   :  { %v2261_v31 = vadd.f32 %v2260_v38, %v2212_v59  ;;  %v5648_v21 = vor.u32 %v6400_v52, %v5647_v35  ;;  %v5775_v59 = vld [vmem:[#allocation5 + $0x508] sm:$0xf]  ;;  %v6432_v38 = vld [vmem:[#allocation5 + $0x514] sm:$0xf0] }
 0x201   :  { %v5519_v35 = vld [vmem:[#allocation5 + $0x308] sm:$0xf]  ;;  %v6368_v52 = vld [vmem:[#allocation5 + $0x314] sm:$0xf0] }
 0x202   :  { %2677 = vmatpush.bf16.msra.mxu2 %v5648_v21 }
 0x204   :  { %v2309_v60 = vpop.f32.mrf.mxu2 }
 0x205   :  { %v2310_v40 = vadd.f32 %v2309_v60, %v2261_v31  ;;  %v2358_v53 = vpop.f32.mrf.mxu3  ;;  %v2214_v25 = vpop.f32.mrf.mxu0  ;;  %v6336_v31 = vld [vmem:[#allocation5 + $0x214] sm:$0xf0]  ;;  %v5776_v60 = vor.u32 %v6432_v38, %v5775_v59 }
 0x206   :  { %v2215_v6 = vadd.f32 %v2214_v25, %v2166_v32  ;;  %v2263_v24 = vpop.f32.mrf.mxu1  ;;  %v5392_v32 = vor.u32 %v6336_v31, %v5391_v44 }
 0x207   :  { %v7670_v34 = vadd.f32 %v2358_v53, %v2310_v40  ;;  %2726 = vmatpush.bf16.msra.mxu3 %v5776_v60  ;;  %v9231_v60 = vld [vmem:[#allocation55_spill] sm:$0xff] }
 0x208   :  { %v2264_v1 = vadd.f32 %v2263_v24, %v2215_v6  ;;  %2409 = vmatmul.bf16.gmra.mxu0 %v9227_v0 }
 0x209   :  { %2458 = vmatmul.bf16.gmra.mxu1 %v9228_v23  ;;  %2507 = vmatmul.bf16.gmra.mxu2 %v9229_v36  ;;  %v5520_v23 = vor.u32 %v6368_v52, %v5519_v35 }
 0x20a   :  { %2556 = vmatmul.bf16.gmra.mxu3 %v7042_v9  ;;  %2579 = vmatpush.bf16.msra.mxu0 %v5392_v32  ;;  %v9230_v32 = vld [vmem:[#allocation54_spill] sm:$0xff] }
 0x20b   :  { %2628 = vmatpush.bf16.msra.mxu1 %v5520_v23 }
 0x20c   :  { %v2312_v3 = vpop.f32.mrf.mxu2 }
 0x20d   :  { %v2313_v40 = vadd.f32 %v2312_v3, %v2264_v1  ;;  %v2361_v53 = vpop.f32.mrf.mxu3  ;;  %v2216_v25 = vpop.f32.mrf.mxu0 }
 0x20e   :  { %v2217_v6 = vadd.f32 %v2216_v25, %v2168_v20  ;;  %v2265_v24 = vpop.f32.mrf.mxu1 }
 0x20f   :  { %v7678_v9 = vadd.f32 %v2361_v53, %v2313_v40  ;;  %v9232_v40 = vld [vmem:[#allocation32_spill] sm:$0xff] }
 0x210   :  { %v2266_v36 = vadd.f32 %v2265_v24, %v2217_v6 }
 0x214   :  { %v2314_v44 = vpop.f32.mrf.mxu2 }
 0x215   :  { %v2315_v31 = vadd.f32 %v2314_v44, %v2266_v36  ;;  %v2363_v1 = vpop.f32.mrf.mxu3  ;;  %v2219_v59 = vpop.f32.mrf.mxu0 }
 0x216   :  { %v2220_v38 = vadd.f32 %v2219_v59, %v2171_v54  ;;  %v2268_v21 = vpop.f32.mrf.mxu1  ;;  %v2176_v54 = vadd.f32 %v7507_v39, %v7496_v51  ;;  %v2178_v39 = vadd.f32 %v7545_v29, %v7496_v51  ;;  %v5249_v51 = vld [vmem:[#allocation5 + $0xf8] sm:$0xf0] }
 0x217   :  { %v7682_v20 = vadd.f32 %v2363_v1, %v2315_v31 }
 0x218   :  { %v2269_v3 = vadd.f32 %v2268_v21, %v2220_v38  ;;  %2414 = vmatmul.bf16.gmra.mxu0 %v9230_v32 }
 0x219   :  { %2463 = vmatmul.bf16.gmra.mxu1 %v9231_v60  ;;  %2512 = vmatmul.bf16.gmra.mxu2 %v9232_v40  ;;  %v6298_v60 = vld [vmem:[#allocation5 + $0xec] sm:$0xf] }
 0x21a   :  { %2561 = vmatmul.bf16.gmra.mxu3 %v7054_v45  ;;  %v5252_v29 = vor.u32 %v6298_v60, %v5249_v51  ;;  %v7711_v60 = vperm.slane %v7493_v55, 2 }
 0x21c   :  { %v2317_v23 = vpop.f32.mrf.mxu2  ;;  %2817 = vmatpush.bf16.msrb.mxu1 %v5252_v29  ;;  %v6488_v29 = vld [vmem:[#allocation5 + $0x6d4] sm:$0xf0] }
 0x21d   :  { %v2318_v36 = vadd.f32 %v2317_v23, %v2269_v3  ;;  %v2366_v53 = vpop.f32.mrf.mxu3  ;;  %v2221_v25 = vpop.f32.mrf.mxu0  ;;  %v9233_v3 = vld [vmem:[#allocation57_spill] sm:$0xff]  ;;  %v9234_v23 = vld [vmem:[#allocation58_spill] sm:$0xff] }
 0x21e   :  { %v2222_v6 = vadd.f32 %v2221_v25, %v2173_v12  ;;  %v2270_v24 = vpop.f32.mrf.mxu1  ;;  %v9235_v12 = vld [vmem:[#allocation34_spill] sm:$0xff] }
 0x21f   :  { %v7690_v35 = vadd.f32 %v2366_v53, %v2318_v36 }
 0x220   :  { %v2271_v52 = vadd.f32 %v2270_v24, %v2222_v6 }
 0x224   :  { %v2319_v44 = vpop.f32.mrf.mxu2 }
 0x225   :  { %v2320_v31 = vadd.f32 %v2319_v44, %v2271_v52  ;;  %v2368_v1 = vpop.f32.mrf.mxu3  ;;  %v2224_v59 = vpop.f32.mrf.mxu0 }
 0x226   :  { %v2225_v38 = vadd.f32 %v2224_v59, %v2176_v54  ;;  %v2273_v21 = vpop.f32.mrf.mxu1  ;;  %v6015_v59 = vld [vmem:[#allocation5 + $0x6e8] sm:$0xf] }
 0x227   :  { %v7694_v45 = vadd.f32 %v2368_v1, %v2320_v31  ;;  %v6330_v31 = vld [vmem:[#allocation5 + $0x1ec] sm:$0xf]  ;;  %v5377_v1 = vld [vmem:[#allocation5 + $0x1f8] sm:$0xf0] }
 0x228   :  { %v2274_v17 = vadd.f32 %v2273_v21, %v2225_v38  ;;  %2419 = vmatmul.bf16.gmra.mxu0 %v9233_v3  ;;  %v5380_v38 = vor.u32 %v6330_v31, %v5377_v1  ;;  %v6492_v21 = vld [vmem:[#allocation5 + $0x6f4] sm:$0xf0]  ;;  %v5999_v1 = vld [vmem:[#allocation5 + $0x6c8] sm:$0xf] }
 0x229   :  { %2468 = vmatmul.bf16.gmra.mxu1 %v9234_v23  ;;  %2517 = vmatmul.bf16.gmra.mxu2 %v9235_v12  ;;  %v6362_v12 = vld [vmem:[#allocation5 + $0x2ec] sm:$0xf]  ;;  %v5505_v23 = vld [vmem:[#allocation5 + $0x2f8] sm:$0xf0]  ;;  %v9236_v31 = vld [vmem:[#allocation17_spill] sm:$0xff] }
 0x22a   :  { %2566 = vmatmul.bf16.gmra.mxu3 %v9199_v49  ;;  %v6016_v49 = vor.u32 %v6492_v21, %v6015_v59  ;;  %v5508_v40 = vor.u32 %v6362_v12, %v5505_v23  ;;  %2866 = vmatpush.bf16.msrb.mxu2 %v5380_v38  ;;  %v9237_v23 = vld [vmem:[#allocation18_spill] sm:$0xff] }
 0x22b   :  { %v9238_v12 = vld [vmem:[#allocation38_spill] sm:$0xff] }
 0x22c   :  { %v2322_v36 = vpop.f32.mrf.mxu2  ;;  %2768 = vmatpush.bf16.msrb.mxu0 %v6016_v49  ;;  %2915 = vmatpush.bf16.msrb.mxu3 %v5508_v40 }
 0x22d   :  { %v2323_v53 = vadd.f32 %v2322_v36, %v2274_v17  ;;  %v2371_v25 = vpop.f32.mrf.mxu3  ;;  %v2226_v6 = vpop.f32.mrf.mxu0 }
 0x22e   :  { %v2227_v24 = vadd.f32 %v2226_v6, %v2178_v39  ;;  %v2275_v52 = vpop.f32.mrf.mxu1 }
 0x22f   :  { %v7702_v54 = vadd.f32 %v2371_v25, %v2323_v53 }
 0x230   :  { %v2276_v44 = vadd.f32 %v2275_v52, %v2227_v24 }
 0x234   :  { %v2324_v17 = vpop.f32.mrf.mxu2 }
 0x235   :  { %v2325_v39 = vadd.f32 %v2324_v17, %v2276_v44  ;;  %v2373_v36 = vpop.f32.mrf.mxu3  ;;  %v2385_v53 = vpop.f32.mrf.mxu0  ;;  %v6326_v44 = vld [vmem:[#allocation5 + $0x1cc] sm:$0xf] }
 0x236   :  { %v2386_v25 = vadd.f32 %v2385_v53, %v7576_v62  ;;  %v2434_v6 = vpop.f32.mrf.mxu1  ;;  %v5361_v62 = vld [vmem:[#allocation5 + $0x1d8] sm:$0xf0]  ;;  %v6358_v17 = vld [vmem:[#allocation5 + $0x2cc] sm:$0xf]  ;;  %v6000_v53 = vor.u32 %v6488_v29, %v5999_v1 }
 0x237   :  { %v7705_v24 = vadd.f32 %v2373_v36, %v2325_v39  ;;  %v5364_v51 = vor.u32 %v6326_v44, %v5361_v62  ;;  %v5489_v39 = vld [vmem:[#allocation5 + $0x2d8] sm:$0xf0] }
 0x238   :  { %v2435_v52 = vadd.f32 %v2434_v6, %v2386_v25  ;;  %2580 = vmatmul.bf16.vlgmr.msra.gmra.mxu0 %v9236_v31  ;;  %v5492_v25 = vor.u32 %v6358_v17, %v5489_v39  ;;  %v6294_v6 = vld [vmem:[#allocation5 + $0xcc] sm:$0xf] }
 0x239   :  { %2629 = vmatmul.bf16.vlgmr.msra.gmra.mxu1 %v9237_v23  ;;  %2678 = vmatmul.bf16.vlgmr.msra.gmra.mxu2 %v9238_v12 }
 0x23a   :  { %v6022_v49 = vmul.f32 -1.442695, %v2435_v52  ;;  %2727 = vmatmul.bf16.vlgmr.msra.gmra.mxu3 %v9206_v58  ;;  %v5233_v52 = vld [vmem:[#allocation5 + $0xd8] sm:$0xf0]  ;;  %2867 = vmatpush.bf16.msrb.mxu2 %v5364_v51 }
 0x23b   :  { %v5236_v58 = vor.u32 %v6294_v6, %v5233_v52  ;;  %2769 = vmatpush.bf16.msrb.mxu0 %v6000_v53  ;;  %2916 = vmatpush.bf16.msrb.mxu3 %v5492_v25  ;;  %v5345_v53 = vld [vmem:[#allocation5 + $0x1b8] sm:$0xf0]  ;;  %v5983_v25 = vld [vmem:[#allocation5 + $0x6a8] sm:$0xf] }
 0x23c   :  { %6603 = vpow2.f32 %v6022_v49  ;;  %v2483_v40 = vpop.f32.mrf.mxu2 }
 0x23d   :  { %v2484_v59 = vadd.f32 %v2483_v40, %v7711_v60  ;;  %v2532_v38 = vpop.f32.mrf.mxu3  ;;  %v2387_v21 = vpop.f32.mrf.mxu0  ;;  %2818 = vmatpush.bf16.msrb.mxu1 %v5236_v58  ;;  %v9239_v58 = vld [vmem:[#allocation41_spill] sm:$0xff] }
 0x23e   :  { %v2388_v36 = vadd.f32 %v2387_v21, %v7601_v57  ;;  %v2436_v55 = vpop.f32.mrf.mxu1 }
 0x23f   :  { %v7716_v49 = vadd.f32 %v2532_v38, %v2484_v59 }
 0x240   :  { %v2437_v12 = vadd.f32 %v2436_v55, %v2388_v36  ;;  %v6322_v55 = vld [vmem:[#allocation5 + $0x1ac] sm:$0xf] }
 0x242   :  { %v6604_v40 = vpop.eup %6603  ;;  %v6026_v44 = vmul.f32 -1.442695, %v2437_v12 }
 0x243   :  { %v7718_v62 = vadd.f32 1.0, %v6604_v40 }
 0x244   :  { %6605 = vpow2.f32 %v6026_v44  ;;  %v2485_v23 = vpop.f32.mrf.mxu2  ;;  %v6484_v44 = vld [vmem:[#allocation5 + $0x6b4] sm:$0xf0] }
 0x245   :  { %6607 = vrcp.f32 %v7718_v62  ;;  %v2486_v57 = vadd.f32 %v2485_v23, %v7711_v60  ;;  %v2534_v1 = vpop.f32.mrf.mxu3  ;;  %v2390_v21 = vpop.f32.mrf.mxu0  ;;  %vm3436_vm1 = vweird.f32 %v7718_v62 }
 0x246   :  { %v2391_v59 = vadd.f32 %v2390_v21, %v7618_v7  ;;  %v2439_v38 = vpop.f32.mrf.mxu1 }
 0x247   :  { %v7723_v51 = vadd.f32 %v2534_v1, %v2486_v57  ;;  %v6354_v57 = vld [vmem:[#allocation5 + $0x2ac] sm:$0xf] }
 0x248   :  { %v2440_v29 = vadd.f32 %v2439_v38, %v2391_v59  ;;  %2585 = vmatmul.bf16.gmra.mxu0 %v6996_v26  ;;  %v5348_v38 = vor.u32 %v6322_v55, %v5345_v53 }
 0x249   :  { %2634 = vmatmul.bf16.gmra.mxu1 %v6998_v27  ;;  %2683 = vmatmul.bf16.gmra.mxu2 %v9239_v58  ;;  %v5217_v27 = vld [vmem:[#allocation5 + $0xb8] sm:$0xf0] }
 0x24a   :  { %v6606_v12 = vpop.eup %6605  ;;  %v6030_v17 = vmul.f32 -1.442695, %v2440_v29  ;;  %2732 = vmatmul.bf16.gmra.mxu3 %v9213_v2  ;;  %v5984_v29 = vor.u32 %v6484_v44, %v5983_v25  ;;  %2868 = vmatpush.bf16.msrb.mxu2 %v5348_v38 }
 0x24b   :  { %v7729_v39 = vpop.eup %6607  ;;  %v7731_v23 = vadd.f32 1.0, %v6606_v12  ;;  %v5473_v12 = vld [vmem:[#allocation5 + $0x2b8] sm:$0xf0] }
 0x24c   :  { %v3432_v7 = vmul.f32 %v7729_v39, %v7718_v62  ;;  %6609 = vpow2.f32 %v6030_v17  ;;  %v2488_v36 = vpop.f32.mrf.mxu2  ;;  %v6290_v17 = vld [vmem:[#allocation5 + $0xac] sm:$0xf]  ;;  %v5476_v58 = vor.u32 %v6354_v57, %v5473_v12  ;;  %2770 = vmatpush.bf16.msrb.mxu0 %v5984_v29  ;;  %vm3437_vm0 = vweird.f32 %v7729_v39 }
 0x24d   :  { %6611 = vrcp.f32 %v7731_v23  ;;  %v2489_v6 = vadd.f32 %v2488_v36, %v7711_v60  ;;  %v2537_v52 = vpop.f32.mrf.mxu3  ;;  %v2392_v40 = vpop.f32.mrf.mxu0  ;;  %v5220_v36 = vor.u32 %v6290_v17, %v5217_v27  ;;  %v3502_v57 = vand.u32 2147483648, %v7731_v23  ;;  %vm7758_vm2 = vmor %vm3436_vm1, %vm3437_vm0  ;;  %v9242_v12 = vld [vmem:[#allocation24_spill] sm:$0xff] }
 0x24e   :  { %v3433_v1 = vsub.f32 1.0, %v3432_v7  ;;  %v2393_v21 = vadd.f32 %v2392_v40, %v7634_v5  ;;  %v2441_v59 = vpop.f32.mrf.mxu1  ;;  %2917 = vmatpush.bf16.msrb.mxu3 %v5476_v58  ;;  %v9244_v17 = vld [vmem:[#allocation44_spill] sm:$0xff]  ;;  %vm3496_vm4 = vweird.f32 %v7731_v23 }
 0x24f   :  { %v7738_v2 = vadd.f32 %v2537_v52, %v2489_v6  ;;  %2819 = vmatpush.bf16.msrb.mxu1 %v5220_v36 }
 0x250   :  { %v2442_v13 = vadd.f32 %v2441_v59, %v2393_v21  ;;  %v3434_v30 = vmul.f32 %v7729_v39, %v3433_v1  ;;  %v3440_v21 = vand.u32 2147483647, %v7718_v62  ;;  %v3500_v59 = vand.u32 2147483647, %v7731_v23 }
 0x252   :  { %v6610_v8 = vpop.eup %6609  ;;  %v6034_v7 = vmul.f32 -1.442695, %v2442_v13  ;;  %v3435_v58 = vadd.f32 %v7729_v39, %v3434_v30  ;;  %v3442_v13 = vand.u32 2147483648, %v7718_v62  ;;  %vm3441_vm5 = vcmp.eq.f32.partialorder %v3440_v21, 8.507059e+37 }
 0x253   :  { %v6612_v5 = vpop.eup %6611  ;;  %v7741_v40 = vadd.f32 1.0, %v6610_v8  ;;  %vm7778_vm7 = vcmp.eq.f32.partialorder %v3500_v59, 8.507059e+37 }
 0x254   :  { %v3492_v55 = vmul.f32 %v6612_v5, %v7731_v23  ;;  %6613 = vpow2.f32 %v6034_v7  ;;  %v2490_v53 = vpop.f32.mrf.mxu2  ;;  %vm3497_vm3 = vweird.f32 %v6612_v5  ;;  %v3439_v62 = vsel %vm7758_vm2, %v7729_v39, %v3435_v58 }
 0x255   :  { %6615 = vrcp.f32 %v7741_v40  ;;  %v2491_v25 = vadd.f32 %v2490_v53, %v7711_v60  ;;  %v2539_v27 = vpop.f32.mrf.mxu3  ;;  %v2395_v6 = vpop.f32.mrf.mxu0  ;;  %v3443_v7 = vor.u32 1.1754944e-38, %v3442_v13  ;;  %vm7774_vm6 = vmor %vm3496_vm4, %vm3497_vm3  ;;  %v3503_v39 = vor.u32 1.1754944e-38, %v3502_v57  ;;  %v6318_v13 = vld [vmem:[#allocation5 + $0x18c] sm:$0xf] }
 0x256   :  { %v3493_v8 = vsub.f32 1.0, %v3492_v55  ;;  %v2396_v52 = vadd.f32 %v2395_v6, %v7642_v63  ;;  %v2444_v44 = vpop.f32.mrf.mxu1  ;;  %v9243_v63 = vld [vmem:[#allocation25_spill] sm:$0xff]  ;;  %vm3556_vm9 = vweird.f32 %v7741_v40 }
 0x257   :  { %v7752_v1 = vadd.f32 %v2539_v27, %v2491_v25  ;;  %v7784_v30 = vsel %vm3441_vm5, %v3443_v7, %v3439_v62 }
 0x258   :  { %v3494_v38 = vmul.f32 %v6612_v5, %v3493_v8  ;;  %v2445_v29 = vadd.f32 %v2444_v44, %v2396_v52  ;;  %2590 = vmatmul.bf16.gmra.mxu0 %v9242_v12  ;;  %v5329_v52 = vld [vmem:[#allocation5 + $0x198] sm:$0xf0]  ;;  %v5967_v44 = vld [vmem:[#allocation5 + $0x688] sm:$0xf]  ;;  %9249 = vst [vmem:[#allocation46_spill] sm:$0xff] %v7784_v30 }
 0x259   :  { %2639 = vmatmul.bf16.gmra.mxu1 %v9243_v63  ;;  %2688 = vmatmul.bf16.gmra.mxu2 %v9244_v17  ;;  %v5332_v57 = vor.u32 %v6318_v13, %v5329_v52  ;;  %v5457_v17 = vld [vmem:[#allocation5 + $0x298] sm:$0xf0] }
 0x25a   :  { %v6614_v36 = vpop.eup %6613  ;;  %v6038_v55 = vmul.f32 -1.442695, %v2445_v29  ;;  %2737 = vmatmul.bf16.gmra.mxu3 %v9218_v22  ;;  %v3495_v53 = vadd.f32 %v6612_v5, %v3494_v38  ;;  %v6350_v22 = vld [vmem:[#allocation5 + $0x28c] sm:$0xf] }
 0x25b   :  { %v7770_v25 = vpop.eup %6615  ;;  %v7772_v27 = vadd.f32 1.0, %v6614_v36  ;;  %v6480_v36 = vld [vmem:[#allocation5 + $0x694] sm:$0xf0]  ;;  %v5460_v6 = vor.u32 %v6350_v22, %v5457_v17  ;;  %2869 = vmatpush.bf16.msrb.mxu2 %v5332_v57  ;;  %v3562_v57 = vand.u32 2147483648, %v7741_v40 }
 0x25c   :  { %v3552_v23 = vmul.f32 %v7770_v25, %v7741_v40  ;;  %6617 = vpow2.f32 %v6038_v55  ;;  %v2493_v58 = vpop.f32.mrf.mxu2  ;;  %v3499_v21 = vsel %vm7774_vm6, %v6612_v5, %v3495_v53  ;;  %v5968_v63 = vor.u32 %v6480_v36, %v5967_v44  ;;  %v6286_v5 = vld [vmem:[#allocation5 + $0x8c] sm:$0xf]  ;;  %v5201_v53 = vld [vmem:[#allocation5 + $0x98] sm:$0xf0] }
 0x25d   :  { %6619 = vrcp.f32 %v7772_v27  ;;  %v2494_v59 = vadd.f32 %v2493_v58, %v7711_v60  ;;  %v2542_v38 = vpop.f32.mrf.mxu3  ;;  %v2397_v29 = vpop.f32.mrf.mxu0  ;;  %v7792_v55 = vsel %vm7778_vm7, %v3503_v39, %v3499_v21  ;;  %v5204_v13 = vor.u32 %v6286_v5, %v5201_v53  ;;  %2918 = vmatpush.bf16.msrb.mxu3 %v5460_v6 }
 0x25e   :  { %9250 = vst [vmem:[#allocation22_spill] sm:$0xff] %v7792_v55  ;;  %v2398_v62 = vadd.f32 %v2397_v29, %v7646_v28  ;;  %v2446_v7 = vpop.f32.mrf.mxu1  ;;  %v3553_v52 = vsub.f32 1.0, %v3552_v23  ;;  %2771 = vmatpush.bf16.msrb.mxu0 %v5968_v63  ;;  %vm3557_vm8 = vweird.f32 %v7770_v25  ;;  %v3620_v6 = vand.u32 2147483647, %v7772_v27 }
 0x25f   :  { %v7797_v12 = vadd.f32 %v2542_v38, %v2494_v59  ;;  %2820 = vmatpush.bf16.msrb.mxu1 %v5204_v13  ;;  %v3622_v5 = vand.u32 2147483648, %v7772_v27  ;;  %vm7816_vm10 = vmor %vm3556_vm9, %vm3557_vm8  ;;  %vm3616_vm12 = vweird.f32 %v7772_v27  ;;  %v6476_v13 = vld [vmem:[#allocation5 + $0x674] sm:$0xf0] }
 0x260   :  { %v2447_v50 = vadd.f32 %v2446_v7, %v2398_v62  ;;  %v3554_v8 = vmul.f32 %v7770_v25, %v3553_v52  ;;  %v3560_v7 = vand.u32 2147483647, %v7741_v40  ;;  %vm7835_vm15 = vcmp.eq.f32.partialorder %v3620_v6, 8.507059e+37 }
 0x262   :  { %v6618_v28 = vpop.eup %6617  ;;  %v6042_v39 = vmul.f32 -1.442695, %v2447_v50  ;;  %v3555_v63 = vadd.f32 %v7770_v25, %v3554_v8  ;;  %vm3561_vm13 = vcmp.eq.f32.partialorder %v3560_v7, 8.507059e+37 }
 0x263   :  { %v6620_v44 = vpop.eup %6619  ;;  %v7800_v22 = vadd.f32 1.0, %v6618_v28  ;;  %v3563_v28 = vor.u32 1.1754944e-38, %v3562_v57 }
 0x264   :  { %6621 = vpow2.f32 %v6042_v39  ;;  %v2495_v17 = vpop.f32.mrf.mxu2  ;;  %v3612_v21 = vmul.f32 %v6620_v44, %v7772_v27  ;;  %vm3617_vm11 = vweird.f32 %v6620_v44  ;;  %v3559_v40 = vsel %vm7816_vm10, %v7770_v25, %v3555_v63  ;;  %v6314_v27 = vld [vmem:[#allocation5 + $0x16c] sm:$0xf] }
 0x265   :  { %6623 = vrcp.f32 %v7800_v22  ;;  %v2496_v59 = vadd.f32 %v2495_v17, %v7711_v60  ;;  %v2544_v23 = vpop.f32.mrf.mxu3  ;;  %v2400_v38 = vpop.f32.mrf.mxu0  ;;  %vm7831_vm14 = vmor %vm3616_vm12, %vm3617_vm11  ;;  %v3623_v25 = vor.u32 1.1754944e-38, %v3622_v5  ;;  %v7841_v57 = vsel %vm3561_vm13, %v3563_v28, %v3559_v40 }
 0x266   :  { %v2401_v29 = vadd.f32 %v2400_v38, %v7654_v37  ;;  %v2449_v50 = vpop.f32.mrf.mxu1  ;;  %v3613_v36 = vsub.f32 1.0, %v3612_v21  ;;  %9257 = vst [vmem:[#allocation47_spill] sm:$0xff] %v7841_v57  ;;  %vm3676_vm1 = vweird.f32 %v7800_v22 }
 0x267   :  { %v7810_v62 = vadd.f32 %v2544_v23, %v2496_v59 }
 0x268   :  { %v2450_v53 = vadd.f32 %v2449_v50, %v2401_v29  ;;  %2595 = vmatmul.bf16.gmra.mxu0 %v7020_v14  ;;  %v3614_v37 = vmul.f32 %v6620_v44, %v3613_v36  ;;  %v5313_v29 = vld [vmem:[#allocation5 + $0x178] sm:$0xf0]  ;;  %v5951_v50 = vld [vmem:[#allocation5 + $0x668] sm:$0xf] }
 0x269   :  { %2644 = vmatmul.bf16.gmra.mxu1 %v7022_v15  ;;  %2693 = vmatmul.bf16.gmra.mxu2 %v7124_v16  ;;  %v5316_v5 = vor.u32 %v6314_v27, %v5313_v29  ;;  %v5952_v58 = vor.u32 %v6476_v13, %v5951_v50 }
 0x26a   :  { %v6622_v52 = vpop.eup %6621  ;;  %v6046_v8 = vmul.f32 -1.442695, %v2450_v53  ;;  %2742 = vmatmul.bf16.gmra.mxu3 %v9221_v18  ;;  %v3615_v39 = vadd.f32 %v6620_v44, %v3614_v37  ;;  %v6346_v37 = vld [vmem:[#allocation5 + $0x26c] sm:$0xf] }
 0x26b   :  { %v7827_v17 = vpop.eup %6623  ;;  %v7829_v21 = vadd.f32 1.0, %v6622_v52  ;;  %v5441_v52 = vld [vmem:[#allocation5 + $0x278] sm:$0xf0]  ;;  %2870 = vmatpush.bf16.msrb.mxu2 %v5316_v5  ;;  %2772 = vmatpush.bf16.msrb.mxu0 %v5952_v58 }
 0x26c   :  { %v3672_v38 = vmul.f32 %v7827_v17, %v7800_v22  ;;  %6625 = vpow2.f32 %v6046_v8  ;;  %v2498_v63 = vpop.f32.mrf.mxu2  ;;  %v3619_v36 = vsel %vm7831_vm14, %v6620_v44, %v3615_v39  ;;  %v5444_v59 = vor.u32 %v6346_v37, %v5441_v52  ;;  %v6282_v44 = vld [vmem:[#allocation5 + $0x6c] sm:$0xf]  ;;  %v5185_v39 = vld [vmem:[#allocation5 + $0x78] sm:$0xf0] }
 0x26d   :  { %6627 = vrcp.f32 %v7829_v21  ;;  %v2499_v7 = vadd.f32 %v2498_v63, %v7711_v60  ;;  %v2547_v6 = vpop.f32.mrf.mxu3  ;;  %v2402_v53 = vpop.f32.mrf.mxu0  ;;  %v7849_v8 = vsel %vm7835_vm15, %v3623_v25, %v3619_v36  ;;  %v5188_v27 = vor.u32 %v6282_v44, %v5185_v39 }
 0x26e   :  { %9258 = vst [vmem:[#allocation49_spill] sm:$0xff] %v7849_v8  ;;  %v2403_v40 = vadd.f32 %v2402_v53, %v7658_v48  ;;  %v2451_v28 = vpop.f32.mrf.mxu1  ;;  %v3673_v29 = vsub.f32 1.0, %v3672_v38  ;;  %2919 = vmatpush.bf16.msrb.mxu3 %v5444_v59  ;;  %vm3677_vm0 = vweird.f32 %v7827_v17  ;;  %v3682_v37 = vand.u32 2147483648, %v7800_v22 }
 0x26f   :  { %v7854_v30 = vadd.f32 %v2547_v6, %v2499_v7  ;;  %2821 = vmatpush.bf16.msrb.mxu1 %v5188_v27  ;;  %v3740_v59 = vand.u32 2147483647, %v7829_v21  ;;  %v3742_v44 = vand.u32 2147483648, %v7829_v21  ;;  %vm7873_vm2 = vmor %vm3676_vm1, %vm3677_vm0  ;;  %vm3736_vm4 = vweird.f32 %v7829_v21  ;;  %v6472_v27 = vld [vmem:[#allocation5 + $0x654] sm:$0xf0] }
 0x270   :  { %v2452_v55 = vadd.f32 %v2451_v28, %v2403_v40  ;;  %v3674_v23 = vmul.f32 %v7827_v17, %v3673_v29  ;;  %v3680_v28 = vand.u32 2147483647, %v7800_v22 }
 0x271   :  { %vm7892_vm7 = vcmp.eq.f32.partialorder %v3740_v59, 8.507059e+37 }
 0x272   :  { %v6626_v48 = vpop.eup %6625  ;;  %v6050_v25 = vmul.f32 -1.442695, %v2452_v55  ;;  %v3675_v58 = vadd.f32 %v7827_v17, %v3674_v23  ;;  %vm3681_vm5 = vcmp.eq.f32.partialorder %v3680_v28, 8.507059e+37 }
 0x273   :  { %v6628_v50 = vpop.eup %6627  ;;  %v7857_v36 = vadd.f32 1.0, %v6626_v48  ;;  %v3683_v48 = vor.u32 1.1754944e-38, %v3682_v37 }
 0x274   :  { %6629 = vpow2.f32 %v6050_v25  ;;  %v2500_v53 = vpop.f32.mrf.mxu2  ;;  %v3732_v13 = vmul.f32 %v6628_v50, %v7829_v21  ;;  %vm3737_vm3 = vweird.f32 %v6628_v50  ;;  %v3679_v22 = vsel %vm7873_vm2, %v7827_v17, %v3675_v58  ;;  %v6310_v21 = vld [vmem:[#allocation5 + $0x14c] sm:$0xf] }
 0x275   :  { %6631 = vrcp.f32 %v7857_v36  ;;  %v2501_v7 = vadd.f32 %v2500_v53, %v7711_v60  ;;  %v2549_v38 = vpop.f32.mrf.mxu3  ;;  %v2405_v6 = vpop.f32.mrf.mxu0  ;;  %vm7888_vm6 = vmor %vm3736_vm4, %vm3737_vm3  ;;  %v3743_v17 = vor.u32 1.1754944e-38, %v3742_v44  ;;  %v7898_v37 = vsel %vm3681_vm5, %v3683_v48, %v3679_v22 }
 0x276   :  { %v2406_v5 = vadd.f32 %v2405_v6, %v7666_v41  ;;  %v2454_v55 = vpop.f32.mrf.mxu1  ;;  %v3733_v52 = vsub.f32 1.0, %v3732_v13  ;;  %9265 = vst [vmem:[#allocation57_spill] sm:$0xff] %v7898_v37  ;;  %vm3796_vm9 = vweird.f32 %v7857_v36 }
 0x277   :  { %v7867_v40 = vadd.f32 %v2549_v38, %v2501_v7 }
 0x278   :  { %v2455_v39 = vadd.f32 %v2454_v55, %v2406_v5  ;;  %2600 = vmatmul.bf16.gmra.mxu0 %v7032_v42  ;;  %v3734_v41 = vmul.f32 %v6628_v50, %v3733_v52  ;;  %v5297_v5 = vld [vmem:[#allocation5 + $0x158] sm:$0xf0]  ;;  %v5935_v55 = vld [vmem:[#allocation5 + $0x648] sm:$0xf] }
 0x279   :  { %2649 = vmatmul.bf16.gmra.mxu1 %v7034_v43  ;;  %2698 = vmatmul.bf16.gmra.mxu2 %v7140_v56  ;;  %v5300_v44 = vor.u32 %v6310_v21, %v5297_v5  ;;  %v5936_v63 = vor.u32 %v6472_v27, %v5935_v55 }
 0x27a   :  { %v6630_v29 = vpop.eup %6629  ;;  %v6054_v23 = vmul.f32 -1.442695, %v2455_v39  ;;  %2747 = vmatmul.bf16.gmra.mxu3 %v9224_v4  ;;  %v3735_v25 = vadd.f32 %v6628_v50, %v3734_v41  ;;  %v6342_v41 = vld [vmem:[#allocation5 + $0x24c] sm:$0xf] }
 0x27b   :  { %v7884_v53 = vpop.eup %6631  ;;  %v7886_v13 = vadd.f32 1.0, %v6630_v29  ;;  %v5425_v29 = vld [vmem:[#allocation5 + $0x258] sm:$0xf0]  ;;  %2871 = vmatpush.bf16.msrb.mxu2 %v5300_v44  ;;  %2773 = vmatpush.bf16.msrb.mxu0 %v5936_v63 }
 0x27c   :  { %v3792_v6 = vmul.f32 %v7884_v53, %v7857_v36  ;;  %6633 = vpow2.f32 %v6054_v23  ;;  %v2503_v58 = vpop.f32.mrf.mxu2  ;;  %v3739_v52 = vsel %vm7888_vm6, %v6628_v50, %v3735_v25  ;;  %v5428_v7 = vor.u32 %v6342_v41, %v5425_v29  ;;  %v6278_v50 = vld [vmem:[#allocation5 + $0x4c] sm:$0xf]  ;;  %v5169_v25 = vld [vmem:[#allocation5 + $0x58] sm:$0xf0] }
 0x27d   :  { %6635 = vrcp.f32 %v7886_v13  ;;  %v2504_v28 = vadd.f32 %v2503_v58, %v7711_v60  ;;  %v2552_v59 = vpop.f32.mrf.mxu3  ;;  %v2407_v39 = vpop.f32.mrf.mxu0  ;;  %v7906_v23 = vsel %vm7892_vm7, %v3743_v17, %v3739_v52  ;;  %v5172_v21 = vor.u32 %v6278_v50, %v5169_v25 }
 0x27e   :  { %9266 = vst [vmem:[#allocation17_spill] sm:$0xff] %v7906_v23  ;;  %v2408_v22 = vadd.f32 %v2407_v39, %v7670_v34  ;;  %v2456_v48 = vpop.f32.mrf.mxu1  ;;  %v3793_v5 = vsub.f32 1.0, %v3792_v6  ;;  %2920 = vmatpush.bf16.msrb.mxu3 %v5428_v7  ;;  %vm3797_vm8 = vweird.f32 %v7884_v53  ;;  %v3802_v41 = vand.u32 2147483648, %v7857_v36 }
 0x27f   :  { %v7911_v57 = vadd.f32 %v2552_v59, %v2504_v28  ;;  %2822 = vmatpush.bf16.msrb.mxu1 %v5172_v21  ;;  %v3860_v7 = vand.u32 2147483647, %v7886_v13  ;;  %v3862_v50 = vand.u32 2147483648, %v7886_v13  ;;  %vm7930_vm10 = vmor %vm3796_vm9, %vm3797_vm8  ;;  %vm3856_vm12 = vweird.f32 %v7886_v13  ;;  %v6468_v21 = vld [vmem:[#allocation5 + $0x634] sm:$0xf0] }
 0x280   :  { %v2457_v8 = vadd.f32 %v2456_v48, %v2408_v22  ;;  %v3794_v38 = vmul.f32 %v7884_v53, %v3793_v5  ;;  %v3800_v48 = vand.u32 2147483647, %v7857_v36 }
 0x281   :  { %vm7949_vm15 = vcmp.eq.f32.partialorder %v3860_v7, 8.507059e+37 }
 0x282   :  { %v6634_v34 = vpop.eup %6633  ;;  %v6058_v17 = vmul.f32 -1.442695, %v2457_v8  ;;  %v3795_v63 = vadd.f32 %v7884_v53, %v3794_v38  ;;  %vm3801_vm13 = vcmp.eq.f32.partialorder %v3800_v48, 8.507059e+37 }
 0x283   :  { %v6636_v55 = vpop.eup %6635  ;;  %v7914_v52 = vadd.f32 1.0, %v6634_v34  ;;  %v3803_v34 = vor.u32 1.1754944e-38, %v3802_v41 }
 0x284   :  { %6637 = vpow2.f32 %v6058_v17  ;;  %v2505_v39 = vpop.f32.mrf.mxu2  ;;  %v3852_v27 = vmul.f32 %v6636_v55, %v7886_v13  ;;  %vm3857_vm11 = vweird.f32 %v6636_v55  ;;  %v3799_v36 = vsel %vm7930_vm10, %v7884_v53, %v3795_v63  ;;  %v6306_v13 = vld [vmem:[#allocation5 + $0x12c] sm:$0xf] }
 0x285   :  { %6639 = vrcp.f32 %v7914_v52  ;;  %v2506_v28 = vadd.f32 %v2505_v39, %v7711_v60  ;;  %v2554_v6 = vpop.f32.mrf.mxu3  ;;  %v2410_v59 = vpop.f32.mrf.mxu0  ;;  %vm7945_vm14 = vmor %vm3856_vm12, %vm3857_vm11  ;;  %v3863_v53 = vor.u32 1.1754944e-38, %v3862_v50  ;;  %v7955_v41 = vsel %vm3801_vm13, %v3803_v34, %v3799_v36 }
 0x286   :  { %v2411_v44 = vadd.f32 %v2410_v59, %v7678_v9  ;;  %v2459_v8 = vpop.f32.mrf.mxu1  ;;  %v3853_v29 = vsub.f32 1.0, %v3852_v27  ;;  %9273 = vst [vmem:[#allocation75_spill] sm:$0xff] %v7955_v41  ;;  %vm3916_vm1 = vweird.f32 %v7914_v52 }
 0x287   :  { %v7924_v22 = vadd.f32 %v2554_v6, %v2506_v28 }
 0x288   :  { %v2460_v25 = vadd.f32 %v2459_v8, %v2411_v44  ;;  %2605 = vmatmul.bf16.gmra.mxu0 %v7044_v10  ;;  %v3854_v9 = vmul.f32 %v6636_v55, %v3853_v29  ;;  %v5281_v44 = vld [vmem:[#allocation5 + $0x138] sm:$0xf0]  ;;  %v5919_v8 = vld [vmem:[#allocation5 + $0x628] sm:$0xf] }
 0x289   :  { %2654 = vmatmul.bf16.gmra.mxu1 %v7046_v11  ;;  %2703 = vmatmul.bf16.gmra.mxu2 %v7156_v33  ;;  %v5284_v50 = vor.u32 %v6306_v13, %v5281_v44  ;;  %v5920_v58 = vor.u32 %v6468_v21, %v5919_v8  ;;  %v5903_v21 = vld [vmem:[#allocation5 + $0x608] sm:$0xf] }
 0x28a   :  { %v6638_v5 = vpop.eup %6637  ;;  %v6062_v38 = vmul.f32 -1.442695, %v2460_v25  ;;  %2752 = vmatmul.bf16.gmra.mxu3 %v9227_v0  ;;  %v3855_v17 = vadd.f32 %v6636_v55, %v3854_v9  ;;  %v6338_v9 = vld [vmem:[#allocation5 + $0x22c] sm:$0xf] }
 0x28b   :  { %v7941_v39 = vpop.eup %6639  ;;  %v7943_v27 = vadd.f32 1.0, %v6638_v5  ;;  %v5409_v5 = vld [vmem:[#allocation5 + $0x238] sm:$0xf0]  ;;  %2872 = vmatpush.bf16.msrb.mxu2 %v5284_v50  ;;  %2774 = vmatpush.bf16.msrb.mxu0 %v5920_v58  ;;  %v6302_v50 = vld [vmem:[#allocation5 + $0x10c] sm:$0xf] }
 0x28c   :  { %v3912_v59 = vmul.f32 %v7941_v39, %v7914_v52  ;;  %6641 = vpow2.f32 %v6062_v38  ;;  %v2508_v63 = vpop.f32.mrf.mxu2  ;;  %v3859_v29 = vsel %vm7945_vm14, %v6636_v55, %v3855_v17  ;;  %v5412_v28 = vor.u32 %v6338_v9, %v5409_v5  ;;  %v6274_v55 = vld [vmem:[#allocation5 + $0x2c] sm:$0xf]  ;;  %v5153_v17 = vld [vmem:[#allocation5 + $0x38] sm:$0xf0] }
 0x28d   :  { %6643 = vrcp.f32 %v7943_v27  ;;  %v2509_v48 = vadd.f32 %v2508_v63, %v7711_v60  ;;  %v2557_v7 = vpop.f32.mrf.mxu3  ;;  %v2412_v25 = vpop.f32.mrf.mxu0  ;;  %v7963_v38 = vsel %vm7949_vm15, %v3863_v53, %v3859_v29  ;;  %v5156_v13 = vor.u32 %v6274_v55, %v5153_v17  ;;  %v5393_v55 = vld [vmem:[#allocation5 + $0x218] sm:$0xf0] }
 0x28e   :  { %9274 = vst [vmem:[#allocation76_spill] sm:$0xff] %v7963_v38  ;;  %v2413_v36 = vadd.f32 %v2412_v25, %v7682_v20  ;;  %v2461_v34 = vpop.f32.mrf.mxu1  ;;  %v3913_v44 = vsub.f32 1.0, %v3912_v59  ;;  %2921 = vmatpush.bf16.msrb.mxu3 %v5412_v28  ;;  %v3920_v25 = vand.u32 2147483647, %v7914_v52  ;;  %v5265_v59 = vld [vmem:[#allocation5 + $0x118] sm:$0xf0]  ;;  %vm3917_vm0 = vweird.f32 %v7941_v39 }
 0x28f   :  { %v7968_v37 = vadd.f32 %v2557_v7, %v2509_v48  ;;  %2823 = vmatpush.bf16.msrb.mxu1 %v5156_v13  ;;  %v3922_v48 = vand.u32 2147483648, %v7914_v52  ;;  %v6334_v28 = vld [vmem:[#allocation5 + $0x20c] sm:$0xf]  ;;  %v5137_v63 = vld [vmem:[#allocation5 + $0x18] sm:$0xf0]  ;;  %vm7997_vm3 = vmor %vm3916_vm1, %vm3917_vm0  ;;  %vm3976_vm5 = vweird.f32 %v7943_v27 }
 0x290   :  { %v2462_v23 = vadd.f32 %v2461_v34, %v2413_v36  ;;  %v3914_v29 = vmul.f32 %v7941_v39, %v3913_v44  ;;  %v5268_v36 = vor.u32 %v6302_v50, %v5265_v59  ;;  %v6464_v34 = vld [vmem:[#allocation5 + $0x614] sm:$0xf0]  ;;  %v3982_v59 = vand.u32 2147483648, %v7943_v27 }
 0x291   :  { %v5904_v44 = vor.u32 %v6464_v34, %v5903_v21  ;;  %v9275_v21 = vld [vmem:[#allocation53_spill] sm:$0xff]  ;;  %vm8001_vm4 = vcmp.eq.f32.partialorder %v3920_v25, 8.507059e+37  ;;  %v3923_v52 = vor.u32 1.1754944e-38, %v3922_v48 }
 0x292   :  { %v6642_v6 = vpop.eup %6641  ;;  %v6066_v53 = vmul.f32 -1.442695, %v2462_v23  ;;  %2873 = vmatpush.bf16.msrb.mxu2 %v5268_v36 }
 0x293   :  { %v7970_v20 = vpop.eup %6643  ;;  %v7972_v8 = vadd.f32 1.0, %v6642_v6  ;;  %v5396_v6 = vor.u32 %v6334_v28, %v5393_v55  ;;  %2775 = vmatpush.bf16.msrb.mxu0 %v5904_v44  ;;  %v5889_v44 = vld [vmem:[#allocation5 + $0x5f8] sm:$0xf0] }
 0x294   :  { %6645 = vpow2.f32 %v6066_v53  ;;  %v2510_v7 = vpop.f32.mrf.mxu2  ;;  %v3972_v58 = vmul.f32 %v7970_v20, %v7943_v27  ;;  %v6270_v53 = vld [vmem:[#allocation5 + $0xc] sm:$0xf]  ;;  %vm3977_vm2 = vweird.f32 %v7970_v20 }
 0x295   :  { %6647 = vrcp.f32 %v7972_v8  ;;  %v2511_v23 = vadd.f32 %v2510_v7, %v7711_v60  ;;  %v2559_v9 = vpop.f32.mrf.mxu3  ;;  %v2415_v5 = vpop.f32.mrf.mxu0  ;;  %v5140_v38 = vor.u32 %v6270_v53, %v5137_v63  ;;  %v3915_v7 = vadd.f32 %v7941_v39, %v3914_v29  ;;  %2922 = vmatpush.bf16.msrb.mxu3 %v5396_v6  ;;  %vm8018_vm6 = vmor %vm3976_vm5, %vm3977_vm2  ;;  %v6394_v6 = vld [vmem:[#allocation5 + $0x3ec] sm:$0xf] }
 0x296   :  { %v2416_v17 = vadd.f32 %v2415_v5, %v7690_v35  ;;  %v2464_v13 = vpop.f32.mrf.mxu1  ;;  %v3973_v0 = vsub.f32 1.0, %v3972_v58  ;;  %v3980_v35 = vand.u32 2147483647, %v7943_v27  ;;  %vm4036_vm9 = vweird.f32 %v7972_v8 }
 0x297   :  { %v7983_v41 = vadd.f32 %v2559_v9, %v2511_v23  ;;  %2824 = vmatpush.bf16.msrb.mxu1 %v5140_v38  ;;  %v3919_v36 = vsel %vm7997_vm3, %v7941_v39, %v3915_v7  ;;  %v3983_v39 = vor.u32 1.1754944e-38, %v3982_v59  ;;  %v6017_v59 = vld [vmem:[#allocation5 + $0x6f8] sm:$0xf0] }
 0x298   :  { %v2465_v50 = vadd.f32 %v2464_v13, %v2416_v17  ;;  %2610 = vmatmul.bf16.gmra.mxu0 %v7056_v46  ;;  %v3974_v23 = vmul.f32 %v7970_v20, %v3973_v0  ;;  %vm8022_vm7 = vcmp.eq.f32.partialorder %v3980_v35, 8.507059e+37  ;;  %v6458_v13 = vld [vmem:[#allocation5 + $0x5ec] sm:$0xf] }
 0x299   :  { %2659 = vmatmul.bf16.gmra.mxu1 %v7058_v47  ;;  %2708 = vmatmul.bf16.gmra.mxu2 %v9275_v21  ;;  %v5892_v35 = vor.u32 %v6458_v13, %v5889_v44 }
 0x29a   :  { %v6646_v63 = vpop.eup %6645  ;;  %v6070_v29 = vmul.f32 -1.442695, %v2465_v50  ;;  %2757 = vmatmul.bf16.gmra.mxu3 %v9230_v32  ;;  %v3975_v34 = vadd.f32 %v7970_v20, %v3974_v23  ;;  %v5633_v23 = vld [vmem:[#allocation5 + $0x3f8] sm:$0xf0] }
 0x29b   :  { %v8005_v5 = vpop.eup %6647  ;;  %v8007_v0 = vadd.f32 1.0, %v6646_v63  ;;  %v6490_v63 = vld [vmem:[#allocation5 + $0x6ec] sm:$0xf]  ;;  %v5636_v32 = vor.u32 %v6394_v6, %v5633_v23  ;;  %3062 = vmatpush.bf16.msra.mxu2 %v5892_v35 }
 0x29c   :  { %v4032_v25 = vmul.f32 %v8005_v5, %v7972_v8  ;;  %6649 = vpow2.f32 %v6070_v29  ;;  %v2513_v28 = vpop.f32.mrf.mxu2  ;;  %v3979_v53 = vsel %vm8018_vm6, %v7970_v20, %v3975_v34  ;;  %v8034_v29 = vsel %vm8001_vm4, %v3923_v52, %v3919_v36  ;;  %v6426_v20 = vld [vmem:[#allocation5 + $0x4ec] sm:$0xf]  ;;  %v5761_v34 = vld [vmem:[#allocation5 + $0x4f8] sm:$0xf0] }
 0x29d   :  { %6651 = vrcp.f32 %v8007_v0  ;;  %v2514_v27 = vadd.f32 %v2513_v28, %v7711_v60  ;;  %v2562_v55 = vpop.f32.mrf.mxu3  ;;  %v2417_v17 = vpop.f32.mrf.mxu0  ;;  %9284 = vst [vmem:[#allocation53_spill] sm:$0xff] %v8034_v29  ;;  %v8038_v58 = vsel %vm8022_vm7, %v3983_v39, %v3979_v53  ;;  %v6020_v48 = vor.u32 %v6490_v63, %v6017_v59  ;;  %2964 = vmatpush.bf16.msra.mxu0 %v5636_v32 }
 0x29e   :  { %v2418_v7 = vadd.f32 %v2417_v17, %v7694_v45  ;;  %v2466_v50 = vpop.f32.mrf.mxu1  ;;  %9285 = vst [vmem:[#allocation77_spill] sm:$0xff] %v8038_v58  ;;  %v5764_v13 = vor.u32 %v6426_v20, %v5761_v34  ;;  %v4033_v44 = vsub.f32 1.0, %v4032_v25  ;;  %vm4037_vm8 = vweird.f32 %v8005_v5 }
 0x29f   :  { %v8040_v28 = vadd.f32 %v2562_v55, %v2514_v27  ;;  %3111 = vmatpush.bf16.msra.mxu3 %v6020_v48  ;;  %v4040_v27 = vand.u32 2147483647, %v7972_v8  ;;  %v4100_v35 = vand.u32 2147483647, %v8007_v0  ;;  %vm8059_vm10 = vmor %vm4036_vm9, %vm4037_vm8  ;;  %v4102_v34 = vand.u32 2147483648, %v8007_v0 }
 0x2a0   :  { %v2467_v17 = vadd.f32 %v2466_v50, %v2418_v7  ;;  %3013 = vmatpush.bf16.msra.mxu1 %v5764_v13  ;;  %v4034_v36 = vmul.f32 %v8005_v5, %v4033_v44  ;;  %v4042_v50 = vand.u32 2147483648, %v7972_v8  ;;  %v9288_v13 = vld [vmem:[#allocation36_spill] sm:$0xff]  ;;  %vm4096_vm14 = vweird.f32 %v8007_v0 }
 0x2a1   :  { %v9290_v8 = vld [vmem:[#allocation56_spill] sm:$0xff]  ;;  %vm4041_vm12 = vcmp.eq.f32.partialorder %v4040_v27, 8.507059e+37  ;;  %vm8070_vm13 = vcmp.eq.f32.partialorder %v4100_v35, 8.507059e+37 }
 0x2a2   :  { %v6650_v9 = vpop.eup %6649  ;;  %v6074_v52 = vmul.f32 -1.442695, %v2467_v17  ;;  %v4035_v6 = vadd.f32 %v8005_v5, %v4034_v36  ;;  %v6390_v27 = vld [vmem:[#allocation5 + $0x3cc] sm:$0xf] }
 0x2a3   :  { %v6652_v38 = vpop.eup %6651  ;;  %v8045_v39 = vadd.f32 1.0, %v6650_v9  ;;  %v9289_v9 = vld [vmem:[#allocation37_spill] sm:$0xff] }
 0x2a4   :  { %6653 = vpow2.f32 %v6074_v52  ;;  %v2515_v55 = vpop.f32.mrf.mxu2  ;;  %v4092_v25 = vmul.f32 %v6652_v38, %v8007_v0  ;;  %v4039_v44 = vsel %vm8059_vm10, %v8005_v5, %v4035_v6  ;;  %vm4097_vm11 = vweird.f32 %v6652_v38 }
 0x2a5   :  { %6655 = vrcp.f32 %v8045_v39  ;;  %v2516_v32 = vadd.f32 %v2515_v55, %v7711_v60  ;;  %v2564_v53 = vpop.f32.mrf.mxu3  ;;  %v2420_v7 = vpop.f32.mrf.mxu0  ;;  %v4043_v52 = vor.u32 1.1754944e-38, %v4042_v50  ;;  %v5617_v50 = vld [vmem:[#allocation5 + $0x3d8] sm:$0xf0]  ;;  %vm8083_vm15 = vmor %vm4096_vm14, %vm4097_vm11  ;;  %vm4156_vm1 = vweird.f32 %v8045_v39 }
 0x2a6   :  { %v2421_v23 = vadd.f32 %v2420_v7, %v7702_v54  ;;  %v2469_v63 = vpop.f32.mrf.mxu1  ;;  %v4093_v59 = vsub.f32 1.0, %v4092_v25 }
 0x2a7   :  { %v8057_v48 = vadd.f32 %v2564_v53, %v2516_v32  ;;  %v6454_v32 = vld [vmem:[#allocation5 + $0x5cc] sm:$0xf]  ;;  %v5873_v53 = vld [vmem:[#allocation5 + $0x5d8] sm:$0xf0]  ;;  %v8080_v35 = vsel %vm4041_vm12, %v4043_v52, %v4039_v44 }
 0x2a8   :  { %v2470_v17 = vadd.f32 %v2469_v63, %v2421_v23  ;;  %2615 = vmatmul.bf16.gmra.mxu0 %v9288_v13  ;;  %v4094_v54 = vmul.f32 %v6652_v38, %v4093_v59  ;;  %v5876_v23 = vor.u32 %v6454_v32, %v5873_v53  ;;  %9293 = vst [vmem:[#allocation36_spill] sm:$0xff] %v8080_v35  ;;  %v4103_v59 = vor.u32 1.1754944e-38, %v4102_v34  ;;  %v6422_v63 = vld [vmem:[#allocation5 + $0x4cc] sm:$0xf]  ;;  %v5985_v35 = vld [vmem:[#allocation5 + $0x6b8] sm:$0xf0] }
 0x2a9   :  { %2664 = vmatmul.bf16.gmra.mxu1 %v9289_v9  ;;  %2713 = vmatmul.bf16.gmra.mxu2 %v9290_v8 }
 0x2aa   :  { %v6654_v55 = vpop.eup %6653  ;;  %v6078_v25 = vmul.f32 -1.442695, %v2470_v17  ;;  %2762 = vmatmul.bf16.gmra.mxu3 %v9233_v3  ;;  %v4095_v7 = vadd.f32 %v6652_v38, %v4094_v54  ;;  %v5620_v17 = vor.u32 %v6390_v27, %v5617_v50  ;;  %v6486_v54 = vld [vmem:[#allocation5 + $0x6cc] sm:$0xf]  ;;  %3063 = vmatpush.bf16.msra.mxu2 %v5876_v23 }
 0x2ab   :  { %v8076_v5 = vpop.eup %6655  ;;  %v8078_v6 = vadd.f32 1.0, %v6654_v55  ;;  %v6001_v55 = vld [vmem:[#allocation5 + $0x6d8] sm:$0xf0] }
 0x2ac   :  { %v4152_v20 = vmul.f32 %v8076_v5, %v8045_v39  ;;  %6657 = vpow2.f32 %v6078_v25  ;;  %v2518_v0 = vpop.f32.mrf.mxu2  ;;  %v4099_v32 = vsel %vm8083_vm15, %v6652_v38, %v4095_v7  ;;  %v6004_v45 = vor.u32 %v6486_v54, %v6001_v55  ;;  %2965 = vmatpush.bf16.msra.mxu0 %v5620_v17 }
 0x2ad   :  { %6659 = vrcp.f32 %v8078_v6  ;;  %v2519_v44 = vadd.f32 %v2518_v0, %v7711_v60  ;;  %v2567_v52 = vpop.f32.mrf.mxu3  ;;  %v2422_v53 = vpop.f32.mrf.mxu0  ;;  %v8095_v34 = vsel %vm8070_vm13, %v4103_v59, %v4099_v32  ;;  %v5745_v0 = vld [vmem:[#allocation5 + $0x4d8] sm:$0xf0]  ;;  %v4160_v17 = vand.u32 2147483647, %v8045_v39 }
 0x2ae   :  { %9296 = vst [vmem:[#allocation37_spill] sm:$0xff] %v8095_v34  ;;  %v2423_v25 = vadd.f32 %v2422_v53, %v7705_v24  ;;  %v2471_v27 = vpop.f32.mrf.mxu1  ;;  %v4153_v38 = vsub.f32 1.0, %v4152_v20  ;;  %3112 = vmatpush.bf16.msra.mxu3 %v6004_v45  ;;  %v5748_v23 = vor.u32 %v6422_v63, %v5745_v0  ;;  %vm4157_vm0 = vweird.f32 %v8076_v5 }
 0x2af   :  { %v8100_v7 = vadd.f32 %v2567_v52, %v2519_v44  ;;  %v4162_v45 = vand.u32 2147483648, %v8045_v39  ;;  %vm8121_vm2 = vmor %vm4156_vm1, %vm4157_vm0  ;;  %vm8130_vm4 = vcmp.eq.f32.partialorder %v4160_v17, 8.507059e+37  ;;  %vm4216_vm6 = vweird.f32 %v8078_v6 }
 0x2b0   :  { %v2472_v29 = vadd.f32 %v2471_v27, %v2423_v25  ;;  %v4154_v54 = vmul.f32 %v8076_v5, %v4153_v38  ;;  %3014 = vmatpush.bf16.msra.mxu1 %v5748_v23  ;;  %v4220_v25 = vand.u32 2147483647, %v8078_v6  ;;  %v4222_v23 = vand.u32 2147483648, %v8078_v6 }
 0x2b2   :  { %v6658_v36 = vpop.eup %6657  ;;  %v6082_v59 = vmul.f32 -1.442695, %v2472_v29  ;;  %v4155_v53 = vadd.f32 %v8076_v5, %v4154_v54  ;;  %vm8134_vm5 = vcmp.eq.f32.partialorder %v4220_v25, 8.507059e+37  ;;  %v4223_v25 = vor.u32 1.1754944e-38, %v4222_v23 }
 0x2b3   :  { %v6660_v55 = vpop.eup %6659  ;;  %v8103_v24 = vadd.f32 1.0, %v6658_v36 }
 0x2b4   :  { %6661 = vpow2.f32 %v6082_v59  ;;  %v2520_v32 = vpop.f32.mrf.mxu2  ;;  %v4212_v20 = vmul.f32 %v6660_v55, %v8078_v6  ;;  %v9297_v59 = vld [vmem:[#allocation40_spill] sm:$0xff]  ;;  %vm4217_vm3 = vweird.f32 %v6660_v55  ;;  %v4159_v39 = vsel %vm8121_vm2, %v8076_v5, %v4155_v53  ;;  %v5601_v53 = vld [vmem:[#allocation5 + $0x3b8] sm:$0xf0] }
 0x2b5   :  { %6663 = vrcp.f32 %v8103_v24  ;;  %v2521_v44 = vadd.f32 %v2520_v32, %v7711_v60  ;;  %v2569_v52 = vpop.f32.mrf.mxu3  ;;  %v2581_v29 = vpop.f32.mrf.mxu0  ;;  %v9301_v32 = vld [vmem:[#allocation16_spill] sm:$0xff]  ;;  %vm4218_vm7 = vmor %vm4216_vm6, %vm4217_vm3  ;;  %vm4276_vm10 = vweird.f32 %v8103_v24 }
 0x2b6   :  { %v2582_v27 = vadd.f32 %v2581_v29, %v7716_v49  ;;  %v2630_v38 = vpop.f32.mrf.mxu1  ;;  %v4213_v63 = vsub.f32 1.0, %v4212_v20  ;;  %v9300_v49 = vld [vmem:[#allocation15_spill] sm:$0xff] }
 0x2b7   :  { %v8114_v0 = vadd.f32 %v2569_v52, %v2521_v44  ;;  %v4163_v44 = vor.u32 1.1754944e-38, %v4162_v45  ;;  %v6482_v45 = vld [vmem:[#allocation5 + $0x6ac] sm:$0xf] }
 0x2b8   :  { %v2631_v36 = vadd.f32 %v2630_v38, %v2582_v27  ;;  %2776 = vmatmul.bf16.vlgmr.msrb.gmra.mxu0 %v9297_v59  ;;  %v4214_v54 = vmul.f32 %v6660_v55, %v4213_v63  ;;  %v6450_v27 = vld [vmem:[#allocation5 + $0x5ac] sm:$0xf]  ;;  %v5857_v38 = vld [vmem:[#allocation5 + $0x5b8] sm:$0xf0]  ;;  %v5988_v34 = vor.u32 %v6482_v45, %v5985_v35 }
 0x2b9   :  { %2825 = vmatmul.bf16.vlgmr.msrb.gmra.mxu1 %v9300_v49  ;;  %2874 = vmatmul.bf16.vlgmr.msrb.gmra.mxu2 %v9301_v32  ;;  %v6386_v63 = vld [vmem:[#allocation5 + $0x3ac] sm:$0xf]  ;;  %v5860_v17 = vor.u32 %v6450_v27, %v5857_v38 }
 0x2ba   :  { %v6662_v29 = vpop.eup %6661  ;;  %2923 = vmatmul.bf16.vlgmr.msrb.gmra.mxu3 %v9236_v31  ;;  %v4215_v49 = vadd.f32 %v6660_v55, %v4214_v54  ;;  %v5604_v50 = vor.u32 %v6386_v63, %v5601_v53  ;;  %v8149_v54 = vsel %vm8130_vm4, %v4163_v44, %v4159_v39  ;;  %v5729_v44 = vld [vmem:[#allocation5 + $0x4b8] sm:$0xf0] }
 0x2bb   :  { %v8140_v60 = vpop.eup %6663  ;;  %v8142_v5 = vadd.f32 1.0, %v6662_v29  ;;  %9306 = vst [vmem:[#allocation56_spill] sm:$0xff] %v8149_v54  ;;  %3064 = vmatpush.bf16.msra.mxu2 %v5860_v17  ;;  %3113 = vmatpush.bf16.msra.mxu3 %v5988_v34  ;;  %v4282_v34 = vand.u32 2147483648, %v8103_v24 }
 0x2bc   :  { %v4272_v32 = vmul.f32 %v8140_v60, %v8103_v24  ;;  %v2679_v31 = vpop.f32.mrf.mxu2  ;;  %v4219_v6 = vsel %vm4218_vm7, %v6660_v55, %v4215_v49  ;;  %2966 = vmatpush.bf16.msra.mxu0 %v5604_v50  ;;  %vm4277_vm8 = vweird.f32 %v8140_v60 }
 0x2bd   :  { %6665 = vrcp.f32 %v8142_v5  ;;  %v2680_v29 = vadd.f32 %v2679_v31, %v2631_v36  ;;  %v2728_v27 = vpop.f32.mrf.mxu3  ;;  %v2583_v38 = vpop.f32.mrf.mxu0  ;;  %v8154_v23 = vsel %vm8134_vm5, %v4223_v25, %v4219_v6  ;;  %v6418_v36 = vld [vmem:[#allocation5 + $0x4ac] sm:$0xf]  ;;  %vm8173_vm11 = vmor %vm4276_vm10, %vm4277_vm8  ;;  %vm4336_vm12 = vweird.f32 %v8142_v5 }
 0x2be   :  { %9307 = vst [vmem:[#allocation40_spill] sm:$0xff] %v8154_v23  ;;  %v2584_v58 = vadd.f32 %v2583_v38, %v7723_v51  ;;  %v2632_v63 = vpop.f32.mrf.mxu1  ;;  %v4273_v20 = vsub.f32 1.0, %v4272_v32  ;;  %v5732_v17 = vor.u32 %v6418_v36, %v5729_v44  ;;  %v4280_v51 = vand.u32 2147483647, %v8103_v24 }
 0x2bf   :  { %v8159_v55 = vadd.f32 %v2728_v27, %v2680_v29  ;;  %v4342_v32 = vand.u32 2147483648, %v8142_v5  ;;  %v4283_v24 = vor.u32 1.1754944e-38, %v4282_v34 }
 0x2c0   :  { %v2633_v49 = vadd.f32 %v2632_v63, %v2584_v58  ;;  %3015 = vmatpush.bf16.msra.mxu1 %v5732_v17  ;;  %v4274_v35 = vmul.f32 %v8140_v60, %v4273_v20  ;;  %v9308_v20 = vld [vmem:[#allocation43_spill] sm:$0xff]  ;;  %v9312_v17 = vld [vmem:[#allocation20_spill] sm:$0xff]  ;;  %vm8181_vm13 = vcmp.eq.f32.partialorder %v4280_v51, 8.507059e+37 }
 0x2c2   :  { %v4275_v29 = vadd.f32 %v8140_v60, %v4274_v35 }
 0x2c3   :  { %v6666_v52 = vpop.eup %6665 }
 0x2c4   :  { %v2681_v53 = vpop.f32.mrf.mxu2  ;;  %v4332_v50 = vmul.f32 %v6666_v52, %v8142_v5  ;;  %vm4337_vm9 = vweird.f32 %v6666_v52 }
 0x2c5   :  { %v2682_v45 = vadd.f32 %v2681_v53, %v2633_v49  ;;  %v2730_v25 = vpop.f32.mrf.mxu3  ;;  %v2586_v31 = vpop.f32.mrf.mxu0  ;;  %v9311_v49 = vld [vmem:[#allocation19_spill] sm:$0xff]  ;;  %vm8185_vm14 = vmor %vm4336_vm12, %vm4337_vm9 }
 0x2c6   :  { %v2587_v58 = vadd.f32 %v2586_v31, %v7738_v2  ;;  %v2635_v6 = vpop.f32.mrf.mxu1  ;;  %v4333_v27 = vsub.f32 1.0, %v4332_v50  ;;  %v4340_v2 = vand.u32 2147483647, %v8142_v5  ;;  %v4343_v50 = vor.u32 1.1754944e-38, %v4342_v32  ;;  %v6382_v31 = vld [vmem:[#allocation5 + $0x38c] sm:$0xf] }
 0x2c7   :  { %v8169_v38 = vadd.f32 %v2730_v25, %v2682_v45  ;;  %v6446_v45 = vld [vmem:[#allocation5 + $0x58c] sm:$0xf]  ;;  %v5841_v25 = vld [vmem:[#allocation5 + $0x598] sm:$0xf0]  ;;  %v4279_v5 = vsel %vm8173_vm11, %v8140_v60, %v4275_v29 }
 0x2c8   :  { %v2636_v63 = vadd.f32 %v2635_v6, %v2587_v58  ;;  %2781 = vmatmul.bf16.gmra.mxu0 %v9308_v20  ;;  %v4334_v44 = vmul.f32 %v6666_v52, %v4333_v27  ;;  %v5844_v51 = vor.u32 %v6446_v45, %v5841_v25  ;;  %v5585_v6 = vld [vmem:[#allocation5 + $0x398] sm:$0xf0]  ;;  %v6478_v27 = vld [vmem:[#allocation5 + $0x68c] sm:$0xf]  ;;  %vm4341_vm15 = vcmp.eq.f32.partialorder %v4340_v2, 8.507059e+37 }
 0x2c9   :  { %2830 = vmatmul.bf16.gmra.mxu1 %v9311_v49  ;;  %2879 = vmatmul.bf16.gmra.mxu2 %v9312_v17  ;;  %v5969_v49 = vld [vmem:[#allocation5 + $0x698] sm:$0xf0]  ;;  %v5588_v17 = vor.u32 %v6382_v31, %v5585_v6  ;;  %v8197_v36 = vsel %vm8181_vm13, %v4283_v24, %v4279_v5 }
 0x2ca   :  { %2928 = vmatmul.bf16.gmra.mxu3 %v6996_v26  ;;  %v4335_v58 = vadd.f32 %v6666_v52, %v4334_v44  ;;  %v5972_v39 = vor.u32 %v6478_v27, %v5969_v49  ;;  %3065 = vmatpush.bf16.msra.mxu2 %v5844_v51  ;;  %v5713_v2 = vld [vmem:[#allocation5 + $0x498] sm:$0xf0]  ;;  %v6442_v51 = vld [vmem:[#allocation5 + $0x56c] sm:$0xf] }
 0x2cb   :  { %2967 = vmatpush.bf16.msra.mxu0 %v5588_v17  ;;  %v5825_v6 = vld [vmem:[#allocation5 + $0x578] sm:$0xf0]  ;;  %v6378_v27 = vld [vmem:[#allocation5 + $0x36c] sm:$0xf] }
 0x2cc   :  { %v2684_v34 = vpop.f32.mrf.mxu2  ;;  %v4339_v32 = vsel %vm8185_vm14, %v6666_v52, %v4335_v58  ;;  %3114 = vmatpush.bf16.msra.mxu3 %v5972_v39  ;;  %v9318_v58 = vld [vmem:[#allocation24_spill] sm:$0xff]  ;;  %v5828_v49 = vor.u32 %v6442_v51, %v5825_v6 }
 0x2cd   :  { %v2685_v26 = vadd.f32 %v2684_v34, %v2636_v63  ;;  %v2733_v54 = vpop.f32.mrf.mxu3  ;;  %v2588_v23 = vpop.f32.mrf.mxu0  ;;  %v8199_v60 = vsel %vm4341_vm15, %v4343_v50, %v4339_v32  ;;  %v6414_v63 = vld [vmem:[#allocation5 + $0x48c] sm:$0xf]  ;;  %v5569_v34 = vld [vmem:[#allocation5 + $0x378] sm:$0xf0] }
 0x2ce   :  { %v2589_v29 = vadd.f32 %v2588_v23, %v7752_v1  ;;  %v2637_v44 = vpop.f32.mrf.mxu1  ;;  %v4405_v53 = vpack.c.bf16 %v8199_v60, %v8197_v36  ;;  %v5716_v25 = vor.u32 %v6414_v63, %v5713_v2  ;;  %v6474_v17 = vld [vmem:[#allocation5 + $0x66c] sm:$0xf]  ;;  %v5953_v32 = vld [vmem:[#allocation5 + $0x678] sm:$0xf0]  ;;  %3066 = vmatpush.bf16.msra.mxu2 %v5828_v49 }
 0x2cf   :  { %v8204_v52 = vadd.f32 %v2733_v54, %v2685_v26  ;;  %v9317_v54 = vld [vmem:[#allocation23_spill] sm:$0xff]  ;;  %v5572_v26 = vor.u32 %v6378_v27, %v5569_v34  ;;  %v9319_v27 = vld [vmem:[#allocation48_spill] sm:$0xff]  ;;  %v9320_v49 = vld [vmem:[#allocation26_spill] sm:$0xff] }
 0x2d0   :  { %v2638_v45 = vadd.f32 %v2637_v44, %v2589_v29  ;;  %3016 = vmatpush.bf16.msra.mxu1 %v5716_v25  ;;  %v5956_v29 = vor.u32 %v6474_v17, %v5953_v32  ;;  %v9321_v34 = vld [vmem:[#allocation27_spill] sm:$0xff]  ;;  %v6438_v17 = vld [vmem:[#allocation5 + $0x54c] sm:$0xf]  ;;  %v5809_v32 = vld [vmem:[#allocation5 + $0x558] sm:$0xf0] }
 0x2d1   :  { %2968 = vmatpush.bf16.msra.mxu0 %v5572_v26  ;;  %v5812_v26 = vor.u32 %v6438_v17, %v5809_v32 }
 0x2d2   :  { %3115 = vmatpush.bf16.msra.mxu3 %v5956_v29  ;;  %v5553_v29 = vld [vmem:[#allocation5 + $0x358] sm:$0xf0] }
 0x2d3   :  { %3067 = vmatpush.bf16.msra.mxu2 %v5812_v26  ;;  %v9323_v26 = vld [vmem:[#allocation28_spill] sm:$0xff] }
 0x2d4   :  { %v2686_v35 = vpop.f32.mrf.mxu2 }
 0x2d5   :  { %v2687_v24 = vadd.f32 %v2686_v35, %v2638_v45  ;;  %v2735_v31 = vpop.f32.mrf.mxu3  ;;  %v2591_v50 = vpop.f32.mrf.mxu0  ;;  %v6410_v35 = vld [vmem:[#allocation5 + $0x46c] sm:$0xf] }
 0x2d6   :  { %v2592_v5 = vadd.f32 %v2591_v50, %v7797_v12  ;;  %v2640_v1 = vpop.f32.mrf.mxu1 }
 0x2d7   :  { %v8207_v23 = vadd.f32 %v2735_v31, %v2687_v24  ;;  %v5697_v24 = vld [vmem:[#allocation5 + $0x478] sm:$0xf0] }
 0x2d8   :  { %v2641_v39 = vadd.f32 %v2640_v1, %v2592_v5  ;;  %2786 = vmatmul.bf16.gmra.mxu0 %v9219_v61  ;;  %v5700_v50 = vor.u32 %v6410_v35, %v5697_v24 }
 0x2d9   :  { %2835 = vmatmul.bf16.gmra.mxu1 %v9220_v19  ;;  %2884 = vmatmul.bf16.gmra.mxu2 %v9317_v54 }
 0x2da   :  { %2933 = vmatmul.bf16.gmra.mxu3 %v9318_v58  ;;  %3017 = vmatpush.bf16.msra.mxu1 %v5700_v50 }
 0x2dc   :  { %v2689_v12 = vpop.f32.mrf.mxu2 }
 0x2dd   :  { %v2690_v44 = vadd.f32 %v2689_v12, %v2641_v39  ;;  %v2738_v63 = vpop.f32.mrf.mxu3  ;;  %v2593_v2 = vpop.f32.mrf.mxu0  ;;  %v6374_v12 = vld [vmem:[#allocation5 + $0x34c] sm:$0xf] }
 0x2de   :  { %v2594_v19 = vadd.f32 %v2593_v2, %v7810_v62  ;;  %v2642_v45 = vpop.f32.mrf.mxu1  ;;  %v5556_v2 = vor.u32 %v6374_v12, %v5553_v29  ;;  %v9322_v12 = vld [vmem:[#allocation50_spill] sm:$0xff]  ;;  %v9324_v29 = vld [vmem:[#allocation29_spill] sm:$0xff] }
 0x2df   :  { %v8214_v25 = vadd.f32 %v2738_v63, %v2690_v44  ;;  %v6470_v44 = vld [vmem:[#allocation5 + $0x64c] sm:$0xf]  ;;  %v5937_v63 = vld [vmem:[#allocation5 + $0x658] sm:$0xf0] }
 0x2e0   :  { %v2643_v31 = vadd.f32 %v2642_v45, %v2594_v19  ;;  %v5940_v19 = vor.u32 %v6470_v44, %v5937_v63  ;;  %2969 = vmatpush.bf16.msra.mxu0 %v5556_v2  ;;  %v6434_v44 = vld [vmem:[#allocation5 + $0x52c] sm:$0xf]  ;;  %v5793_v63 = vld [vmem:[#allocation5 + $0x538] sm:$0xf0] }
 0x2e1   :  { %v5796_v2 = vor.u32 %v6434_v44, %v5793_v63 }
 0x2e2   :  { %3116 = vmatpush.bf16.msra.mxu3 %v5940_v19  ;;  %v5537_v19 = vld [vmem:[#allocation5 + $0x338] sm:$0xf0] }
 0x2e3   :  { %3068 = vmatpush.bf16.msra.mxu2 %v5796_v2  ;;  %v9326_v2 = vld [vmem:[#allocation30_spill] sm:$0xff] }
 0x2e4   :  { %v2691_v5 = vpop.f32.mrf.mxu2 }
 0x2e5   :  { %v2692_v1 = vadd.f32 %v2691_v5, %v2643_v31  ;;  %v2740_v54 = vpop.f32.mrf.mxu3  ;;  %v2596_v58 = vpop.f32.mrf.mxu0  ;;  %v6406_v5 = vld [vmem:[#allocation5 + $0x44c] sm:$0xf] }
 0x2e6   :  { %v2597_v39 = vadd.f32 %v2596_v58, %v7854_v30  ;;  %v2645_v51 = vpop.f32.mrf.mxu1 }
 0x2e7   :  { %v8217_v6 = vadd.f32 %v2740_v54, %v2692_v1  ;;  %v5681_v1 = vld [vmem:[#allocation5 + $0x458] sm:$0xf0] }
 0x2e8   :  { %v2646_v62 = vadd.f32 %v2645_v51, %v2597_v39  ;;  %2791 = vmatmul.bf16.gmra.mxu0 %v9319_v27  ;;  %v5684_v58 = vor.u32 %v6406_v5, %v5681_v1 }
 0x2e9   :  { %2840 = vmatmul.bf16.gmra.mxu1 %v9320_v49  ;;  %2889 = vmatmul.bf16.gmra.mxu2 %v9321_v34 }
 0x2ea   :  { %2938 = vmatmul.bf16.gmra.mxu3 %v7020_v14  ;;  %3018 = vmatpush.bf16.msra.mxu1 %v5684_v58 }
 0x2ec   :  { %v2694_v30 = vpop.f32.mrf.mxu2 }
 0x2ed   :  { %v2695_v45 = vadd.f32 %v2694_v30, %v2646_v62  ;;  %v2743_v35 = vpop.f32.mrf.mxu3  ;;  %v2598_v24 = vpop.f32.mrf.mxu0  ;;  %v6370_v30 = vld [vmem:[#allocation5 + $0x32c] sm:$0xf] }
 0x2ee   :  { %v2599_v31 = vadd.f32 %v2598_v24, %v7867_v40  ;;  %v2647_v50 = vpop.f32.mrf.mxu1  ;;  %v5540_v24 = vor.u32 %v6370_v30, %v5537_v19  ;;  %v9325_v30 = vld [vmem:[#allocation52_spill] sm:$0xff]  ;;  %v9327_v19 = vld [vmem:[#allocation31_spill] sm:$0xff] }
 0x2ef   :  { %v8224_v14 = vadd.f32 %v2743_v35, %v2695_v45  ;;  %v6466_v45 = vld [vmem:[#allocation5 + $0x62c] sm:$0xf]  ;;  %v5921_v35 = vld [vmem:[#allocation5 + $0x638] sm:$0xf0] }
 0x2f0   :  { %v2648_v54 = vadd.f32 %v2647_v50, %v2599_v31  ;;  %v5924_v31 = vor.u32 %v6466_v45, %v5921_v35  ;;  %2970 = vmatpush.bf16.msra.mxu0 %v5540_v24  ;;  %v6430_v45 = vld [vmem:[#allocation5 + $0x50c] sm:$0xf]  ;;  %v5777_v35 = vld [vmem:[#allocation5 + $0x518] sm:$0xf0] }
 0x2f1   :  { %v5780_v24 = vor.u32 %v6430_v45, %v5777_v35 }
 0x2f2   :  { %3117 = vmatpush.bf16.msra.mxu3 %v5924_v31  ;;  %v5521_v31 = vld [vmem:[#allocation5 + $0x318] sm:$0xf0] }
 0x2f3   :  { %3069 = vmatpush.bf16.msra.mxu2 %v5780_v24  ;;  %v9329_v24 = vld [vmem:[#allocation32_spill] sm:$0xff] }
 0x2f4   :  { %v2696_v39 = vpop.f32.mrf.mxu2 }
 0x2f5   :  { %v2697_v51 = vadd.f32 %v2696_v39, %v2648_v54  ;;  %v2745_v49 = vpop.f32.mrf.mxu3  ;;  %v2601_v34 = vpop.f32.mrf.mxu0  ;;  %v6402_v39 = vld [vmem:[#allocation5 + $0x42c] sm:$0xf] }
 0x2f6   :  { %v2602_v62 = vadd.f32 %v2601_v34, %v7911_v57  ;;  %v2650_v17 = vpop.f32.mrf.mxu1 }
 0x2f7   :  { %v8227_v32 = vadd.f32 %v2745_v49, %v2697_v51  ;;  %v5665_v51 = vld [vmem:[#allocation5 + $0x438] sm:$0xf0] }
 0x2f8   :  { %v2651_v40 = vadd.f32 %v2650_v17, %v2602_v62  ;;  %2796 = vmatmul.bf16.gmra.mxu0 %v9322_v12  ;;  %v5668_v34 = vor.u32 %v6402_v39, %v5665_v51 }
 0x2f9   :  { %2845 = vmatmul.bf16.gmra.mxu1 %v9323_v26  ;;  %2894 = vmatmul.bf16.gmra.mxu2 %v9324_v29 }
 0x2fa   :  { %2943 = vmatmul.bf16.gmra.mxu3 %v7032_v42  ;;  %3019 = vmatpush.bf16.msra.mxu1 %v5668_v34 }
 0x2fc   :  { %v2699_v57 = vpop.f32.mrf.mxu2 }
 0x2fd   :  { %v2700_v50 = vadd.f32 %v2699_v57, %v2651_v40  ;;  %v2748_v5 = vpop.f32.mrf.mxu3  ;;  %v2603_v1 = vpop.f32.mrf.mxu0  ;;  %v6366_v57 = vld [vmem:[#allocation5 + $0x30c] sm:$0xf] }
 0x2fe   :  { %v2604_v54 = vadd.f32 %v2603_v1, %v7924_v22  ;;  %v2652_v58 = vpop.f32.mrf.mxu1  ;;  %v5524_v1 = vor.u32 %v6366_v57, %v5521_v31  ;;  %v9328_v57 = vld [vmem:[#allocation55_spill] sm:$0xff]  ;;  %v9330_v31 = vld [vmem:[#allocation33_spill] sm:$0xff] }
 0x2ff   :  { %v8234_v42 = vadd.f32 %v2748_v5, %v2700_v50  ;;  %v6462_v50 = vld [vmem:[#allocation5 + $0x60c] sm:$0xf]  ;;  %v5905_v5 = vld [vmem:[#allocation5 + $0x618] sm:$0xf0] }
 0x300   :  { %v2653_v49 = vadd.f32 %v2652_v58, %v2604_v54  ;;  %v5908_v54 = vor.u32 %v6462_v50, %v5905_v5  ;;  %2971 = vmatpush.bf16.msra.mxu0 %v5524_v1 }
 0x302   :  { %3118 = vmatpush.bf16.msra.mxu3 %v5908_v54 }
 0x304   :  { %v2701_v62 = vpop.f32.mrf.mxu2 }
 0x305   :  { %v2702_v17 = vadd.f32 %v2701_v62, %v2653_v49  ;;  %v2750_v26 = vpop.f32.mrf.mxu3  ;;  %v2606_v29 = vpop.f32.mrf.mxu0  ;;  %v6398_v62 = vld [vmem:[#allocation5 + $0x40c] sm:$0xf] }
 0x306   :  { %v2607_v40 = vadd.f32 %v2606_v29, %v7968_v37  ;;  %v2655_v44 = vpop.f32.mrf.mxu1 }
 0x307   :  { %v8237_v63 = vadd.f32 %v2750_v26, %v2702_v17  ;;  %v5649_v17 = vld [vmem:[#allocation5 + $0x418] sm:$0xf0] }
 0x308   :  { %v2656_v22 = vadd.f32 %v2655_v44, %v2607_v40  ;;  %2801 = vmatmul.bf16.gmra.mxu0 %v9325_v30  ;;  %v5652_v29 = vor.u32 %v6398_v62, %v5649_v17 }
 0x309   :  { %2850 = vmatmul.bf16.gmra.mxu1 %v9326_v2  ;;  %2899 = vmatmul.bf16.gmra.mxu2 %v9327_v19 }
 0x30a   :  { %2948 = vmatmul.bf16.gmra.mxu3 %v7044_v10  ;;  %3020 = vmatpush.bf16.msra.mxu1 %v5652_v29 }
 0x30c   :  { %v2704_v37 = vpop.f32.mrf.mxu2 }
 0x30d   :  { %v2705_v58 = vadd.f32 %v2704_v37, %v2656_v22  ;;  %v2753_v39 = vpop.f32.mrf.mxu3  ;;  %v2608_v51 = vpop.f32.mrf.mxu0 }
 0x30e   :  { %v2609_v49 = vadd.f32 %v2608_v51, %v7983_v41  ;;  %v2657_v34 = vpop.f32.mrf.mxu1 }
 0x30f   :  { %v8244_v10 = vadd.f32 %v2753_v39, %v2705_v58 }
 0x310   :  { %v2658_v26 = vadd.f32 %v2657_v34, %v2609_v49 }
 0x314   :  { %v2706_v40 = vpop.f32.mrf.mxu2 }
 0x315   :  { %v2707_v44 = vadd.f32 %v2706_v40, %v2658_v26  ;;  %v2755_v2 = vpop.f32.mrf.mxu3  ;;  %v2611_v19 = vpop.f32.mrf.mxu0  ;;  %v9331_v40 = vld [vmem:[#allocation58_spill] sm:$0xff] }
 0x316   :  { %v2612_v22 = vadd.f32 %v2611_v19, %v8040_v28  ;;  %v2660_v45 = vpop.f32.mrf.mxu1 }
 0x317   :  { %v8247_v35 = vadd.f32 %v2755_v2, %v2707_v44  ;;  %v9332_v44 = vld [vmem:[#allocation34_spill] sm:$0xff]  ;;  %v9333_v2 = vld [vmem:[#allocation35_spill] sm:$0xff] }
 0x318   :  { %v2661_v41 = vadd.f32 %v2660_v45, %v2612_v22  ;;  %2806 = vmatmul.bf16.gmra.mxu0 %v9328_v57 }
 0x319   :  { %2855 = vmatmul.bf16.gmra.mxu1 %v9329_v24  ;;  %2904 = vmatmul.bf16.gmra.mxu2 %v9330_v31 }
 0x31a   :  { %2953 = vmatmul.bf16.gmra.mxu3 %v7056_v46 }
 0x31c   :  { %v2709_v50 = vpop.f32.mrf.mxu2 }
 0x31d   :  { %v2710_v5 = vadd.f32 %v2709_v50, %v2661_v41  ;;  %v2758_v37 = vpop.f32.mrf.mxu3  ;;  %v2613_v1 = vpop.f32.mrf.mxu0 }
 0x31e   :  { %v2614_v54 = vadd.f32 %v2613_v1, %v8057_v48  ;;  %v2662_v58 = vpop.f32.mrf.mxu1 }
 0x31f   :  { %v8254_v28 = vadd.f32 %v2758_v37, %v2710_v5 }
 0x320   :  { %v2663_v39 = vadd.f32 %v2662_v58, %v2614_v54  ;;  %v6796_v54 = vld [vmem:[#allocation7] sm:$0xf] }
 0x321   :  { %v8266_v58 = vperm.slane %v6796_v54, 3 }
 0x324   :  { %v2711_v51 = vpop.f32.mrf.mxu2 }
 0x325   :  { %v2712_v49 = vadd.f32 %v2711_v51, %v2663_v39  ;;  %v2760_v34 = vpop.f32.mrf.mxu3  ;;  %v2616_v62 = vpop.f32.mrf.mxu0 }
 0x326   :  { %v2617_v17 = vadd.f32 %v2616_v62, %v8100_v7  ;;  %v2665_v26 = vpop.f32.mrf.mxu1  ;;  %v9335_v62 = vld [vmem:[#allocation38_spill] sm:$0xff] }
 0x327   :  { %v8257_v29 = vadd.f32 %v2760_v34, %v2712_v49  ;;  %v9334_v34 = vld [vmem:[#allocation18_spill] sm:$0xff] }
 0x328   :  { %v2666_v46 = vadd.f32 %v2665_v26, %v2617_v17  ;;  %2811 = vmatmul.bf16.gmra.mxu0 %v9331_v40  ;;  %v9336_v17 = vld [vmem:[#allocation39_spill] sm:$0xff] }
 0x329   :  { %2860 = vmatmul.bf16.gmra.mxu1 %v9332_v44  ;;  %2909 = vmatmul.bf16.gmra.mxu2 %v9333_v2 }
 0x32a   :  { %2958 = vmatmul.bf16.gmra.mxu3 %v9288_v13 }
 0x32c   :  { %v2714_v48 = vpop.f32.mrf.mxu2 }
 0x32d   :  { %v2715_v19 = vadd.f32 %v2714_v48, %v2666_v46  ;;  %v2763_v22 = vpop.f32.mrf.mxu3  ;;  %v2618_v45 = vpop.f32.mrf.mxu0 }
 0x32e   :  { %v2619_v41 = vadd.f32 %v2618_v45, %v8114_v0  ;;  %v2667_v24 = vpop.f32.mrf.mxu1 }
 0x32f   :  { %v8264_v7 = vadd.f32 %v2763_v22, %v2715_v19 }
 0x330   :  { %v2668_v31 = vadd.f32 %v2667_v24, %v2619_v41 }
 0x334   :  { %v2716_v50 = vpop.f32.mrf.mxu2 }
 0x335   :  { %v2717_v5 = vadd.f32 %v2716_v50, %v2668_v31  ;;  %v2765_v37 = vpop.f32.mrf.mxu3  ;;  %v2777_v1 = vpop.f32.mrf.mxu0 }
 0x336   :  { %v2778_v39 = vadd.f32 %v2777_v1, %v8159_v55  ;;  %v2826_v13 = vpop.f32.mrf.mxu1 }
 0x337   :  { %v8269_v51 = vadd.f32 %v2765_v37, %v2717_v5  ;;  %v2827_v0 = vadd.f32 %v2826_v13, %v8266_v58  ;;  %v9337_v13 = vld [vmem:[#allocation21_spill] sm:$0xff] }
 0x338   :  { %v6023_v49 = vmul.f32 -1.442695, %v2778_v39  ;;  %2972 = vmatmul.bf16.vlgmr.msra.gmra.mxu0 %v9334_v34 }
 0x339   :  { %3021 = vmatmul.bf16.vlgmr.msra.gmra.mxu1 %v9335_v62  ;;  %3070 = vmatmul.bf16.vlgmr.msra.gmra.mxu2 %v9336_v17  ;;  %v9338_v62 = vld [vmem:[#allocation41_spill] sm:$0xff]  ;;  %v9339_v17 = vld [vmem:[#allocation42_spill] sm:$0xff] }
 0x33a   :  { %6667 = vpow2.f32 %v6023_v49  ;;  %3119 = vmatmul.bf16.vlgmr.msra.gmra.mxu3 %v9297_v59 }
 0x33c   :  { %v2875_v26 = vpop.f32.mrf.mxu2 }
 0x33d   :  { %v2876_v46 = vadd.f32 %v2875_v26, %v2827_v0  ;;  %v2924_v44 = vpop.f32.mrf.mxu3  ;;  %v2779_v2 = vpop.f32.mrf.mxu0  ;;  %v6516_v26 = vld [vmem:[#allocation8 + $0xb8] sm:$0xff] }
 0x33e   :  { %v2780_v55 = vadd.f32 %v2779_v2, %v8169_v38  ;;  %v2828_v48 = vpop.f32.mrf.mxu1  ;;  %4766 = vmatpush.bf16.msrb.mxu2 %v6516_v26 }
 0x33f   :  { %v8277_v19 = vadd.f32 %v2924_v44, %v2876_v46  ;;  %v2829_v24 = vadd.f32 %v2828_v48, %v8266_v58 }
 0x340   :  { %v6668_v22 = vpop.eup %6667  ;;  %v6027_v45 = vmul.f32 -1.442695, %v2780_v55 }
 0x341   :  { %v8279_v41 = vadd.f32 1.0, %v6668_v22 }
 0x342   :  { %6669 = vpow2.f32 %v6027_v45 }
 0x343   :  { %6671 = vrcp.f32 %v8279_v41  ;;  %vm3451_vm1 = vweird.f32 %v8279_v41  ;;  %v3455_v26 = vand.u32 2147483647, %v8279_v41 }
 0x344   :  { %v2877_v31 = vpop.f32.mrf.mxu2 }
 0x345   :  { %v2878_v59 = vadd.f32 %v2877_v31, %v2829_v24  ;;  %v2926_v50 = vpop.f32.mrf.mxu3  ;;  %v2782_v5 = vpop.f32.mrf.mxu0  ;;  %vm3456_vm5 = vcmp.eq.f32.partialorder %v3455_v26, 8.507059e+37 }
 0x346   :  { %v2783_v37 = vadd.f32 %v2782_v5, %v8204_v52  ;;  %v2831_v1 = vpop.f32.mrf.mxu1 }
 0x347   :  { %v8284_v38 = vadd.f32 %v2926_v50, %v2878_v59  ;;  %v2832_v0 = vadd.f32 %v2831_v1, %v8266_v58  ;;  %v3457_v1 = vand.u32 2147483648, %v8279_v41 }
 0x348   :  { %v6670_v54 = vpop.eup %6669  ;;  %v6031_v39 = vmul.f32 -1.442695, %v2783_v37  ;;  %2977 = vmatmul.bf16.gmra.mxu0 %v9337_v13 }
 0x349   :  { %v8287_v49 = vpop.eup %6671  ;;  %v8289_v34 = vadd.f32 1.0, %v6670_v54  ;;  %3026 = vmatmul.bf16.gmra.mxu1 %v9338_v62  ;;  %3075 = vmatmul.bf16.gmra.mxu2 %v9339_v17 }
 0x34a   :  { %v3447_v52 = vmul.f32 %v8287_v49, %v8279_v41  ;;  %6673 = vpow2.f32 %v6031_v39  ;;  %3124 = vmatmul.bf16.gmra.mxu3 %v9308_v20  ;;  %vm3452_vm0 = vweird.f32 %v8287_v49 }
 0x34b   :  { %6675 = vrcp.f32 %v8289_v34  ;;  %vm8317_vm3 = vmor %vm3451_vm1, %vm3452_vm0  ;;  %vm3511_vm4 = vweird.f32 %v8289_v34 }
 0x34c   :  { %v3448_v46 = vsub.f32 1.0, %v3447_v52  ;;  %v2880_v44 = vpop.f32.mrf.mxu2 }
 0x34d   :  { %v2881_v2 = vadd.f32 %v2880_v44, %v2832_v0  ;;  %v2929_v55 = vpop.f32.mrf.mxu3  ;;  %v2784_v48 = vpop.f32.mrf.mxu0  ;;  %v3517_v0 = vand.u32 2147483648, %v8289_v34 }
 0x34e   :  { %v2785_v22 = vadd.f32 %v2784_v48, %v8207_v23  ;;  %v2833_v45 = vpop.f32.mrf.mxu1  ;;  %v3449_v59 = vmul.f32 %v8287_v49, %v3448_v46 }
 0x34f   :  { %v8299_v24 = vadd.f32 %v2929_v55, %v2881_v2  ;;  %v2834_v54 = vadd.f32 %v2833_v45, %v8266_v58  ;;  %v3515_v55 = vand.u32 2147483647, %v8289_v34 }
 0x350   :  { %v6674_v31 = vpop.eup %6673  ;;  %v6035_v50 = vmul.f32 -1.442695, %v2785_v22  ;;  %v3450_v13 = vadd.f32 %v8287_v49, %v3449_v59  ;;  %v3458_v22 = vor.u32 1.1754944e-38, %v3457_v1  ;;  %v9342_v59 = vld [vmem:[#allocation25_spill] sm:$0xff]  ;;  %v9343_v1 = vld [vmem:[#allocation44_spill] sm:$0xff] }
 0x351   :  { %v6676_v5 = vpop.eup %6675  ;;  %v8302_v20 = vadd.f32 1.0, %v6674_v31  ;;  %vm3516_vm7 = vcmp.eq.f32.partialorder %v3515_v55, 8.507059e+37 }
 0x352   :  { %v3507_v37 = vmul.f32 %v6676_v5, %v8289_v34  ;;  %6677 = vpow2.f32 %v6035_v50  ;;  %vm3512_vm2 = vweird.f32 %v6676_v5  ;;  %v3518_v34 = vor.u32 1.1754944e-38, %v3517_v0 }
 0x353   :  { %6679 = vrcp.f32 %v8302_v20  ;;  %vm3513_vm6 = vmor %vm3511_vm4, %vm3512_vm2  ;;  %vm3571_vm9 = vweird.f32 %v8302_v20 }
 0x354   :  { %v3508_v23 = vsub.f32 1.0, %v3507_v37  ;;  %v2882_v39 = vpop.f32.mrf.mxu2 }
 0x355   :  { %v2883_v62 = vadd.f32 %v2882_v39, %v2834_v54  ;;  %v2931_v17 = vpop.f32.mrf.mxu3  ;;  %v2787_v52 = vpop.f32.mrf.mxu0  ;;  %v9344_v39 = vld [vmem:[#allocation45_spill] sm:$0xff] }
 0x356   :  { %v3509_v46 = vmul.f32 %v6676_v5, %v3508_v23  ;;  %v2788_v44 = vadd.f32 %v2787_v52, %v8214_v25  ;;  %v2836_v2 = vpop.f32.mrf.mxu1  ;;  %v3454_v25 = vsel %vm8317_vm3, %v8287_v49, %v3450_v13  ;;  %v6500_v49 = vld [vmem:[#allocation8 + $0x38] sm:$0xff] }
 0x357   :  { %v8321_v45 = vadd.f32 %v2931_v17, %v2883_v62  ;;  %v2837_v23 = vadd.f32 %v2836_v2, %v8266_v58  ;;  %v6524_v13 = vld [vmem:[#allocation8 + $0xf8] sm:$0xff]  ;;  %4668 = vmatpush.bf16.msrb.mxu0 %v6500_v49 }
 0x358   :  { %v6678_v31 = vpop.eup %6677  ;;  %v6039_v41 = vmul.f32 -1.442695, %v2788_v44  ;;  %2982 = vmatmul.bf16.gmra.mxu0 %v9342_v59  ;;  %v3510_v50 = vadd.f32 %v6676_v5, %v3509_v46  ;;  %v6508_v17 = vld [vmem:[#allocation8 + $0x78] sm:$0xff]  ;;  %v6515_v46 = vld [vmem:[#allocation8 + $0xb0] sm:$0xff]  ;;  %v8340_v44 = vsel %vm3456_vm5, %v3458_v22, %v3454_v25  ;;  %4815 = vmatpush.bf16.msrb.mxu3 %v6524_v13 }
 0x359   :  { %v8328_v37 = vpop.eup %6679  ;;  %v8330_v54 = vadd.f32 1.0, %v6678_v31  ;;  %3031 = vmatmul.bf16.gmra.mxu1 %v9343_v1  ;;  %3080 = vmatmul.bf16.gmra.mxu2 %v9344_v39 }
 0x35a   :  { %v3567_v62 = vmul.f32 %v8328_v37, %v8302_v20  ;;  %6681 = vpow2.f32 %v6039_v41  ;;  %3129 = vmatmul.bf16.gmra.mxu3 %v9219_v61  ;;  %v3514_v52 = vsel %vm3513_vm6, %v6676_v5, %v3510_v50  ;;  %4717 = vmatpush.bf16.msrb.mxu1 %v6508_v17  ;;  %vm3572_vm8 = vweird.f32 %v8328_v37 }
 0x35b   :  { %6683 = vrcp.f32 %v8330_v54  ;;  %v8342_v26 = vsel %vm3516_vm7, %v3518_v34, %v3514_v52  ;;  %4767 = vmatpush.bf16.msrb.mxu2 %v6515_v46  ;;  %vm8365_vm11 = vmor %vm3571_vm9, %vm3572_vm8  ;;  %vm3631_vm13 = vweird.f32 %v8330_v54 }
 0x35c   :  { %v2885_v2 = vpop.f32.mrf.mxu2  ;;  %v4378_v0 = vpack.c.bf16 %v8342_v26, %v8340_v44  ;;  %v3568_v48 = vsub.f32 1.0, %v3567_v62  ;;  %v3575_v62 = vand.u32 2147483647, %v8302_v20 }
 0x35d   :  { %v2886_v61 = vadd.f32 %v2885_v2, %v2837_v23  ;;  %v2934_v31 = vpop.f32.mrf.mxu3  ;;  %v2789_v41 = vpop.f32.mrf.mxu0  ;;  %v3577_v2 = vand.u32 2147483648, %v8302_v20 }
 0x35e   :  { %v2790_v5 = vadd.f32 %v2789_v41, %v8217_v6  ;;  %v2838_v55 = vpop.f32.mrf.mxu1  ;;  %v3569_v50 = vmul.f32 %v8328_v37, %v3568_v48  ;;  %v3637_v48 = vand.u32 2147483648, %v8330_v54  ;;  %vm8369_vm12 = vcmp.eq.f32.partialorder %v3575_v62, 8.507059e+37 }
 0x35f   :  { %v8347_v59 = vadd.f32 %v2934_v31, %v2886_v61  ;;  %v2839_v23 = vadd.f32 %v2838_v55, %v8266_v58 }
 0x360   :  { %v6682_v22 = vpop.eup %6681  ;;  %v6043_v25 = vmul.f32 -1.442695, %v2790_v5  ;;  %v3570_v49 = vadd.f32 %v8328_v37, %v3569_v50  ;;  %v3635_v5 = vand.u32 2147483647, %v8330_v54 }
 0x361   :  { %v6684_v1 = vpop.eup %6683  ;;  %v8350_v39 = vadd.f32 1.0, %v6682_v22 }
 0x362   :  { %6685 = vpow2.f32 %v6043_v25  ;;  %v3627_v34 = vmul.f32 %v6684_v1, %v8330_v54  ;;  %vm3632_vm10 = vweird.f32 %v6684_v1  ;;  %v6499_v54 = vld [vmem:[#allocation8 + $0x30] sm:$0xff]  ;;  %vm3636_vm15 = vcmp.eq.f32.partialorder %v3635_v5, 8.507059e+37 }
 0x363   :  { %6687 = vrcp.f32 %v8350_v39  ;;  %vm3633_vm14 = vmor %vm3631_vm13, %vm3632_vm10  ;;  %4669 = vmatpush.bf16.msrb.mxu0 %v6499_v54  ;;  %vm3691_vm1 = vweird.f32 %v8350_v39 }
 0x364   :  { %v2887_v6 = vpop.f32.mrf.mxu2  ;;  %v3628_v13 = vsub.f32 1.0, %v3627_v34 }
 0x365   :  { %v2888_v17 = vadd.f32 %v2887_v6, %v2839_v23  ;;  %v2936_v52 = vpop.f32.mrf.mxu3  ;;  %v2792_v46 = vpop.f32.mrf.mxu0 }
 0x366   :  { %v2793_v61 = vadd.f32 %v2792_v46, %v8224_v14  ;;  %v2841_v31 = vpop.f32.mrf.mxu1  ;;  %v3629_v41 = vmul.f32 %v6684_v1, %v3628_v13  ;;  %v3574_v14 = vsel %vm8365_vm11, %v8328_v37, %v3570_v49  ;;  %v3578_v13 = vor.u32 1.1754944e-38, %v3577_v2  ;;  %v6523_v49 = vld [vmem:[#allocation8 + $0xf0] sm:$0xff] }
 0x367   :  { %v8363_v55 = vadd.f32 %v2936_v52, %v2888_v17  ;;  %v2842_v62 = vadd.f32 %v2841_v31, %v8266_v58  ;;  %v6507_v17 = vld [vmem:[#allocation8 + $0x70] sm:$0xff]  ;;  %4816 = vmatpush.bf16.msrb.mxu3 %v6523_v49 }
 0x368   :  { %v6686_v20 = vpop.eup %6685  ;;  %v6047_v50 = vmul.f32 -1.442695, %v2793_v61  ;;  %2987 = vmatmul.bf16.gmra.mxu0 %v7022_v15  ;;  %v3630_v34 = vadd.f32 %v6684_v1, %v3629_v41  ;;  %v3638_v15 = vor.u32 1.1754944e-38, %v3637_v48  ;;  %4718 = vmatpush.bf16.msrb.mxu1 %v6507_v17 }
 0x369   :  { %v8378_v23 = vpop.eup %6687  ;;  %v8380_v6 = vadd.f32 1.0, %v6686_v20  ;;  %3036 = vmatmul.bf16.gmra.mxu1 %v7124_v16  ;;  %3085 = vmatmul.bf16.gmra.mxu2 %v9221_v18  ;;  %v6514_v16 = vld [vmem:[#allocation8 + $0xa8] sm:$0xff]  ;;  %v8392_v18 = vsel %vm8369_vm12, %v3578_v13, %v3574_v14 }
 0x36a   :  { %v3687_v37 = vmul.f32 %v8378_v23, %v8350_v39  ;;  %6689 = vpow2.f32 %v6047_v50  ;;  %3134 = vmatmul.bf16.gmra.mxu3 %v9319_v27  ;;  %v3634_v52 = vsel %vm3633_vm14, %v6684_v1, %v3630_v34  ;;  %4768 = vmatpush.bf16.msrb.mxu2 %v6514_v16  ;;  %vm3692_vm0 = vweird.f32 %v8378_v23 }
 0x36b   :  { %6691 = vrcp.f32 %v8380_v6  ;;  %v8394_v46 = vsel %vm3636_vm15, %v3638_v15, %v3634_v52  ;;  %v3695_v15 = vand.u32 2147483647, %v8350_v39  ;;  %v3697_v16 = vand.u32 2147483648, %v8350_v39  ;;  %vm8417_vm3 = vmor %vm3691_vm1, %vm3692_vm0 }
 0x36c   :  { %v2890_v2 = vpop.f32.mrf.mxu2  ;;  %v4382_v27 = vpack.c.bf16 %v8394_v46, %v8392_v18  ;;  %v3688_v48 = vsub.f32 1.0, %v3687_v37  ;;  %vm3751_vm5 = vweird.f32 %v8380_v6 }
 0x36d   :  { %v2891_v61 = vadd.f32 %v2890_v2, %v2842_v62  ;;  %v2939_v31 = vpop.f32.mrf.mxu3  ;;  %v2794_v1 = vpop.f32.mrf.mxu0  ;;  %v3757_v2 = vand.u32 2147483648, %v8380_v6  ;;  %vm8421_vm4 = vcmp.eq.f32.partialorder %v3695_v15, 8.507059e+37 }
 0x36e   :  { %v2795_v41 = vadd.f32 %v2794_v1, %v8227_v32  ;;  %v2843_v5 = vpop.f32.mrf.mxu1  ;;  %v3689_v50 = vmul.f32 %v8378_v23, %v3688_v48  ;;  %v3755_v1 = vand.u32 2147483647, %v8380_v6 }
 0x36f   :  { %v8399_v22 = vadd.f32 %v2939_v31, %v2891_v61  ;;  %v2844_v62 = vadd.f32 %v2843_v5, %v8266_v58 }
 0x370   :  { %v6690_v25 = vpop.eup %6689  ;;  %v6051_v20 = vmul.f32 -1.442695, %v2795_v41  ;;  %v3690_v37 = vadd.f32 %v8378_v23, %v3689_v50  ;;  %vm3756_vm7 = vcmp.eq.f32.partialorder %v3755_v1, 8.507059e+37 }
 0x371   :  { %v6692_v14 = vpop.eup %6691  ;;  %v8402_v34 = vadd.f32 1.0, %v6690_v25 }
 0x372   :  { %6693 = vpow2.f32 %v6051_v20  ;;  %v3747_v13 = vmul.f32 %v6692_v14, %v8380_v6  ;;  %vm3752_vm2 = vweird.f32 %v6692_v14  ;;  %v6498_v6 = vld [vmem:[#allocation8 + $0x28] sm:$0xff] }
 0x373   :  { %6695 = vrcp.f32 %v8402_v34  ;;  %vm3753_vm6 = vmor %vm3751_vm5, %vm3752_vm2  ;;  %4670 = vmatpush.bf16.msrb.mxu0 %v6498_v6  ;;  %vm3811_vm10 = vweird.f32 %v8402_v34 }
 0x374   :  { %v2892_v32 = vpop.f32.mrf.mxu2  ;;  %v3748_v54 = vsub.f32 1.0, %v3747_v13 }
 0x375   :  { %v2893_v49 = vadd.f32 %v2892_v32, %v2844_v62  ;;  %v2941_v17 = vpop.f32.mrf.mxu3  ;;  %v2797_v52 = vpop.f32.mrf.mxu0  ;;  %v3698_v32 = vor.u32 1.1754944e-38, %v3697_v16 }
 0x376   :  { %v2798_v48 = vadd.f32 %v2797_v52, %v8234_v42  ;;  %v2846_v61 = vpop.f32.mrf.mxu1  ;;  %v3749_v31 = vmul.f32 %v6692_v14, %v3748_v54  ;;  %v3694_v42 = vsel %vm8417_vm3, %v8378_v23, %v3690_v37  ;;  %v6522_v37 = vld [vmem:[#allocation8 + $0xe8] sm:$0xff] }
 0x377   :  { %v8415_v41 = vadd.f32 %v2941_v17, %v2893_v49  ;;  %v2847_v15 = vadd.f32 %v2846_v61, %v8266_v58  ;;  %v6506_v54 = vld [vmem:[#allocation8 + $0x68] sm:$0xff]  ;;  %4817 = vmatpush.bf16.msrb.mxu3 %v6522_v37 }
 0x378   :  { %v6694_v39 = vpop.eup %6693  ;;  %v6055_v20 = vmul.f32 -1.442695, %v2798_v48  ;;  %2992 = vmatmul.bf16.gmra.mxu0 %v7034_v43  ;;  %v3750_v50 = vadd.f32 %v6692_v14, %v3749_v31  ;;  %v3758_v43 = vor.u32 1.1754944e-38, %v3757_v2  ;;  %4719 = vmatpush.bf16.msrb.mxu1 %v6506_v54 }
 0x379   :  { %v8430_v13 = vpop.eup %6695  ;;  %v8432_v62 = vadd.f32 1.0, %v6694_v39  ;;  %3041 = vmatmul.bf16.gmra.mxu1 %v7140_v56  ;;  %3090 = vmatmul.bf16.gmra.mxu2 %v9224_v4  ;;  %v6513_v56 = vld [vmem:[#allocation8 + $0xa0] sm:$0xff]  ;;  %v8444_v4 = vsel %vm8421_vm4, %v3698_v32, %v3694_v42 }
 0x37a   :  { %v3807_v23 = vmul.f32 %v8430_v13, %v8402_v34  ;;  %6697 = vpow2.f32 %v6055_v20  ;;  %3139 = vmatmul.bf16.gmra.mxu3 %v9322_v12  ;;  %v3754_v49 = vsel %vm3753_vm6, %v6692_v14, %v3750_v50  ;;  %4769 = vmatpush.bf16.msrb.mxu2 %v6513_v56  ;;  %vm3812_vm8 = vweird.f32 %v8430_v13  ;;  %v6505_v56 = vld [vmem:[#allocation8 + $0x60] sm:$0xff] }
 0x37b   :  { %6699 = vrcp.f32 %v8432_v62  ;;  %v8446_v17 = vsel %vm3756_vm7, %v3758_v43, %v3754_v49  ;;  %v3815_v43 = vand.u32 2147483647, %v8402_v34  ;;  %v6497_v49 = vld [vmem:[#allocation8 + $0x20] sm:$0xff]  ;;  %vm8473_vm11 = vmor %vm3811_vm10, %vm3812_vm8  ;;  %vm3871_vm12 = vweird.f32 %v8432_v62 }
 0x37c   :  { %v2895_v52 = vpop.f32.mrf.mxu2  ;;  %v4386_v12 = vpack.c.bf16 %v8446_v17, %v8444_v4  ;;  %v3808_v16 = vsub.f32 1.0, %v3807_v23  ;;  %4671 = vmatpush.bf16.msrb.mxu0 %v6497_v49  ;;  %4720 = vmatpush.bf16.msrb.mxu1 %v6505_v56  ;;  %v6521_v56 = vld [vmem:[#allocation8 + $0xe0] sm:$0xff] }
 0x37d   :  { %v2896_v2 = vadd.f32 %v2895_v52, %v2847_v15  ;;  %v2944_v48 = vpop.f32.mrf.mxu3  ;;  %v2799_v14 = vpop.f32.mrf.mxu0  ;;  %v3817_v52 = vand.u32 2147483648, %v8402_v34  ;;  %vm8482_vm13 = vcmp.eq.f32.partialorder %v3815_v43, 8.507059e+37  ;;  %v6504_v43 = vld [vmem:[#allocation8 + $0x58] sm:$0xff]  ;;  %4818 = vmatpush.bf16.msrb.mxu3 %v6521_v56 }
 0x37e   :  { %v2800_v61 = vadd.f32 %v2799_v14, %v8237_v63  ;;  %v2848_v31 = vpop.f32.mrf.mxu1  ;;  %v3809_v39 = vmul.f32 %v8430_v13, %v3808_v16  ;;  %v3877_v16 = vand.u32 2147483648, %v8432_v62 }
 0x37f   :  { %v8451_v1 = vadd.f32 %v2944_v48, %v2896_v2  ;;  %v2849_v15 = vadd.f32 %v2848_v31, %v8266_v58  ;;  %v6495_v31 = vld [vmem:[#allocation8 + $0x10] sm:$0xff] }
 0x380   :  { %v6698_v5 = vpop.eup %6697  ;;  %v6059_v25 = vmul.f32 -1.442695, %v2800_v61  ;;  %v3810_v63 = vadd.f32 %v8430_v13, %v3809_v39  ;;  %v3875_v61 = vand.u32 2147483647, %v8432_v62  ;;  %4721 = vmatpush.bf16.msrb.mxu1 %v6504_v43 }
 0x381   :  { %v6700_v20 = vpop.eup %6699  ;;  %v8454_v42 = vadd.f32 1.0, %v6698_v5 }
 0x382   :  { %6701 = vpow2.f32 %v6059_v25  ;;  %v3867_v50 = vmul.f32 %v6700_v20, %v8432_v62  ;;  %vm3872_vm9 = vweird.f32 %v6700_v20  ;;  %vm3876_vm15 = vcmp.eq.f32.partialorder %v3875_v61, 8.507059e+37 }
 0x383   :  { %6703 = vrcp.f32 %v8454_v42  ;;  %vm8487_vm14 = vmor %vm3871_vm12, %vm3872_vm9  ;;  %v3935_v56 = vand.u32 2147483647, %v8454_v42  ;;  %vm3931_vm1 = vweird.f32 %v8454_v42 }
 0x384   :  { %v2897_v32 = vpop.f32.mrf.mxu2  ;;  %v3868_v23 = vsub.f32 1.0, %v3867_v50 }
 0x385   :  { %v8462_v6 = vadd.f32 %v2897_v32, %v2849_v15  ;;  %v8464_v37 = vpop.f32.mrf.mxu3  ;;  %v2802_v54 = vpop.f32.mrf.mxu0  ;;  %v9359_v32 = vld [vmem:[#allocation51_spill] sm:$0xff]  ;;  %vm8539_vm4 = vcmp.eq.f32.partialorder %v3935_v56, 8.507059e+37 }
 0x386   :  { %v2803_v2 = vadd.f32 %v2802_v54, %v8244_v10  ;;  %v2851_v48 = vpop.f32.mrf.mxu1  ;;  %v3869_v14 = vmul.f32 %v6700_v20, %v3868_v23  ;;  %v3814_v10 = vsel %vm8473_vm11, %v8430_v13, %v3810_v63  ;;  %v6512_v13 = vld [vmem:[#allocation8 + $0x98] sm:$0xff]  ;;  %v3818_v23 = vor.u32 1.1754944e-38, %v3817_v52 }
 0x387   :  { %v6496_v63 = vld [vmem:[#allocation8 + $0x18] sm:$0xff]  ;;  %v3878_v54 = vor.u32 1.1754944e-38, %v3877_v16  ;;  %4770 = vmatpush.bf16.msrb.mxu2 %v6512_v13 }
 0x388   :  { %v6702_v5 = vpop.eup %6701  ;;  %v6063_v25 = vmul.f32 -1.442695, %v2803_v2  ;;  %2997 = vmatmul.bf16.gmra.mxu0 %v7046_v11  ;;  %v3870_v39 = vadd.f32 %v6700_v20, %v3869_v14  ;;  %v2852_v11 = vadd.f32 %v2851_v48, %v8266_v58 }
 0x389   :  { %v8491_v15 = vpop.eup %6703  ;;  %v8493_v62 = vadd.f32 1.0, %v6702_v5  ;;  %3046 = vmatmul.bf16.gmra.mxu1 %v7156_v33  ;;  %3095 = vmatmul.bf16.gmra.mxu2 %v9359_v32  ;;  %v8506_v33 = vsel %vm8482_vm13, %v3818_v23, %v3814_v10  ;;  %v6503_v5 = vld [vmem:[#allocation8 + $0x50] sm:$0xff]  ;;  %v6502_v23 = vld [vmem:[#allocation8 + $0x48] sm:$0xff] }
 0x38a   :  { %v3927_v49 = vmul.f32 %v8491_v15, %v8454_v42  ;;  %6705 = vpow2.f32 %v6063_v25  ;;  %3144 = vmatmul.bf16.gmra.mxu3 %v9325_v30  ;;  %v3874_v2 = vsel %vm8487_vm14, %v6700_v20, %v3870_v39  ;;  %4672 = vmatpush.bf16.msrb.mxu0 %v6496_v63  ;;  %v6511_v25 = vld [vmem:[#allocation8 + $0x90] sm:$0xff]  ;;  %vm3932_vm0 = vweird.f32 %v8491_v15 }
 0x38b   :  { %6707 = vrcp.f32 %v8493_v62  ;;  %v8508_v52 = vsel %vm3876_vm15, %v3878_v54, %v3874_v2  ;;  %4771 = vmatpush.bf16.msrb.mxu2 %v6511_v25  ;;  %4722 = vmatpush.bf16.msrb.mxu1 %v6503_v5  ;;  %v6510_v54 = vld [vmem:[#allocation8 + $0x88] sm:$0xff]  ;;  %v6501_v5 = vld [vmem:[#allocation8 + $0x40] sm:$0xff]  ;;  %vm8535_vm3 = vmor %vm3931_vm1, %vm3932_vm0  ;;  %vm3991_vm5 = vweird.f32 %v8493_v62 }
 0x38c   :  { %v2900_v16 = vpop.f32.mrf.mxu2  ;;  %v4390_v30 = vpack.c.bf16 %v8508_v52, %v8506_v33  ;;  %v3928_v48 = vsub.f32 1.0, %v3927_v49  ;;  %v6509_v25 = vld [vmem:[#allocation8 + $0x80] sm:$0xff] }
 0x38d   :  { %v2901_v14 = vadd.f32 %v2900_v16, %v2852_v11  ;;  %v2949_v20 = vpop.f32.mrf.mxu3  ;;  %v2804_v61 = vpop.f32.mrf.mxu0  ;;  %v6494_v11 = vld [vmem:[#allocation8 + $0x8] sm:$0xff] }
 0x38e   :  { %v2805_v39 = vadd.f32 %v2804_v61, %v8247_v35  ;;  %v2853_v34 = vpop.f32.mrf.mxu1  ;;  %4673 = vmatpush.bf16.msrb.mxu0 %v6495_v31  ;;  %v3929_v13 = vmul.f32 %v8491_v15, %v3928_v48  ;;  %v6493_v31 = vld [vmem:[#allocation8] sm:$0xff] }
 0x38f   :  { %v8513_v10 = vadd.f32 %v2949_v20, %v2901_v14  ;;  %v2854_v35 = vadd.f32 %v2853_v34, %v8266_v58  ;;  %4772 = vmatpush.bf16.msrb.mxu2 %v6510_v54  ;;  %4723 = vmatpush.bf16.msrb.mxu1 %v6502_v23  ;;  %v3997_v34 = vand.u32 2147483648, %v8493_v62 }
 0x390   :  { %v6706_v50 = vpop.eup %6705  ;;  %v6067_v32 = vmul.f32 -1.442695, %v2805_v39  ;;  %v3930_v16 = vadd.f32 %v8491_v15, %v3929_v13  ;;  %v3937_v39 = vand.u32 2147483648, %v8454_v42 }
 0x391   :  { %v6708_v63 = vpop.eup %6707  ;;  %v8516_v43 = vadd.f32 1.0, %v6706_v50 }
 0x392   :  { %6709 = vpow2.f32 %v6067_v32  ;;  %v3987_v49 = vmul.f32 %v6708_v63, %v8493_v62  ;;  %4674 = vmatpush.bf16.msrb.mxu0 %v6494_v11  ;;  %vm3992_vm2 = vweird.f32 %v6708_v63  ;;  %v3995_v11 = vand.u32 2147483647, %v8493_v62  ;;  %v6520_v62 = vld [vmem:[#allocation8 + $0xd8] sm:$0xff] }
 0x393   :  { %6711 = vrcp.f32 %v8516_v43  ;;  %4773 = vmatpush.bf16.msrb.mxu2 %v6509_v25  ;;  %4724 = vmatpush.bf16.msrb.mxu1 %v6501_v5  ;;  %vm3993_vm6 = vmor %vm3991_vm5, %vm3992_vm2  ;;  %vm4051_vm9 = vweird.f32 %v8516_v43 }
 0x394   :  { %v2902_v2 = vpop.f32.mrf.mxu2  ;;  %v3988_v48 = vsub.f32 1.0, %v3987_v49  ;;  %vm3996_vm7 = vcmp.eq.f32.partialorder %v3995_v11, 8.507059e+37  ;;  %4819 = vmatpush.bf16.msrb.mxu3 %v6520_v62 }
 0x395   :  { %v8524_v14 = vadd.f32 %v2902_v2, %v2854_v35  ;;  %v8526_v20 = vpop.f32.mrf.mxu3  ;;  %v2807_v61 = vpop.f32.mrf.mxu0 }
 0x396   :  { %v2808_v50 = vadd.f32 %v2807_v61, %v8254_v28  ;;  %v2856_v32 = vpop.f32.mrf.mxu1  ;;  %v3989_v13 = vmul.f32 %v6708_v63, %v3988_v48  ;;  %4675 = vmatpush.bf16.msrb.mxu0 %v6493_v31  ;;  %v3934_v28 = vsel %vm8535_vm3, %v8491_v15, %v3930_v16  ;;  %v9364_v61 = vld [vmem:[#allocation54_spill] sm:$0xff]  ;;  %v3938_v31 = vor.u32 1.1754944e-38, %v3937_v39  ;;  %v6519_v39 = vld [vmem:[#allocation8 + $0xd0] sm:$0xff] }
 0x397   :  { %v2857_v56 = vadd.f32 %v2856_v32, %v8266_v58 }
 0x398   :  { %v6710_v42 = vpop.eup %6709  ;;  %v6071_v49 = vmul.f32 -1.442695, %v2808_v50  ;;  %3002 = vmatmul.bf16.gmra.mxu0 %v7058_v47  ;;  %v3990_v35 = vadd.f32 %v6708_v63, %v3989_v13  ;;  %v3998_v47 = vor.u32 1.1754944e-38, %v3997_v34  ;;  %4820 = vmatpush.bf16.msrb.mxu3 %v6519_v39  ;;  %v4057_v39 = vand.u32 2147483648, %v8516_v43 }
 0x399   :  { %v8548_v2 = vpop.eup %6711  ;;  %v8550_v48 = vadd.f32 1.0, %v6710_v42  ;;  %3051 = vmatmul.bf16.gmra.mxu1 %v9275_v21  ;;  %3100 = vmatmul.bf16.gmra.mxu2 %v9364_v61  ;;  %v8562_v21 = vsel %vm8539_vm4, %v3938_v31, %v3934_v28 }
 0x39a   :  { %v4047_v15 = vmul.f32 %v8548_v2, %v8516_v43  ;;  %6713 = vpow2.f32 %v6071_v49  ;;  %3149 = vmatmul.bf16.gmra.mxu3 %v9328_v57  ;;  %v3994_v16 = vsel %vm3993_vm6, %v6708_v63, %v3990_v35  ;;  %vm4052_vm8 = vweird.f32 %v8548_v2 }
 0x39b   :  { %6715 = vrcp.f32 %v8550_v48  ;;  %v8564_v5 = vsel %vm3996_vm7, %v3998_v47, %v3994_v16  ;;  %vm8589_vm11 = vmor %vm4051_vm9, %vm4052_vm8  ;;  %vm4111_vm13 = vweird.f32 %v8550_v48 }
 0x39c   :  { %v2905_v25 = vpop.f32.mrf.mxu2  ;;  %v4394_v34 = vpack.c.bf16 %v8564_v5, %v8562_v21  ;;  %v4048_v50 = vsub.f32 1.0, %v4047_v15 }
 0x39d   :  { %v2906_v32 = vadd.f32 %v2905_v25, %v2857_v56  ;;  %v2954_v57 = vpop.f32.mrf.mxu3  ;;  %v2809_v13 = vpop.f32.mrf.mxu0 }
 0x39e   :  { %v2810_v63 = vadd.f32 %v2809_v13, %v8257_v29  ;;  %v2858_v11 = vpop.f32.mrf.mxu1  ;;  %v4049_v49 = vmul.f32 %v8548_v2, %v4048_v50  ;;  %v4055_v29 = vand.u32 2147483647, %v8516_v43  ;;  %v4117_v50 = vand.u32 2147483648, %v8550_v48 }
 0x39f   :  { %v8569_v23 = vadd.f32 %v2954_v57, %v2906_v32  ;;  %v2859_v56 = vadd.f32 %v2858_v11, %v8266_v58 }
 0x3a0   :  { %v6714_v54 = vpop.eup %6713  ;;  %v6075_v42 = vmul.f32 -1.442695, %v2810_v63  ;;  %v4050_v47 = vadd.f32 %v8548_v2, %v4049_v49  ;;  %v4115_v63 = vand.u32 2147483647, %v8550_v48  ;;  %vm8593_vm12 = vcmp.eq.f32.partialorder %v4055_v29, 8.507059e+37 }
 0x3a1   :  { %v6716_v28 = vpop.eup %6715  ;;  %v8572_v35 = vadd.f32 1.0, %v6714_v54 }
 0x3a2   :  { %6717 = vpow2.f32 %v6075_v42  ;;  %v4107_v61 = vmul.f32 %v6716_v28, %v8550_v48  ;;  %vm4112_vm10 = vweird.f32 %v6716_v28  ;;  %vm4116_vm15 = vcmp.eq.f32.partialorder %v4115_v63, 8.507059e+37 }
 0x3a3   :  { %6719 = vrcp.f32 %v8572_v35  ;;  %vm4113_vm14 = vmor %vm4111_vm13, %vm4112_vm10  ;;  %vm4171_vm1 = vweird.f32 %v8572_v35 }
 0x3a4   :  { %v2907_v31 = vpop.f32.mrf.mxu2  ;;  %v4108_v15 = vsub.f32 1.0, %v4107_v61 }
 0x3a5   :  { %v8580_v62 = vadd.f32 %v2907_v31, %v2859_v56  ;;  %v8582_v16 = vpop.f32.mrf.mxu3  ;;  %v2812_v25 = vpop.f32.mrf.mxu0  ;;  %v4058_v31 = vor.u32 1.1754944e-38, %v4057_v39 }
 0x3a6   :  { %v2813_v32 = vadd.f32 %v2812_v25, %v8264_v7  ;;  %v2861_v57 = vpop.f32.mrf.mxu1  ;;  %v4109_v13 = vmul.f32 %v6716_v28, %v4108_v15  ;;  %v4054_v7 = vsel %vm8589_vm11, %v8548_v2, %v4050_v47 }
 0x3a7   :  { %v2862_v29 = vadd.f32 %v2861_v57, %v8266_v58  ;;  %v8616_v47 = vsel %vm8593_vm12, %v4058_v31, %v4054_v7 }
 0x3a8   :  { %v6718_v42 = vpop.eup %6717  ;;  %v6079_v49 = vmul.f32 -1.442695, %v2813_v32  ;;  %3007 = vmatmul.bf16.gmra.mxu0 %v9289_v9  ;;  %v4110_v43 = vadd.f32 %v6716_v28, %v4109_v13  ;;  %v4118_v9 = vor.u32 1.1754944e-38, %v4117_v50 }
 0x3a9   :  { %v8602_v61 = vpop.eup %6719  ;;  %v8604_v56 = vadd.f32 1.0, %v6718_v42  ;;  %3056 = vmatmul.bf16.gmra.mxu1 %v9290_v8  ;;  %3105 = vmatmul.bf16.gmra.mxu2 %v9233_v3 }
 0x3aa   :  { %v4167_v2 = vmul.f32 %v8602_v61, %v8572_v35  ;;  %6721 = vpow2.f32 %v6079_v49  ;;  %3154 = vmatmul.bf16.gmra.mxu3 %v9331_v40  ;;  %v4114_v48 = vsel %vm4113_vm14, %v6716_v28, %v4110_v43  ;;  %vm4172_vm0 = vweird.f32 %v8602_v61 }
 0x3ab   :  { %6723 = vrcp.f32 %v8604_v56  ;;  %v8618_v8 = vsel %vm4116_vm15, %v4118_v9, %v4114_v48  ;;  %v4177_v48 = vand.u32 2147483648, %v8572_v35  ;;  %vm8643_vm3 = vmor %vm4171_vm1, %vm4172_vm0  ;;  %vm4231_vm4 = vweird.f32 %v8604_v56 }
 0x3ac   :  { %v2910_v3 = vpop.f32.mrf.mxu2  ;;  %v4398_v15 = vpack.c.bf16 %v8618_v8, %v8616_v47  ;;  %v4168_v25 = vsub.f32 1.0, %v4167_v2 }
 0x3ad   :  { %v2911_v39 = vadd.f32 %v2910_v3, %v2862_v29  ;;  %v2959_v50 = vpop.f32.mrf.mxu3  ;;  %v2814_v32 = vpop.f32.mrf.mxu0  ;;  %v4237_v3 = vand.u32 2147483648, %v8604_v56 }
 0x3ae   :  { %v2815_v40 = vadd.f32 %v2814_v32, %v8269_v51  ;;  %v2863_v28 = vpop.f32.mrf.mxu1  ;;  %v4169_v11 = vmul.f32 %v8602_v61, %v4168_v25 }
 0x3af   :  { %v8623_v57 = vadd.f32 %v2959_v50, %v2911_v39  ;;  %v2864_v7 = vadd.f32 %v2863_v28, %v8266_v58  ;;  %v4175_v58 = vand.u32 2147483647, %v8572_v35  ;;  %v4235_v50 = vand.u32 2147483647, %v8604_v56 }
 0x3b0   :  { %v6722_v13 = vpop.eup %6721  ;;  %v6083_v63 = vmul.f32 -1.442695, %v2815_v40  ;;  %v4170_v51 = vadd.f32 %v8602_v61, %v4169_v11 }
 0x3b1   :  { %v6724_v54 = vpop.eup %6723  ;;  %v8626_v42 = vadd.f32 1.0, %v6722_v13  ;;  %v9371_v13 = vld [vmem:[#allocation60_spill] sm:$0xff]  ;;  %vm4176_vm6 = vcmp.eq.f32.partialorder %v4175_v58, 8.507059e+37  ;;  %vm4236_vm7 = vcmp.eq.f32.partialorder %v4235_v50, 8.507059e+37 }
 0x3b2   :  { %6725 = vpow2.f32 %v6083_v63  ;;  %v4227_v49 = vmul.f32 %v6724_v54, %v8604_v56  ;;  %vm4232_vm2 = vweird.f32 %v6724_v54  ;;  %v9372_v63 = vld [vmem:[#allocation59_spill] sm:$0xff]  ;;  %v6518_v58 = vld [vmem:[#allocation8 + $0xc8] sm:$0xff] }
 0x3b3   :  { %6727 = vrcp.f32 %v8626_v42  ;;  %v9373_v11 = vpack.c.bf16 %v9371_v13, %v9372_v63  ;;  %v4178_v13 = vor.u32 1.1754944e-38, %v4177_v48  ;;  %vm4233_vm5 = vmor %vm4231_vm4, %vm4232_vm2  ;;  %v4238_v63 = vor.u32 1.1754944e-38, %v4237_v3  ;;  %4821 = vmatpush.bf16.msrb.mxu3 %v6518_v58  ;;  %v9378_v58 = vld [vmem:[#allocation61_spill] sm:$0xff] }
 0x3b4   :  { %v2912_v43 = vpop.f32.mrf.mxu2  ;;  %v4228_v29 = vsub.f32 1.0, %v4227_v49  ;;  %v4174_v49 = vsel %vm8643_vm3, %v8602_v61, %v4170_v51  ;;  %vm4291_vm10 = vweird.f32 %v8626_v42 }
 0x3b5   :  { %v8633_v31 = vadd.f32 %v2912_v43, %v2864_v7  ;;  %v8635_v9 = vpop.f32.mrf.mxu3  ;;  %v2973_v2 = vpop.f32.mrf.mxu0 }
 0x3b6   :  { %v3022_v25 = vpop.f32.mrf.mxu1  ;;  %v4229_v39 = vmul.f32 %v6724_v54, %v4228_v29  ;;  %v2974_v32 = vadd.f32 %v2973_v2, %v8277_v19  ;;  %v9374_v19 = vld [vmem:[#allocation22_spill] sm:$0xff] }
 0x3b7   :  { %v9375_v29 = vld [vmem:[#allocation46_spill] sm:$0xff] }
 0x3b8   :  { %v6726_v28 = vpop.eup %6725  ;;  %4676 = vmatmul.bf16.vlgmr.msrb.gmra.mxu0 %v9373_v11  ;;  %v4230_v35 = vadd.f32 %v6724_v54, %v4229_v39  ;;  %v9376_v2 = vpack.c.bf16 %v9374_v19, %v9375_v29  ;;  %v3023_v51 = vadd.f32 %v3022_v25, %v2974_v32  ;;  %v8667_v39 = vsel %vm4176_vm6, %v4178_v13, %v4174_v49 }
 0x3b9   :  { %v8654_v7 = vpop.eup %6727  ;;  %v8656_v43 = vadd.f32 1.0, %v6726_v28  ;;  %4774 = vmatmul.bf16.vlgmr.msrb.gmra.mxu2 %v4378_v0 }
 0x3ba   :  { %4725 = vmatmul.bf16.vlgmr.msrb.gmra.mxu1 %v9376_v2  ;;  %v4287_v61 = vmul.f32 %v8654_v7, %v8626_v42  ;;  %v4234_v56 = vsel %vm4233_vm5, %v6724_v54, %v4230_v35  ;;  %v6517_v2 = vld [vmem:[#allocation8 + $0xc0] sm:$0xff]  ;;  %vm4292_vm8 = vweird.f32 %v8654_v7 }
 0x3bb   :  { %6729 = vrcp.f32 %v8656_v43  ;;  %v8669_v40 = vsel %vm4236_vm7, %v4238_v63, %v4234_v56  ;;  %4822 = vmatpush.bf16.msrb.mxu3 %v6517_v2  ;;  %vm8687_vm11 = vmor %vm4291_vm10, %vm4292_vm8  ;;  %vm4351_vm12 = vweird.f32 %v8656_v43  ;;  %v9382_v2 = vld [vmem:[#allocation49_spill] sm:$0xff] }
 0x3bc   :  { %v3071_v28 = vpop.f32.mrf.mxu2  ;;  %v4402_v44 = vpack.c.bf16 %v8669_v40, %v8667_v39  ;;  %v4288_v3 = vsub.f32 1.0, %v4287_v61 }
 0x3bd   :  { %v3072_v26 = vadd.f32 %v3071_v28, %v3023_v51  ;;  %v3120_v0 = vpop.f32.mrf.mxu3  ;;  %v2975_v48 = vpop.f32.mrf.mxu0 }
 0x3be   :  { %v3024_v11 = vpop.f32.mrf.mxu1  ;;  %v2976_v54 = vadd.f32 %v2975_v48, %v8284_v38  ;;  %v4289_v25 = vmul.f32 %v8654_v7, %v4288_v3  ;;  %v4357_v38 = vand.u32 2147483648, %v8656_v43  ;;  %v4355_v48 = vand.u32 2147483647, %v8656_v43 }
 0x3bf   :  { %v3121_v19 = vadd.f32 %v3120_v0, %v3072_v26  ;;  %v4297_v26 = vand.u32 2147483648, %v8626_v42 }
 0x3c0   :  { %v3025_v49 = vadd.f32 %v3024_v11, %v2976_v54  ;;  %v4290_v51 = vadd.f32 %v8654_v7, %v4289_v25  ;;  %v9377_v54 = vld [vmem:[#allocation62_spill] sm:$0xff]  ;;  %vm4356_vm14 = vcmp.eq.f32.partialorder %v4355_v48, 8.507059e+37 }
 0x3c1   :  { %v6730_v50 = vpop.eup %6729  ;;  %v6024_v35 = vmul.f32 -1.442695, %v3121_v19  ;;  %v4295_v19 = vand.u32 2147483647, %v8626_v42 }
 0x3c2   :  { %v4347_v32 = vmul.f32 %v6730_v50, %v8656_v43  ;;  %vm4352_vm9 = vweird.f32 %v6730_v50  ;;  %v4294_v42 = vsel %vm8687_vm11, %v8654_v7, %v4290_v51  ;;  %v4298_v43 = vor.u32 1.1754944e-38, %v4297_v26 }
 0x3c3   :  { %6731 = vpow2.f32 %v6024_v35  ;;  %v9379_v35 = vpack.c.bf16 %v9377_v54, %v9378_v58  ;;  %vm4353_vm13 = vmor %vm4351_vm12, %vm4352_vm9  ;;  %vm4296_vm15 = vcmp.eq.f32.partialorder %v4295_v19, 8.507059e+37 }
 0x3c4   :  { %v3073_v29 = vpop.f32.mrf.mxu2  ;;  %v4348_v13 = vsub.f32 1.0, %v4347_v32  ;;  %v8707_v46 = vsel %vm4296_vm15, %v4298_v43, %v4294_v42  ;;  %v9385_v42 = vld [vmem:[#allocation64_spill] sm:$0xff] }
 0x3c5   :  { %v3074_v63 = vadd.f32 %v3073_v29, %v3025_v49  ;;  %v3122_v56 = vpop.f32.mrf.mxu3  ;;  %v2978_v61 = vpop.f32.mrf.mxu0 }
 0x3c6   :  { %v3027_v28 = vpop.f32.mrf.mxu1  ;;  %v4349_v0 = vmul.f32 %v6730_v50, %v4348_v13  ;;  %v2979_v11 = vadd.f32 %v2978_v61, %v8299_v24  ;;  %v9383_v13 = vld [vmem:[#allocation47_spill] sm:$0xff] }
 0x3c7   :  { %v3123_v3 = vadd.f32 %v3122_v56, %v3074_v63  ;;  %v9384_v24 = vpack.c.bf16 %v9382_v2, %v9383_v13  ;;  %v4358_v63 = vor.u32 1.1754944e-38, %v4357_v38 }
 0x3c8   :  { %4681 = vmatmul.bf16.gmra.mxu0 %v9379_v35  ;;  %v4350_v32 = vadd.f32 %v6730_v50, %v4349_v0  ;;  %v3028_v0 = vadd.f32 %v3027_v28, %v2979_v11 }
 0x3c9   :  { %v6732_v49 = vpop.eup %6731  ;;  %v6028_v29 = vmul.f32 -1.442695, %v3123_v3  ;;  %4779 = vmatmul.bf16.gmra.mxu2 %v4382_v27 }
 0x3ca   :  { %4730 = vmatmul.bf16.gmra.mxu1 %v9384_v24  ;;  %v8702_v56 = vadd.f32 1.0, %v6732_v49  ;;  %v4354_v61 = vsel %vm4353_vm13, %v6730_v50, %v4350_v32 }
 0x3cb   :  { %6733 = vpow2.f32 %v6028_v29  ;;  %v8704_v3 = vsel %vm4356_vm14, %v4358_v63, %v4354_v61  ;;  %v9386_v63 = vld [vmem:[#allocation63_spill] sm:$0xff] }
 0x3cc   :  { %6735 = vrcp.f32 %v8702_v56  ;;  %v3076_v18 = vpop.f32.mrf.mxu2  ;;  %v4406_v38 = vpack.c.bf16 %v8704_v3, %v8707_v46  ;;  %v9387_v43 = vpack.c.bf16 %v9385_v42, %v9386_v63  ;;  %vm3466_vm1 = vweird.f32 %v8702_v56 }
 0x3cd   :  { %v3077_v27 = vadd.f32 %v3076_v18, %v3028_v0  ;;  %v3125_v7 = vpop.f32.mrf.mxu3  ;;  %v2980_v51 = vpop.f32.mrf.mxu0 }
 0x3ce   :  { %v3029_v54 = vpop.f32.mrf.mxu1  ;;  %v2981_v50 = vadd.f32 %v2980_v51, %v8321_v45 }
 0x3cf   :  { %v3126_v26 = vadd.f32 %v3125_v7, %v3077_v27  ;;  %v9388_v27 = vld [vmem:[#allocation17_spill] sm:$0xff] }
 0x3d0   :  { %v3030_v35 = vadd.f32 %v3029_v54, %v2981_v50  ;;  %v9389_v7 = vld [vmem:[#allocation57_spill] sm:$0xff] }
 0x3d1   :  { %v6734_v48 = vpop.eup %6733  ;;  %v6032_v28 = vmul.f32 -1.442695, %v3126_v26  ;;  %v9390_v51 = vpack.c.bf16 %v9388_v27, %v9389_v7 }
 0x3d2   :  { %v8712_v11 = vpop.eup %6735  ;;  %v3359_v19 = vadd.f32 1.0, %v6734_v48  ;;  %v3472_v48 = vand.u32 2147483648, %v8702_v56 }
 0x3d3   :  { %v3462_v58 = vmul.f32 %v8712_v11, %v8702_v56  ;;  %6737 = vpow2.f32 %v6032_v28  ;;  %vm3467_vm0 = vweird.f32 %v8712_v11 }
 0x3d4   :  { %6739 = vrcp.f32 %v3359_v19  ;;  %v3078_v25 = vpop.f32.mrf.mxu2  ;;  %v3532_v17 = vand.u32 2147483648, %v3359_v19  ;;  %vm8738_vm3 = vmor %vm3466_vm1, %vm3467_vm0  ;;  %v3473_v42 = vor.u32 1.1754944e-38, %v3472_v48  ;;  %vm3526_vm4 = vweird.f32 %v3359_v19 }
 0x3d5   :  { %v3463_v32 = vsub.f32 1.0, %v3462_v58  ;;  %v3079_v49 = vadd.f32 %v3078_v25, %v3030_v35  ;;  %v3127_v29 = vpop.f32.mrf.mxu3  ;;  %v2983_v2 = vpop.f32.mrf.mxu0 }
 0x3d6   :  { %v3032_v13 = vpop.f32.mrf.mxu1  ;;  %v2984_v45 = vadd.f32 %v2983_v2, %v8347_v59 }
 0x3d7   :  { %v3128_v24 = vadd.f32 %v3127_v29, %v3079_v49  ;;  %v3464_v0 = vmul.f32 %v8712_v11, %v3463_v32  ;;  %v3470_v49 = vand.u32 2147483647, %v8702_v56  ;;  %v3530_v29 = vand.u32 2147483647, %v3359_v19 }
 0x3d8   :  { %4686 = vmatmul.bf16.gmra.mxu0 %v9387_v43  ;;  %v3033_v50 = vadd.f32 %v3032_v13, %v2984_v45 }
 0x3d9   :  { %v6738_v61 = vpop.eup %6737  ;;  %v6036_v18 = vmul.f32 -1.442695, %v3128_v24  ;;  %4784 = vmatmul.bf16.gmra.mxu2 %v4386_v12  ;;  %v3465_v4 = vadd.f32 %v8712_v11, %v3464_v0  ;;  %vm3471_vm5 = vcmp.eq.f32.partialorder %v3470_v49, 8.507059e+37  ;;  %vm3531_vm7 = vcmp.eq.f32.partialorder %v3530_v29, 8.507059e+37  ;;  %v9394_v49 = vld [vmem:[#allocation65_spill] sm:$0xff] }
 0x3da   :  { %4735 = vmatmul.bf16.gmra.mxu1 %v9390_v51  ;;  %v6740_v54 = vpop.eup %6739  ;;  %v8727_v26 = vadd.f32 1.0, %v6738_v61 }
 0x3db   :  { %v3522_v59 = vmul.f32 %v6740_v54, %v3359_v19  ;;  %6741 = vpow2.f32 %v6036_v18  ;;  %vm3527_vm2 = vweird.f32 %v6740_v54  ;;  %v3469_v56 = vsel %vm8738_vm3, %v8712_v11, %v3465_v4 }
 0x3dc   :  { %6743 = vrcp.f32 %v8727_v26  ;;  %v3081_v28 = vpop.f32.mrf.mxu2  ;;  %vm3528_vm6 = vmor %vm3526_vm4, %vm3527_vm2  ;;  %vm3586_vm9 = vweird.f32 %v8727_v26 }
 0x3dd   :  { %v3523_v58 = vsub.f32 1.0, %v3522_v59  ;;  %v3082_v35 = vadd.f32 %v3081_v28, %v3033_v50  ;;  %v3130_v25 = vpop.f32.mrf.mxu3  ;;  %v2985_v32 = vpop.f32.mrf.mxu0  ;;  %v3474_v59 = vsel %vm3471_vm5, %v3473_v42, %v3469_v56 }
 0x3de   :  { %v3034_v12 = vpop.f32.mrf.mxu1  ;;  %v2986_v24 = vadd.f32 %v2985_v32, %v8363_v55  ;;  %v3533_v55 = vor.u32 1.1754944e-38, %v3532_v17  ;;  %v9393_v17 = vld [vmem:[#allocation66_spill] sm:$0xff] }
 0x3df   :  { %v3524_v2 = vmul.f32 %v6740_v54, %v3523_v58  ;;  %v3131_v13 = vadd.f32 %v3130_v25, %v3082_v35  ;;  %v9395_v29 = vpack.c.bf16 %v9393_v17, %v9394_v49 }
 0x3e0   :  { %v3035_v7 = vadd.f32 %v3034_v12, %v2986_v24 }
 0x3e1   :  { %v6742_v63 = vpop.eup %6741  ;;  %v6040_v43 = vmul.f32 -1.442695, %v3131_v13  ;;  %v3525_v61 = vadd.f32 %v6740_v54, %v3524_v2  ;;  %v9396_v2 = vld [vmem:[#allocation76_spill] sm:$0xff]  ;;  %v9397_v13 = vld [vmem:[#allocation75_spill] sm:$0xff] }
 0x3e2   :  { %v8745_v0 = vpop.eup %6743  ;;  %v8747_v18 = vadd.f32 1.0, %v6742_v63  ;;  %v9398_v24 = vpack.c.bf16 %v9396_v2, %v9397_v13 }
 0x3e3   :  { %v3582_v27 = vmul.f32 %v8745_v0, %v8727_v26  ;;  %6745 = vpow2.f32 %v6040_v43  ;;  %v3529_v19 = vsel %vm3528_vm6, %v6740_v54, %v3525_v61  ;;  %v3590_v61 = vand.u32 2147483647, %v8727_v26 }
 0x3e4   :  { %6747 = vrcp.f32 %v8747_v18  ;;  %v3083_v51 = vpop.f32.mrf.mxu2  ;;  %v3534_v11 = vsel %vm3531_vm7, %v3533_v55, %v3529_v19  ;;  %vm3587_vm8 = vweird.f32 %v8745_v0  ;;  %v3592_v19 = vand.u32 2147483648, %v8727_v26 }
 0x3e5   :  { %v3084_v50 = vadd.f32 %v3083_v51, %v3035_v7  ;;  %v3132_v48 = vpop.f32.mrf.mxu3  ;;  %v2988_v28 = vpop.f32.mrf.mxu0  ;;  %v4379_v58 = vpack.c.bf16 %v3534_v11, %v3474_v59  ;;  %v3583_v35 = vsub.f32 1.0, %v3582_v27  ;;  %v3650_v51 = vand.u32 2147483647, %v8747_v18  ;;  %vm8775_vm11 = vmor %vm3586_vm9, %vm3587_vm8 }
 0x3e6   :  { %v3037_v25 = vpop.f32.mrf.mxu1  ;;  %v2989_v4 = vadd.f32 %v2988_v28, %v8399_v22  ;;  %v3652_v59 = vand.u32 2147483648, %v8747_v18  ;;  %vm8779_vm12 = vcmp.eq.f32.partialorder %v3590_v61, 8.507059e+37  ;;  %vm3646_vm13 = vweird.f32 %v8747_v18 }
 0x3e7   :  { %v3133_v32 = vadd.f32 %v3132_v48, %v3084_v50  ;;  %4823 = vmatmul.bf16.vlgmr.msrb.gmra.mxu3 %v4379_v58  ;;  %v3584_v45 = vmul.f32 %v8745_v0, %v3583_v35  ;;  %v3593_v17 = vor.u32 1.1754944e-38, %v3592_v19  ;;  %vm3651_vm15 = vcmp.eq.f32.partialorder %v3650_v51, 8.507059e+37  ;;  %v9407_v19 = vld [vmem:[#allocation53_spill] sm:$0xff] }
 0x3e8   :  { %4691 = vmatmul.bf16.gmra.mxu0 %v9395_v29  ;;  %v3038_v22 = vadd.f32 %v3037_v25, %v2989_v4  ;;  %v3653_v49 = vor.u32 1.1754944e-38, %v3652_v59  ;;  %v2947_v28 = vadd.f32 %v8464_v37, %v8462_v6 }
 0x3e9   :  { %v6746_v54 = vpop.eup %6745  ;;  %v6044_v12 = vmul.f32 -1.442695, %v3133_v32  ;;  %4789 = vmatmul.bf16.gmra.mxu2 %v4390_v30  ;;  %v3585_v33 = vadd.f32 %v8745_v0, %v3584_v45 }
 0x3ea   :  { %4740 = vmatmul.bf16.gmra.mxu1 %v9398_v24  ;;  %v6748_v42 = vpop.eup %6747  ;;  %v8763_v63 = vadd.f32 1.0, %v6746_v54 }
 0x3eb   :  { %6749 = vpow2.f32 %v6044_v12  ;;  %v3642_v43 = vmul.f32 %v6748_v42, %v8747_v18  ;;  %vm3647_vm10 = vweird.f32 %v6748_v42  ;;  %v3589_v26 = vsel %vm8775_vm11, %v8745_v0, %v3585_v33 }
 0x3ec   :  { %6751 = vrcp.f32 %v8763_v63  ;;  %v3086_v56 = vpop.f32.mrf.mxu2  ;;  %vm3648_vm14 = vmor %vm3646_vm13, %vm3647_vm10  ;;  %v3594_v18 = vsel %vm8779_vm12, %v3593_v17, %v3589_v26  ;;  %vm3706_vm1 = vweird.f32 %v8763_v63  ;;  %v3712_v17 = vand.u32 2147483648, %v8763_v63 }
 0x3ed   :  { %v3087_v55 = vadd.f32 %v3086_v56, %v3038_v22  ;;  %v3135_v27 = vpop.f32.mrf.mxu3  ;;  %v2990_v7 = vpop.f32.mrf.mxu0  ;;  %v3643_v52 = vsub.f32 1.0, %v3642_v43 }
 0x3ee   :  { %v3039_v30 = vpop.f32.mrf.mxu1  ;;  %v2991_v50 = vadd.f32 %v2990_v7, %v8415_v41  ;;  %v9404_v7 = vld [vmem:[#allocation67_spill] sm:$0xff] }
 0x3ef   :  { %v3136_v11 = vadd.f32 %v3135_v27, %v3087_v55  ;;  %v3644_v48 = vmul.f32 %v6748_v42, %v3643_v52  ;;  %v9403_v27 = vld [vmem:[#allocation68_spill] sm:$0xff] }
 0x3f0   :  { %v3040_v54 = vadd.f32 %v3039_v30, %v2991_v50  ;;  %v9406_v30 = vld [vmem:[#allocation77_spill] sm:$0xff] }
 0x3f1   :  { %v6750_v35 = vpop.eup %6749  ;;  %v6048_v25 = vmul.f32 -1.442695, %v3136_v11  ;;  %v3645_v32 = vadd.f32 %v6748_v42, %v3644_v48  ;;  %v9408_v51 = vpack.c.bf16 %v9406_v30, %v9407_v19 }
 0x3f2   :  { %v8787_v41 = vpop.eup %6751  ;;  %v8789_v4 = vadd.f32 1.0, %v6750_v35  ;;  %v3710_v35 = vand.u32 2147483647, %v8763_v63 }
 0x3f3   :  { %v3702_v29 = vmul.f32 %v8787_v41, %v8763_v63  ;;  %6753 = vpow2.f32 %v6048_v25  ;;  %v3649_v12 = vsel %vm3648_vm14, %v6748_v42, %v3645_v32  ;;  %v9405_v42 = vpack.c.bf16 %v9403_v27, %v9404_v7 }
 0x3f4   :  { %6755 = vrcp.f32 %v8789_v4  ;;  %v3088_v0 = vpop.f32.mrf.mxu2  ;;  %v3654_v2 = vsel %vm3651_vm15, %v3653_v49, %v3649_v12  ;;  %vm3707_vm0 = vweird.f32 %v8787_v41  ;;  %v3770_v6 = vand.u32 2147483647, %v8789_v4 }
 0x3f5   :  { %v3089_v13 = vadd.f32 %v3088_v0, %v3040_v54  ;;  %v3137_v24 = vpop.f32.mrf.mxu3  ;;  %v2993_v45 = vpop.f32.mrf.mxu0  ;;  %v4383_v22 = vpack.c.bf16 %v3654_v2, %v3594_v18  ;;  %v3703_v43 = vsub.f32 1.0, %v3702_v29  ;;  %v3772_v37 = vand.u32 2147483648, %v8789_v4  ;;  %vm8820_vm3 = vmor %vm3706_vm1, %vm3707_vm0 }
 0x3f6   :  { %v3042_v56 = vpop.f32.mrf.mxu1  ;;  %v2994_v55 = vadd.f32 %v2993_v45, %v8451_v1  ;;  %vm8824_vm4 = vcmp.eq.f32.partialorder %v3710_v35, 8.507059e+37  ;;  %vm3766_vm5 = vweird.f32 %v8789_v4  ;;  %vm3771_vm7 = vcmp.eq.f32.partialorder %v3770_v6, 8.507059e+37  ;;  %v9416_v35 = vld [vmem:[#allocation37_spill] sm:$0xff] }
 0x3f7   :  { %v3138_v61 = vadd.f32 %v3137_v24, %v3089_v13  ;;  %4828 = vmatmul.bf16.gmra.mxu3 %v4383_v22  ;;  %v3704_v59 = vmul.f32 %v8787_v41, %v3703_v43  ;;  %v3713_v22 = vor.u32 1.1754944e-38, %v3712_v17  ;;  %v3773_v43 = vor.u32 1.1754944e-38, %v3772_v37 }
 0x3f8   :  { %4696 = vmatmul.bf16.gmra.mxu0 %v9405_v42  ;;  %v3043_v1 = vadd.f32 %v3042_v56, %v2994_v55  ;;  %v2952_v17 = vadd.f32 %v8526_v20, %v8524_v14 }
 0x3f9   :  { %v6754_v33 = vpop.eup %6753  ;;  %v6052_v52 = vmul.f32 -1.442695, %v3138_v61  ;;  %4794 = vmatmul.bf16.gmra.mxu2 %v4394_v34  ;;  %v3705_v34 = vadd.f32 %v8787_v41, %v3704_v59 }
 0x3fa   :  { %4745 = vmatmul.bf16.gmra.mxu1 %v9408_v51  ;;  %v6756_v11 = vpop.eup %6755  ;;  %v8807_v50 = vadd.f32 1.0, %v6754_v33 }
 0x3fb   :  { %6757 = vpow2.f32 %v6052_v52  ;;  %v3762_v48 = vmul.f32 %v6756_v11, %v8789_v4  ;;  %vm3767_vm2 = vweird.f32 %v6756_v11  ;;  %v3709_v63 = vsel %vm8820_vm3, %v8787_v41, %v3705_v34 }
 0x3fc   :  { %6759 = vrcp.f32 %v8807_v50  ;;  %v3091_v58 = vpop.f32.mrf.mxu2  ;;  %vm3768_vm6 = vmor %vm3766_vm5, %vm3767_vm2  ;;  %v3714_v4 = vsel %vm8824_vm4, %v3713_v22, %v3709_v63  ;;  %v3830_v37 = vand.u32 2147483647, %v8807_v50  ;;  %vm3826_vm9 = vweird.f32 %v8807_v50 }
 0x3fd   :  { %v3092_v25 = vadd.f32 %v3091_v58, %v3043_v1  ;;  %v3140_v21 = vpop.f32.mrf.mxu3  ;;  %v2995_v5 = vpop.f32.mrf.mxu0  ;;  %v3763_v26 = vsub.f32 1.0, %v3762_v48  ;;  %v9413_v1 = vld [vmem:[#allocation70_spill] sm:$0xff]  ;;  %v9414_v48 = vld [vmem:[#allocation69_spill] sm:$0xff]  ;;  %v3832_v12 = vand.u32 2147483648, %v8807_v50 }
 0x3fe   :  { %v3044_v32 = vpop.f32.mrf.mxu1  ;;  %v2996_v29 = vadd.f32 %v2995_v5, %v2947_v28  ;;  %vm8869_vm12 = vcmp.eq.f32.partialorder %v3830_v37, 8.507059e+37 }
 0x3ff   :  { %v3141_v49 = vadd.f32 %v3140_v21, %v3092_v25  ;;  %v3764_v54 = vmul.f32 %v6756_v11, %v3763_v26  ;;  %v9417_v25 = vld [vmem:[#allocation36_spill] sm:$0xff] }
 0x400   :  { %v3045_v61 = vadd.f32 %v3044_v32, %v2996_v29  ;;  %v9418_v21 = vpack.c.bf16 %v9416_v35, %v9417_v25 }
 0x401   :  { %v6758_v18 = vpop.eup %6757  ;;  %v6056_v2 = vmul.f32 -1.442695, %v3141_v49  ;;  %v3765_v13 = vadd.f32 %v6756_v11, %v3764_v54 }
 0x402   :  { %v8832_v24 = vpop.eup %6759  ;;  %v8834_v45 = vadd.f32 1.0, %v6758_v18 }
 0x403   :  { %v3822_v56 = vmul.f32 %v8832_v24, %v8807_v50  ;;  %6761 = vpow2.f32 %v6056_v2  ;;  %v3769_v55 = vsel %vm3768_vm6, %v6756_v11, %v3765_v13  ;;  %v9415_v11 = vpack.c.bf16 %v9413_v1, %v9414_v48 }
 0x404   :  { %6763 = vrcp.f32 %v8834_v45  ;;  %v3093_v41 = vpop.f32.mrf.mxu2  ;;  %v3774_v27 = vsel %vm3771_vm7, %v3773_v43, %v3769_v55  ;;  %vm3827_vm8 = vweird.f32 %v8832_v24  ;;  %v3890_v14 = vand.u32 2147483647, %v8834_v45 }
 0x405   :  { %v3094_v7 = vadd.f32 %v3093_v41, %v3045_v61  ;;  %v3142_v42 = vpop.f32.mrf.mxu3  ;;  %v2998_v33 = vpop.f32.mrf.mxu0  ;;  %v4387_v52 = vpack.c.bf16 %v3774_v27, %v3714_v4  ;;  %v3823_v30 = vsub.f32 1.0, %v3822_v56  ;;  %v3892_v20 = vand.u32 2147483648, %v8834_v45  ;;  %vm8865_vm11 = vmor %vm3826_vm9, %vm3827_vm8 }
 0x406   :  { %v3047_v19 = vpop.f32.mrf.mxu1  ;;  %v2999_v59 = vadd.f32 %v2998_v33, %v8513_v10  ;;  %vm3886_vm13 = vweird.f32 %v8834_v45  ;;  %v3833_v41 = vor.u32 1.1754944e-38, %v3832_v12  ;;  %vm3891_vm15 = vcmp.eq.f32.partialorder %v3890_v14, 8.507059e+37 }
 0x407   :  { %v3143_v51 = vadd.f32 %v3142_v42, %v3094_v7  ;;  %4833 = vmatmul.bf16.gmra.mxu3 %v4387_v52  ;;  %v3824_v5 = vmul.f32 %v8832_v24, %v3823_v30  ;;  %v3893_v4 = vor.u32 1.1754944e-38, %v3892_v20 }
 0x408   :  { %4701 = vmatmul.bf16.gmra.mxu0 %v9415_v11  ;;  %v3048_v10 = vadd.f32 %v3047_v19, %v2999_v59 }
 0x409   :  { %v6762_v28 = vpop.eup %6761  ;;  %v6060_v58 = vmul.f32 -1.442695, %v3143_v51  ;;  %4799 = vmatmul.bf16.gmra.mxu2 %v4398_v15  ;;  %v3825_v15 = vadd.f32 %v8832_v24, %v3824_v5  ;;  %v9426_v5 = vld [vmem:[#allocation40_spill] sm:$0xff] }
 0x40a   :  { %4750 = vmatmul.bf16.gmra.mxu1 %v9418_v21  ;;  %v6764_v34 = vpop.eup %6763  ;;  %v8852_v26 = vadd.f32 1.0, %v6762_v28  ;;  %v9423_v28 = vld [vmem:[#allocation72_spill] sm:$0xff] }
 0x40b   :  { %6765 = vpow2.f32 %v6060_v58  ;;  %v3882_v32 = vmul.f32 %v6764_v34, %v8834_v45  ;;  %vm3887_vm10 = vweird.f32 %v6764_v34  ;;  %v3829_v50 = vsel %vm8865_vm11, %v8832_v24, %v3825_v15  ;;  %v9424_v58 = vld [vmem:[#allocation71_spill] sm:$0xff] }
 0x40c   :  { %6767 = vrcp.f32 %v8852_v26  ;;  %v3096_v6 = vpop.f32.mrf.mxu2  ;;  %vm3888_vm14 = vmor %vm3886_vm13, %vm3887_vm10  ;;  %v3834_v45 = vsel %vm8869_vm12, %v3833_v41, %v3829_v50  ;;  %v9425_v35 = vpack.c.bf16 %v9423_v28, %v9424_v58  ;;  %vm3946_vm1 = vweird.f32 %v8852_v26 }
 0x40d   :  { %v3097_v49 = vadd.f32 %v3096_v6, %v3048_v10  ;;  %v3145_v47 = vpop.f32.mrf.mxu3  ;;  %v3000_v8 = vpop.f32.mrf.mxu0  ;;  %v3883_v29 = vsub.f32 1.0, %v3882_v32  ;;  %v3952_v12 = vand.u32 2147483648, %v8852_v26 }
 0x40e   :  { %v3049_v54 = vpop.f32.mrf.mxu1  ;;  %v3001_v18 = vadd.f32 %v3000_v8, %v2952_v17  ;;  %v3950_v8 = vand.u32 2147483647, %v8852_v26 }
 0x40f   :  { %v3146_v0 = vadd.f32 %v3145_v47, %v3097_v49  ;;  %v3884_v2 = vmul.f32 %v6764_v34, %v3883_v29  ;;  %v2957_v49 = vadd.f32 %v8582_v16, %v8580_v62 }
 0x410   :  { %v3050_v7 = vadd.f32 %v3049_v54, %v3001_v18  ;;  %vm8914_vm4 = vcmp.eq.f32.partialorder %v3950_v8, 8.507059e+37 }
 0x411   :  { %v6766_v22 = vpop.eup %6765  ;;  %v6064_v43 = vmul.f32 -1.442695, %v3146_v0  ;;  %v3885_v56 = vadd.f32 %v6764_v34, %v3884_v2 }
 0x412   :  { %v8877_v61 = vpop.eup %6767  ;;  %v8879_v55 = vadd.f32 1.0, %v6766_v22 }
 0x413   :  { %v3942_v27 = vmul.f32 %v8877_v61, %v8852_v26  ;;  %6769 = vpow2.f32 %v6064_v43  ;;  %v3889_v42 = vsel %vm3888_vm14, %v6764_v34, %v3885_v56  ;;  %v9427_v34 = vld [vmem:[#allocation56_spill] sm:$0xff]  ;;  %vm3947_vm0 = vweird.f32 %v8877_v61 }
 0x414   :  { %6771 = vrcp.f32 %v8879_v55  ;;  %v3098_v24 = vpop.f32.mrf.mxu2  ;;  %v3894_v33 = vsel %vm3891_vm15, %v3893_v4, %v3889_v42  ;;  %v9428_v10 = vpack.c.bf16 %v9426_v5, %v9427_v34  ;;  %v4010_v62 = vand.u32 2147483647, %v8879_v55  ;;  %vm8910_vm3 = vmor %vm3946_vm1, %vm3947_vm0 }
 0x415   :  { %v3099_v52 = vadd.f32 %v3098_v24, %v3050_v7  ;;  %v3147_v30 = vpop.f32.mrf.mxu3  ;;  %v3003_v19 = vpop.f32.mrf.mxu0  ;;  %v4391_v51 = vpack.c.bf16 %v3894_v33, %v3834_v45  ;;  %v3943_v59 = vsub.f32 1.0, %v3942_v27  ;;  %v4012_v16 = vand.u32 2147483648, %v8879_v55 }
 0x416   :  { %v3052_v1 = vpop.f32.mrf.mxu1  ;;  %v3004_v11 = vadd.f32 %v3003_v19, %v8569_v23  ;;  %vm4006_vm5 = vweird.f32 %v8879_v55  ;;  %v3953_v56 = vor.u32 1.1754944e-38, %v3952_v12  ;;  %vm4011_vm7 = vcmp.eq.f32.partialorder %v4010_v62, 8.507059e+37 }
 0x417   :  { %v3148_v48 = vadd.f32 %v3147_v30, %v3099_v52  ;;  %4838 = vmatmul.bf16.gmra.mxu3 %v4391_v51  ;;  %v3944_v32 = vmul.f32 %v8877_v61, %v3943_v59  ;;  %v4013_v41 = vor.u32 1.1754944e-38, %v4012_v16  ;;  %v2962_v34 = vadd.f32 %v8635_v9, %v8633_v31 }
 0x418   :  { %4706 = vmatmul.bf16.gmra.mxu0 %v9425_v35  ;;  %v3053_v37 = vadd.f32 %v3052_v1, %v3004_v11  ;;  %v9433_v1 = vld [vmem:[#allocation74_spill] sm:$0xff] }
 0x419   :  { %v6770_v25 = vpop.eup %6769  ;;  %v6068_v21 = vmul.f32 -1.442695, %v3148_v48  ;;  %4804 = vmatmul.bf16.gmra.mxu2 %v4402_v44  ;;  %v3945_v44 = vadd.f32 %v8877_v61, %v3944_v32  ;;  %v9434_v48 = vld [vmem:[#allocation73_spill] sm:$0xff] }
 0x41a   :  { %4755 = vmatmul.bf16.gmra.mxu1 %v9428_v10  ;;  %v6772_v17 = vpop.eup %6771  ;;  %v8897_v6 = vadd.f32 1.0, %v6770_v25  ;;  %v9435_v11 = vpack.c.bf16 %v9433_v1, %v9434_v48 }
 0x41b   :  { %v4002_v23 = vmul.f32 %v6772_v17, %v8879_v55  ;;  %6773 = vpow2.f32 %v6068_v21  ;;  %vm4007_vm2 = vweird.f32 %v6772_v17  ;;  %v3949_v26 = vsel %vm8910_vm3, %v8877_v61, %v3945_v44 }
 0x41c   :  { %6775 = vrcp.f32 %v8897_v6  ;;  %v3101_v47 = vpop.f32.mrf.mxu2  ;;  %vm4008_vm6 = vmor %vm4006_vm5, %vm4007_vm2  ;;  %v3954_v55 = vsel %vm8914_vm4, %v3953_v56, %v3949_v26  ;;  %v4070_v60 = vand.u32 2147483647, %v8897_v6  ;;  %vm4066_vm9 = vweird.f32 %v8897_v6 }
 0x41d   :  { %v3102_v15 = vadd.f32 %v3101_v47, %v3053_v37  ;;  %v3150_v39 = vpop.f32.mrf.mxu3  ;;  %v3005_v40 = vpop.f32.mrf.mxu0  ;;  %v4003_v29 = vsub.f32 1.0, %v4002_v23  ;;  %v4072_v32 = vand.u32 2147483648, %v8897_v6 }
 0x41e   :  { %v3054_v54 = vpop.f32.mrf.mxu1  ;;  %v3006_v20 = vadd.f32 %v3005_v40, %v2957_v49  ;;  %vm8959_vm12 = vcmp.eq.f32.partialorder %v4070_v60, 8.507059e+37 }
 0x41f   :  { %v3151_v14 = vadd.f32 %v3150_v39, %v3102_v15  ;;  %v4004_v0 = vmul.f32 %v6772_v17, %v4003_v29 }
 0x420   :  { %v3055_v27 = vadd.f32 %v3054_v54, %v3006_v20  ;;  %v4073_v54 = vor.u32 1.1754944e-38, %v4072_v32 }
 0x421   :  { %v6774_v63 = vpop.eup %6773  ;;  %v6072_v13 = vmul.f32 -1.442695, %v3151_v14  ;;  %v4005_v22 = vadd.f32 %v6772_v17, %v4004_v0 }
 0x422   :  { %v8922_v43 = vpop.eup %6775  ;;  %v8924_v50 = vadd.f32 1.0, %v6774_v63 }
 0x423   :  { %v4062_v4 = vmul.f32 %v8922_v43, %v8897_v6  ;;  %6777 = vpow2.f32 %v6072_v13  ;;  %v4009_v7 = vsel %vm4008_vm6, %v6772_v17, %v4005_v22  ;;  %vm4067_vm8 = vweird.f32 %v8922_v43 }
 0x424   :  { %6779 = vrcp.f32 %v8924_v50  ;;  %v3103_v61 = vpop.f32.mrf.mxu2  ;;  %v4014_v42 = vsel %vm4011_vm7, %v4013_v41, %v4009_v7  ;;  %v4130_v17 = vand.u32 2147483647, %v8924_v50  ;;  %v4132_v31 = vand.u32 2147483648, %v8924_v50  ;;  %vm8955_vm11 = vmor %vm4066_vm9, %vm4067_vm8 }
 0x425   :  { %v3104_v24 = vadd.f32 %v3103_v61, %v3055_v27  ;;  %v3152_v45 = vpop.f32.mrf.mxu3  ;;  %v3008_v33 = vpop.f32.mrf.mxu0  ;;  %v4395_v52 = vpack.c.bf16 %v4014_v42, %v3954_v55  ;;  %v4063_v30 = vsub.f32 1.0, %v4062_v4  ;;  %vm4126_vm13 = vweird.f32 %v8924_v50 }
 0x426   :  { %v3009_v51 = vadd.f32 %v3008_v33, %v8623_v57  ;;  %v3057_v59 = vpop.f32.mrf.mxu1  ;;  %vm4131_vm15 = vcmp.eq.f32.partialorder %v4130_v17, 8.507059e+37  ;;  %v4133_v12 = vor.u32 1.1754944e-38, %v4132_v31 }
 0x427   :  { %v3153_v19 = vadd.f32 %v3152_v45, %v3104_v24  ;;  %4843 = vmatmul.bf16.gmra.mxu3 %v4395_v52  ;;  %v4064_v35 = vmul.f32 %v8922_v43, %v4063_v30 }
 0x428   :  { %4711 = vmatmul.bf16.gmra.mxu0 %v9435_v11  ;;  %v3058_v5 = vadd.f32 %v3057_v59, %v3009_v51 }
 0x429   :  { %v6778_v28 = vpop.eup %6777  ;;  %v6076_v58 = vmul.f32 -1.442695, %v3153_v19  ;;  %4809 = vmatmul.bf16.gmra.mxu2 %v4406_v38  ;;  %v4065_v38 = vadd.f32 %v8922_v43, %v4064_v35 }
 0x42a   :  { %4760 = vmatmul.bf16.gmra.mxu1 %v4405_v53  ;;  %v6780_v25 = vpop.eup %6779  ;;  %v8942_v57 = vadd.f32 1.0, %v6778_v28 }
 0x42b   :  { %v4122_v21 = vmul.f32 %v6780_v25, %v8924_v50  ;;  %6781 = vpow2.f32 %v6076_v58  ;;  %vm4127_vm10 = vweird.f32 %v6780_v25  ;;  %v4069_v6 = vsel %vm8955_vm11, %v8922_v43, %v4065_v38 }
 0x42c   :  { %6783 = vrcp.f32 %v8942_v57  ;;  %v3106_v36 = vpop.f32.mrf.mxu2  ;;  %vm4128_vm14 = vmor %vm4126_vm13, %vm4127_vm10  ;;  %v4074_v0 = vsel %vm8959_vm12, %v4073_v54, %v4069_v6  ;;  %vm4186_vm1 = vweird.f32 %v8942_v57  ;;  %v4192_v55 = vand.u32 2147483648, %v8942_v57 }
 0x42d   :  { %v3107_v53 = vadd.f32 %v3106_v36, %v3058_v5  ;;  %v3155_v3 = vpop.f32.mrf.mxu3  ;;  %v3010_v46 = vpop.f32.mrf.mxu0  ;;  %v4123_v10 = vsub.f32 1.0, %v4122_v21  ;;  %v4190_v24 = vand.u32 2147483647, %v8942_v57 }
 0x42e   :  { %v3011_v23 = vadd.f32 %v3010_v46, %v2962_v34  ;;  %v3059_v29 = vpop.f32.mrf.mxu1  ;;  %v4193_v11 = vor.u32 1.1754944e-38, %v4192_v55 }
 0x42f   :  { %v3156_v9 = vadd.f32 %v3155_v3, %v3107_v53  ;;  %v4124_v37 = vmul.f32 %v6780_v25, %v4123_v10  ;;  %vm4191_vm6 = vcmp.eq.f32.partialorder %v4190_v24, 8.507059e+37 }
 0x430   :  { %v3060_v16 = vadd.f32 %v3059_v29, %v3011_v23 }
 0x431   :  { %v6782_v8 = vpop.eup %6781  ;;  %v6080_v15 = vmul.f32 -1.442695, %v3156_v9  ;;  %v4125_v39 = vadd.f32 %v6780_v25, %v4124_v37 }
 0x432   :  { %v6784_v40 = vpop.eup %6783  ;;  %v3407_v44 = vadd.f32 1.0, %v6782_v8 }
 0x433   :  { %v4182_v62 = vmul.f32 %v6784_v40, %v8942_v57  ;;  %6785 = vpow2.f32 %v6080_v15  ;;  %v4129_v14 = vsel %vm4128_vm14, %v6780_v25, %v4125_v39  ;;  %vm4187_vm0 = vweird.f32 %v6784_v40 }
 0x434   :  { %6787 = vrcp.f32 %v3407_v44  ;;  %v3108_v20 = vpop.f32.mrf.mxu2  ;;  %v4134_v18 = vsel %vm4131_vm15, %v4133_v12, %v4129_v14  ;;  %v4252_v42 = vand.u32 2147483648, %v3407_v44  ;;  %v4250_v33 = vand.u32 2147483647, %v3407_v44  ;;  %vm8973_vm3 = vmor %vm4186_vm1, %vm4187_vm0 }
 0x435   :  { %v3109_v2 = vadd.f32 %v3108_v20, %v3060_v16  ;;  %v4399_v63 = vpack.c.bf16 %v4134_v18, %v4074_v0  ;;  %v4183_v13 = vsub.f32 1.0, %v4182_v62  ;;  %v3157_v26 = vpop.f32.mrf.mxu3  ;;  %vm4246_vm4 = vweird.f32 %v3407_v44  ;;  %v4677_v48 = vpop.f32.mrf.mxu0  ;;  %v8982_v16 = vld [vmem:[%s9007_s4] ss:$0 sm:$0xff]  ;;  %s6935_s4 = smov [#allocation10]  }
 0x436   :  { %v4253_v28 = vor.u32 1.1754944e-38, %v4252_v42  ;;  %vm4251_vm7 = vcmp.eq.f32.partialorder %v4250_v33, 8.507059e+37  ;;  %v4678_v20 = vadd.f32 %v8982_v16, %v4677_v48  ;;  %s4884_s17 = sshll.u32 %s6935_s4, 4  ;;  %s4885_s17 = int_to_ptr.vmem [resolvable:$true] %s4884_s17 }
 0x437   :  { %v3158_v22 = vadd.f32 %v3157_v26, %v3109_v2  ;;  %4848 = vmatmul.bf16.gmra.mxu3 %v4399_v63  ;;  %v4184_v56 = vmul.f32 %v6784_v40, %v4183_v13  ;;  %v4726_v34 = vpop.f32.mrf.mxu1 }
 0x438   :  { %v4727_v2 = vadd.f32 %v4726_v34, %v4678_v20 }
 0x439   :  { %v6786_v43 = vpop.eup %6785  ;;  %v6084_v50 = vmul.f32 -1.442695, %v3158_v22  ;;  %v4185_v7 = vadd.f32 %v6784_v40, %v4184_v56 }
 0x43a   :  { %v6788_v41 = vpop.eup %6787  ;;  %v3411_v4 = vadd.f32 1.0, %v6786_v43 }
 0x43b   :  { %v4242_v27 = vmul.f32 %v6788_v41, %v3407_v44  ;;  %6789 = vpow2.f32 %v6084_v50  ;;  %vm4247_vm2 = vweird.f32 %v6788_v41  ;;  %v4189_v19 = vsel %vm8973_vm3, %v6784_v40, %v4185_v7 }
 0x43c   :  { %6791 = vrcp.f32 %v3411_v4  ;;  %vm4248_vm5 = vmor %vm4246_vm4, %vm4247_vm2  ;;  %v4194_v25 = vsel %vm4191_vm6, %v4193_v11, %v4189_v19  ;;  %v4775_v36 = vpop.f32.mrf.mxu2  ;;  %vm4306_vm9 = vweird.f32 %v3411_v4  ;;  %v4312_v32 = vand.u32 2147483648, %v3411_v4 }
 0x43d   :  { %v4243_v61 = vsub.f32 1.0, %v4242_v27  ;;  %v4679_v46 = vpop.f32.mrf.mxu0  ;;  %v4310_v31 = vand.u32 2147483647, %v3411_v4  ;;  %v4776_v63 = vadd.f32 %v4775_v36, %v4727_v2 }
 0x43e   :  { %v4313_v15 = vor.u32 1.1754944e-38, %v4312_v32  ;;  %v4680_v22 = vadd.f32 %v8982_v16, %v4679_v46 }
 0x43f   :  { %v4244_v45 = vmul.f32 %v6788_v41, %v4243_v61  ;;  %v4728_v37 = vpop.f32.mrf.mxu1  ;;  %vm4311_vm14 = vcmp.eq.f32.partialorder %v4310_v31, 8.507059e+37 }
 0x440   :  { %v4729_v50 = vadd.f32 %v4728_v37, %v4680_v22 }
 0x441   :  { %v6790_v30 = vpop.eup %6789  ;;  %v4245_v51 = vadd.f32 %v6788_v41, %v4244_v45 }
 0x442   :  { %v6792_v59 = vpop.eup %6791  ;;  %v3415_v1 = vadd.f32 1.0, %v6790_v30 }
 0x443   :  { %v4302_v58 = vmul.f32 %v6792_v59, %v3411_v4  ;;  %v4249_v35 = vsel %vm4248_vm5, %v6788_v41, %v4245_v51  ;;  %vm4307_vm8 = vweird.f32 %v6792_v59 }
 0x444   :  { %6793 = vrcp.f32 %v3415_v1  ;;  %v4254_v57 = vsel %vm4251_vm7, %v4253_v28, %v4249_v35  ;;  %v4372_v17 = vand.u32 2147483648, %v3415_v1  ;;  %v4370_v23 = vand.u32 2147483647, %v3415_v1  ;;  %vm4308_vm11 = vmor %vm4306_vm9, %vm4307_vm8  ;;  %v4777_v8 = vpop.f32.mrf.mxu2 }
 0x445   :  { %v4403_v21 = vpack.c.bf16 %v4254_v57, %v4194_v25  ;;  %v4303_v5 = vsub.f32 1.0, %v4302_v58  ;;  %vm4366_vm12 = vweird.f32 %v3415_v1  ;;  %v4682_v54 = vpop.f32.mrf.mxu0  ;;  %v4778_v4 = vadd.f32 %v4777_v8, %v4729_v50 }
 0x446   :  { %v4373_v6 = vor.u32 1.1754944e-38, %v4372_v17  ;;  %vm4371_vm15 = vcmp.eq.f32.partialorder %v4370_v23, 8.507059e+37  ;;  %v4683_v7 = vadd.f32 %v8982_v16, %v4682_v54 }
 0x447   :  { %4853 = vmatmul.bf16.gmra.mxu3 %v4403_v21  ;;  %v4304_v60 = vmul.f32 %v6792_v59, %v4303_v5  ;;  %v4731_v12 = vpop.f32.mrf.mxu1 }
 0x448   :  { %v4732_v42 = vadd.f32 %v4731_v12, %v4683_v7 }
 0x449   :  { %v4305_v38 = vadd.f32 %v6792_v59, %v4304_v60 }
 0x44a   :  { %v6794_v53 = vpop.eup %6793 }
 0x44b   :  { %v4362_v3 = vmul.f32 %v6794_v53, %v3415_v1  ;;  %vm4367_vm10 = vweird.f32 %v6794_v53  ;;  %v4309_v49 = vsel %vm4308_vm11, %v6792_v59, %v4305_v38 }
 0x44c   :  { %vm4368_vm13 = vmor %vm4366_vm12, %vm4367_vm10  ;;  %v4314_v40 = vsel %vm4311_vm14, %v4313_v15, %v4309_v49  ;;  %v4780_v62 = vpop.f32.mrf.mxu2 }
 0x44d   :  { %v4363_v10 = vsub.f32 1.0, %v4362_v3  ;;  %v4684_v14 = vpop.f32.mrf.mxu0  ;;  %v4781_v24 = vadd.f32 %v4780_v62, %v4732_v42 }
 0x44e   :  { %v4685_v30 = vadd.f32 %v8982_v16, %v4684_v14 }
 0x44f   :  { %v4364_v9 = vmul.f32 %v6794_v53, %v4363_v10  ;;  %v4733_v0 = vpop.f32.mrf.mxu1 }
 0x450   :  { %v4734_v59 = vadd.f32 %v4733_v0, %v4685_v30 }
 0x451   :  { %v4365_v47 = vadd.f32 %v6794_v53, %v4364_v9 }
 0x453   :  { %v4369_v39 = vsel %vm4368_vm13, %v6794_v53, %v4365_v47 }
 0x454   :  { %v4374_v44 = vsel %vm4371_vm15, %v4373_v6, %v4369_v39  ;;  %v4782_v18 = vpop.f32.mrf.mxu2 }
 0x455   :  { %v4407_v29 = vpack.c.bf16 %v4374_v44, %v4314_v40  ;;  %v4687_v13 = vpop.f32.mrf.mxu0  ;;  %v4783_v1 = vadd.f32 %v4782_v18, %v4734_v59 }
 0x456   :  { %v4688_v11 = vadd.f32 %v8982_v16, %v4687_v13 }
 0x457   :  { %4858 = vmatmul.bf16.gmra.mxu3 %v4407_v29  ;;  %v4736_v56 = vpop.f32.mrf.mxu1 }
 0x458   :  { %v4737_v25 = vadd.f32 %v4736_v56, %v4688_v11 }
 0x45c   :  { %v4785_v41 = vpop.f32.mrf.mxu2 }
 0x45d   :  { %v4689_v55 = vpop.f32.mrf.mxu0  ;;  %v4786_v21 = vadd.f32 %v4785_v41, %v4737_v25 }
 0x45e   :  { %v4690_v34 = vadd.f32 %v8982_v16, %v4689_v55 }
 0x45f   :  { %v4738_v45 = vpop.f32.mrf.mxu1 }
 0x460   :  { %v4739_v3 = vadd.f32 %v4738_v45, %v4690_v34 }
 0x464   :  { %v4787_v33 = vpop.f32.mrf.mxu2 }
 0x465   :  { %v4692_v51 = vpop.f32.mrf.mxu0  ;;  %v4788_v46 = vadd.f32 %v4787_v33, %v4739_v3 }
 0x466   :  { %v4693_v32 = vadd.f32 %v8982_v16, %v4692_v51 }
 0x467   :  { %v4741_v28 = vpop.f32.mrf.mxu1 }
 0x468   :  { %v4742_v31 = vadd.f32 %v4741_v28, %v4693_v32 }
 0x46a   :  { %v4824_v26 = vpop.f32.mrf.mxu3 }
 0x46b   :  { %v4825_v43 = vadd.f32 %v4824_v26, %v4776_v63 }
 0x46c   :  { %v4790_v35 = vpop.f32.mrf.mxu2 }
 0x46d   :  { %4864 = vst [vmem:[#allocation10] sm:$0xff] %v4825_v43  ;;  %v4694_v57 = vpop.f32.mrf.mxu0  ;;  %v4791_v37 = vadd.f32 %v4790_v35, %v4742_v31 }
 0x46e   :  { %v4695_v47 = vadd.f32 %v8982_v16, %v4694_v57 }
 0x46f   :  { %v4743_v60 = vpop.f32.mrf.mxu1 }
 0x470   :  { %v4744_v6 = vadd.f32 %v4743_v60, %v4695_v47 }
 0x472   :  { %v4826_v27 = vpop.f32.mrf.mxu3 }
 0x473   :  { %v4827_v61 = vadd.f32 %v4826_v27, %v4778_v4 }
 0x474   :  { %v4792_v53 = vpop.f32.mrf.mxu2 }
 0x475   :  { %4865 = vst [vmem:[#allocation10 + $0x8] sm:$0xff] %v4827_v61  ;;  %v4697_v38 = vpop.f32.mrf.mxu0  ;;  %v4793_v39 = vadd.f32 %v4792_v53, %v4744_v6 }
 0x476   :  { %v4698_v54 = vadd.f32 %v8982_v16, %v4697_v38 }
 0x477   :  { %v4746_v9 = vpop.f32.mrf.mxu1 }
 0x478   :  { %v4747_v14 = vadd.f32 %v4746_v9, %v4698_v54 }
 0x47a   :  { %v4829_v52 = vpop.f32.mrf.mxu3 }
 0x47b   :  { %v4830_v19 = vadd.f32 %v4829_v52, %v4781_v24 }
 0x47c   :  { %v4795_v23 = vpop.f32.mrf.mxu2 }
 0x47d   :  { %4866 = vst [vmem:[#allocation10 + $0x10] sm:$0xff] %v4830_v19  ;;  %v4699_v15 = vpop.f32.mrf.mxu0  ;;  %v4796_v20 = vadd.f32 %v4795_v23, %v4747_v14 }
 0x47e   :  { %v4700_v18 = vadd.f32 %v8982_v16, %v4699_v15 }
 0x47f   :  { %v4748_v40 = vpop.f32.mrf.mxu1 }
 0x480   :  { %v4749_v26 = vadd.f32 %v4748_v40, %v4700_v18 }
 0x482   :  { %v4831_v48 = vpop.f32.mrf.mxu3 }
 0x483   :  { %v4832_v58 = vadd.f32 %v4831_v48, %v4783_v1 }
 0x484   :  { %v4797_v44 = vpop.f32.mrf.mxu2 }
 0x485   :  { %4867 = vst [vmem:[#allocation10 + $0x18] sm:$0xff] %v4832_v58  ;;  %v4702_v62 = vpop.f32.mrf.mxu0  ;;  %v4798_v43 = vadd.f32 %v4797_v44, %v4749_v26 }
 0x486   :  { %v4703_v56 = vadd.f32 %v8982_v16, %v4702_v62 }
 0x487   :  { %v4751_v2 = vpop.f32.mrf.mxu1 }
 0x488   :  { %v4752_v7 = vadd.f32 %v4751_v2, %v4703_v56 }
 0x48a   :  { %v4834_v5 = vpop.f32.mrf.mxu3 }
 0x48b   :  { %v4835_v36 = vadd.f32 %v4834_v5, %v4786_v21 }
 0x48c   :  { %v4800_v13 = vpop.f32.mrf.mxu2 }
 0x48d   :  { %4868 = vst [vmem:[#allocation10 + $0x20] sm:$0xff] %v4835_v36  ;;  %v4704_v22 = vpop.f32.mrf.mxu0  ;;  %v4801_v61 = vadd.f32 %v4800_v13, %v4752_v7 }
 0x48e   :  { %v4705_v24 = vadd.f32 %v8982_v16, %v4704_v22 }
 0x48f   :  { %v4753_v4 = vpop.f32.mrf.mxu1 }
 0x490   :  { %v4754_v33 = vadd.f32 %v4753_v4, %v4705_v24 }
 0x492   :  { %v4836_v10 = vpop.f32.mrf.mxu3 }
 0x493   :  { %v4837_v17 = vadd.f32 %v4836_v10, %v4788_v46 }
 0x494   :  { %v4802_v27 = vpop.f32.mrf.mxu2 }
 0x495   :  { %4869 = vst [vmem:[#allocation10 + $0x28] sm:$0xff] %v4837_v17  ;;  %v4707_v55 = vpop.f32.mrf.mxu0  ;;  %v4803_v19 = vadd.f32 %v4802_v27, %v4754_v33 }
 0x496   :  { %v4708_v59 = vadd.f32 %v8982_v16, %v4707_v55 }
 0x497   :  { %v4756_v52 = vpop.f32.mrf.mxu1 }
 0x498   :  { %v4757_v11 = vadd.f32 %v4756_v52, %v4708_v59 }
 0x49a   :  { %v4839_v49 = vpop.f32.mrf.mxu3 }
 0x49b   :  { %v4840_v8 = vadd.f32 %v4839_v49, %v4791_v37 }
 0x49c   :  { %v4805_v30 = vpop.f32.mrf.mxu2 }
 0x49d   :  { %4870 = vst [vmem:[#allocation10 + $0x30] sm:$0xff] %v4840_v8  ;;  %v4709_v48 = vpop.f32.mrf.mxu0  ;;  %v4806_v28 = vadd.f32 %v4805_v30, %v4757_v11 }
 0x49e   :  { %v4710_v57 = vadd.f32 %v8982_v16, %v4709_v48 }
 0x49f   :  { %v4758_v58 = vpop.f32.mrf.mxu1 }
 0x4a0   :  { %v4759_v34 = vadd.f32 %v4758_v58, %v4710_v57 }
 0x4a2   :  { %v4841_v29 = vpop.f32.mrf.mxu3 }
 0x4a3   :  { %v4842_v12 = vadd.f32 %v4841_v29, %v4793_v39 }
 0x4a4   :  { %v4807_v35 = vpop.f32.mrf.mxu2 }
 0x4a5   :  { %4871 = vst [vmem:[#allocation10 + $0x38] sm:$0xff] %v4842_v12  ;;  %v4712_v5 = vpop.f32.mrf.mxu0  ;;  %v4808_v36 = vadd.f32 %v4807_v35, %v4759_v34 }
 0x4a6   :  { %v4713_v53 = vadd.f32 %v8982_v16, %v4712_v5 }
 0x4a7   :  { %v4761_v46 = vpop.f32.mrf.mxu1 }
 0x4a8   :  { %v4762_v10 = vadd.f32 %v4761_v46, %v4713_v53 }
 0x4aa   :  { %v4844_v0 = vpop.f32.mrf.mxu3 }
 0x4ab   :  { %v4845_v63 = vadd.f32 %v4844_v0, %v4796_v20 }
 0x4ac   :  { %v4810_v38 = vpop.f32.mrf.mxu2 }
 0x4ad   :  { %4872 = vst [vmem:[#allocation10 + $0x40] sm:$0xff] %v4845_v63  ;;  %v4714_v32 = vpop.f32.mrf.mxu0  ;;  %v4811_v17 = vadd.f32 %v4810_v38, %v4762_v10 }
 0x4ae   :  { %v4715_v9 = vadd.f32 %v8982_v16, %v4714_v32 }
 0x4af   :  { %v4763_v37 = vpop.f32.mrf.mxu1 }
 0x4b0   :  { %v4764_v47 = vadd.f32 %v4763_v37, %v4715_v9 }
 0x4b2   :  { %v4846_v50 = vpop.f32.mrf.mxu3 }
 0x4b3   :  { %v4847_v41 = vadd.f32 %v4846_v50, %v4798_v43 }
 0x4b4   :  { %v4812_v49 = vpop.f32.mrf.mxu2 }
 0x4b5   :  { %4873 = vst [vmem:[#allocation10 + $0x48] sm:$0xff] %v4847_v41  ;;  %v4813_v8 = vadd.f32 %v4812_v49, %v4764_v47 }
 0x4ba   :  { %v4849_v42 = vpop.f32.mrf.mxu3 }
 0x4bb   :  { %v4850_v45 = vadd.f32 %v4849_v42, %v4801_v61 }
 0x4bd   :  { %4874 = vst [vmem:[#allocation10 + $0x50] sm:$0xff] %v4850_v45 }
 0x4c2   :  { %v4851_v51 = vpop.f32.mrf.mxu3 }
 0x4c3   :  { %v4852_v1 = vadd.f32 %v4851_v51, %v4803_v19 }
 0x4c5   :  { %4875 = vst [vmem:[#allocation10 + $0x58] sm:$0xff] %v4852_v1 }
 0x4ca   :  { %v4854_v25 = vpop.f32.mrf.mxu3 }
 0x4cb   :  { %v4855_v21 = vadd.f32 %v4854_v25, %v4806_v28 }
 0x4cd   :  { %4876 = vst [vmem:[#allocation10 + $0x60] sm:$0xff] %v4855_v21 }
 0x4d2   :  { %v4856_v60 = vpop.f32.mrf.mxu3 }
 0x4d3   :  { %v4857_v3 = vadd.f32 %v4856_v60, %v4808_v36 }
 0x4d5   :  { %4877 = vst [vmem:[#allocation10 + $0x68] sm:$0xff] %v4857_v3 }
 0x4da   :  { %v4859_v31 = vpop.f32.mrf.mxu3 }
 0x4db   :  { %v4860_v23 = vadd.f32 %v4859_v31, %v4811_v17 }
 0x4dd   :  { %4878 = vst [vmem:[#allocation10 + $0x70] sm:$0xff] %v4860_v23 }
 0x4e2   :  { %v4861_v15 = vpop.f32.mrf.mxu3 }
 0x4e3   :  { %v4862_v6 = vadd.f32 %v4861_v15, %v4813_v8 }
 0x4e5   :  { %4879 = vst [vmem:[#allocation10 + $0x78] sm:$0xff] %v4862_v6 }
 0x4e6   :  { %4892 = dma.vmem_to_hbm [thread:$0]  %s4885_s17, 2048, %s4887_s20, [#allocation4], %s6936_s21, %s6936_s21, %s6937_s22  }
 0x4e7   :  { %6923 = dma.done.wait [#allocation4], 2048  }
 0x4e8   :  { %6924 = vsyncadd [#allocation4], 4294965248 }
 0x4e9   :  { %4897 = vsyncpa [#allocation3], 1 }
 0x4ea   :  { %4898 = vsyncpa [#allocation6], 1 }
 0x4eb   :  { %4899 = vsyncpa [#allocation9], 1 }
 0x4ec   :  { %4900 = vsyncpa [#allocation4], 1 }

</bundles_post_ra>
